<compile_context>
chip_gen: v7x
topology: tpu7x:2x2x1
jax: 0.10.0
libtpu: 0.0.40
codegen_flags: <defaults>
</compile_context>

<pallas_src>
import functools

import jax
import jax.numpy as jnp
import numpy as np
from jax.experimental import pallas as pl
from jax.experimental.pallas import tpu as pltpu

_VMEM = pl.BlockSpec(memory_space=pltpu.MemorySpace.VMEM)
_BN_EPS = 1e-5
_MXU_DTYPE = jnp.bfloat16        # matmul operand dtype (accumulation stays f32)


# --------------------------------------------------------------------------
# Architecture parsing (mirrors ConvNet.__init__; input fixed at 32x32x3).
# Tracks the *physical* slab layout: lanes = (physical column group, channel),
# where a roll-max pool leaves valid data at every other group (stride *= 2).
# --------------------------------------------------------------------------
def parse_layers(layers, in_hwc=(32, 32, 3)):
    h, w, c = in_hwc
    w_phys, stride = w, 1
    conv_stage, fc_stage = [], []
    total = h * w * c
    flat = None
    prev_op = None
    for layer in layers:
        if layer.startswith("Conv"):
            cout = int(layer[4:])
            cin_phys = 4 if c == 3 else c        # pad RGB so lanes_in % 128 == 0
            conv_stage.append(dict(
                op="conv", h=h, w=w, cin=c, cin_phys=cin_phys, cout=cout,
                w_phys_in=w_phys, stride_in=stride,
                lanes_in=w_phys * cin_phys, lanes_out=w * cout))
            c = cout
            w_phys, stride = w, 1                # conv output slab is lane-compact
            total = h * w * c
            prev_op = "conv"
        elif layer.startswith("MaxPool"):
            if prev_op != "conv":
                # TODO(synk): back-to-back pools / pool-first plans would need a
                # value-producing pool path; not used by the TAKD plans.
                raise NotImplementedError("MaxPool must directly follow a Conv")
            conv_stage.append(dict(op="pool", h=h, w=w, c=c,
                                   w_phys=w_phys, stride_in=stride,
                                   lanes=w_phys * c))
            h, w = h // 2, w // 2
            stride *= 2                          # pooled cols sit at every other group
            total = h * w * c
            prev_op = "pool"
        elif layer.startswith("FC"):
            fout = int(layer[2:])
            if flat is None:
                flat = dict(hf=h, wf=w, cf=c, w_phys=w_phys, stride=stride,
                            lanes=w_phys * c, fin=total, fin_phys=h * w_phys * c)
            fc_stage.append(dict(op="fc", fin=total, fout=fout,
                                 fout_pad=-(-fout // 128) * 128))
            total = fout
    if not conv_stage or conv_stage[0]["op"] != "conv":
        raise NotImplementedError("plan must start with a Conv layer")
    if not fc_stage:
        raise NotImplementedError("plan must end with at least one FC layer")
    if flat is None:
        flat = dict(hf=h, wf=w, cf=c, w_phys=w_phys, stride=stride,
                    lanes=w_phys * c, fin=total, fin_phys=h * w_phys * c)
    return dict(conv=conv_stage, fc=fc_stage, in_hwc=in_hwc, flat=flat,
                n_out=fc_stage[-1]["fout"], n_out_pad=fc_stage[-1]["fout_pad"])


def init_params(key, arch):
    """PyTorch-shaped parameters (conv: HWIO + bias/BN; fc: (fin, fout) with fin
    rows in torch's (c, h, w) flatten order)."""
    conv_params, fc_params = [], []
    for spec in arch["conv"]:
        if spec["op"] == "conv":
            key, k1, k2 = jax.random.split(key, 3)
            bound = 1.0 / float(9 * spec["cin"]) ** 0.5
            conv_params.append(dict(
                w=jax.random.uniform(k1, (3, 3, spec["cin"], spec["cout"]),
                                     jnp.float32, -bound, bound),
                # Conv bias is kept for parameter fidelity but not used by the
                # kernel: training-mode BN's mean subtraction cancels it exactly.
                b=jax.random.uniform(k2, (spec["cout"],), jnp.float32, -bound, bound),
                gamma=jnp.ones((spec["cout"],), jnp.float32),   # BatchNorm weight
                beta=jnp.zeros((spec["cout"],), jnp.float32),   # BatchNorm bias
            ))
        else:
            conv_params.append(None)
    for spec in arch["fc"]:
        key, k1, k2 = jax.random.split(key, 3)
        bound = 1.0 / float(spec["fin"]) ** 0.5
        fc_params.append(dict(
            w=jax.random.uniform(k1, (spec["fin"], spec["fout"]),
                                 jnp.float32, -bound, bound),
            b=jax.random.uniform(k2, (spec["fout"],), jnp.float32, -bound, bound),
        ))
    return conv_params, fc_params


# --------------------------------------------------------------------------
# One-time host-side weight re-layout.
# --------------------------------------------------------------------------
def prepare_operands(arch, conv_params, fc_params):
    """* conv -> 3 per-ky block-banded (lanes_in, w*cout) bf16 matrices: kx taps,
         padding=1 W boundary, channel pad and the preceding pool's
         every-other-group selection are all folded in.
       * fc1 rows scattered from torch's (c,h,w) flatten order into the kernel's
         flat slab order; all FC widths padded to multiples of 128 lanes."""
    ops = []
    for spec, p in zip(arch["conv"], conv_params):
        if spec["op"] != "conv":
            continue
        w, cin, cin_phys, cout = spec["w"], spec["cin"], spec["cin_phys"], spec["cout"]
        stride, lanes_in, lanes_out = spec["stride_in"], spec["lanes_in"], spec["lanes_out"]
        wt = np.asarray(p["w"], np.float32)                     # (3, 3, cin, cout)
        blk = np.zeros((3, lanes_in, lanes_out), np.float32)
        for ky in range(3):
            for j in range(w):                                   # output column
                for kx in range(3):
                    jj = j + kx - 1                              # input column
                    if 0 <= jj < w:
                        r0 = jj * stride * cin_phys
                        blk[ky, r0:r0 + cin, j * cout:(j + 1) * cout] = wt[ky, kx]
        ops.append(jnp.asarray(blk, dtype=_MXU_DTYPE))
        ops.append(jnp.asarray(np.asarray(p["gamma"], np.float32).reshape(1, cout)))
        ops.append(jnp.asarray(np.asarray(p["beta"], np.float32).reshape(1, cout)))

    flat = arch["flat"]
    fin_prev_pad = None
    for i, (spec, p) in enumerate(zip(arch["fc"], fc_params)):
        fout, fout_pad = spec["fout"], spec["fout_pad"]
        wsrc = np.asarray(p["w"], np.float32)                    # (fin, fout)
        if i == 0:
            hf, wf, cf = flat["hf"], flat["wf"], flat["cf"]
            lanes, stride = flat["lanes"], flat["stride"]
            wnew = np.zeros((flat["fin_phys"], fout_pad), np.float32)
            c_i, h_i, w_i = np.meshgrid(np.arange(cf), np.arange(hf), np.arange(wf),
                                        indexing="ij")
            src_rows = (c_i * hf * wf + h_i * wf + w_i).reshape(-1)
            dst_rows = (h_i * lanes + (w_i * stride) * cf + c_i).reshape(-1)
            wnew[dst_rows, :fout] = wsrc[src_rows]
        else:
            wnew = np.zeros((fin_prev_pad, fout_pad), np.float32)
            wnew[:spec["fin"], :fout] = wsrc
        bnew = np.zeros((1, fout_pad), np.float32)
        bnew[0, :fout] = np.asarray(p["b"], np.float32)
        ops.append(jnp.asarray(wnew, dtype=_MXU_DTYPE))
        ops.append(jnp.asarray(bnew))
        fin_prev_pad = fout_pad
    return ops


def make_scratch_shapes(arch, batch):
    shapes = []
    for li, spec in enumerate(arch["conv"]):
        if spec["op"] == "conv" and li > 0:
            # H-padded input slab for the 3x3 conv (interior written exactly once).
            shapes.append(pltpu.VMEM((batch, spec["h"] + 2, spec["lanes_in"]),
                                     jnp.float32))
    # Flat FC-input slab (rows laid out to match the pre-permuted fc1 weight).
    shapes.append(pltpu.VMEM((batch, arch["flat"]["fin_phys"]), jnp.float32))
    return shapes


def _vmem_limit_bytes(arch, batch, operands):
    """Explicit VMEM budget (review: size against v7x's 64 MiB, not 128 MiB)."""
    byt = sum(int(o.size) * o.dtype.itemsize for o in operands)
    spec0 = arch["conv"][0]
    byt += batch * (spec0["h"] + 2) * spec0["lanes_in"] * 4          # input slab
    byt += batch * arch["n_out_pad"] * 4                             # logits
    byt += batch * arch["flat"]["fin_phys"] * 4                      # FC slab
    for li, spec in enumerate(arch["conv"]):
        if spec["op"] == "conv":
            byt += 2 * batch * spec["h"] * max(spec["lanes_in"], spec["lanes_out"]) * 4
            if li > 0:
                byt += batch * (spec["h"] + 2) * spec["lanes_in"] * 4
    return int(min(48 * 2 ** 20, max(16 * 2 ** 20, 4 * byt)))


# --------------------------------------------------------------------------
# In-kernel helpers (trace-time Python on tiny (1, N) rows only).
# --------------------------------------------------------------------------
def _sum_lane_groups(x, group):
    """(rows, n*group) -> (rows, group): sum of the n lane groups."""
    n = x.shape[-1] // group
    while n % 2 == 0 and n > 1:
        half = (n // 2) * group
        x = x[:, :half] + x[:, half:]
        n //= 2
    out = x[:, :group]
    for i in range(1, n):
        out = out + x[:, i * group:(i + 1) * group]
    return out


def _tile_lanes(v, times):
    """(1, group) -> (1, group*times): `times` copies along the lane axis."""
    out, n = v, 1
    while 2 * n <= times:
        out = jnp.concatenate([out, out], axis=-1)
        n *= 2
    while n < times:
        out = jnp.concatenate([out, v], axis=-1)
        n += 1
    return out


# --------------------------------------------------------------------------
# Fused forward kernel.
# --------------------------------------------------------------------------
def make_fused_kernel(arch, batch):
    conv_stage, fc_stage, flat = arch["conv"], arch["fc"], arch["flat"]
    n_layers = len(conv_stage)
    n_fc = len(fc_stage)
    for spec in conv_stage:
        if spec["op"] == "conv":
            # TODO(synk): plans with H < 8 at a conv would need row-padded slabs.
            assert spec["h"] % 8 == 0, "slab layout needs H % 8 == 0 at every conv"

    def kernel(*refs):
        it = iter(refs)
        x_ref = next(it)
        conv_refs = []
        for spec in conv_stage:
            conv_refs.append(tuple(next(it) for _ in range(3))
                             if spec["op"] == "conv" else None)
        fc_refs = [tuple(next(it) for _ in range(2)) for _ in fc_stage]
        o_ref = next(it)
        conv_scr = {}
        for li, spec in enumerate(conv_stage):
            if spec["op"] == "conv" and li > 0:
                conv_scr[li] = next(it)
        fc_scr = next(it)

        def zero_borders(li_conv):
            scr = conv_scr[li_conv]
            h = conv_stage[li_conv]["h"]
            lanes = conv_stage[li_conv]["lanes_in"]
            zero = jnp.zeros((batch, lanes), jnp.float32)
            scr[:, 0, :] = zero
            scr[:, h + 1, :] = zero

        def emit_rows(dst_li, n_rows, get_row):
            """Write n_rows of (batch, lanes) straight into the consumer's buffer."""
            if dst_li is None:                       # consumer is the FC stage
                lanes = flat["lanes"]
                for i in range(n_rows):
                    fc_scr[:, i * lanes:(i + 1) * lanes] = get_row(i)
            else:                                    # consumer is conv layer dst_li
                zero_borders(dst_li)
                scr = conv_scr[dst_li]
                for i in range(n_rows):
                    scr[:, 1 + i, :] = get_row(i)

        act = None                                   # (batch*h, lanes) f32 value
        for li, spec in enumerate(conv_stage):
            if spec["op"] == "conv":
                wblk_ref, gamma_ref, beta_ref = conv_refs[li]
                h, w, cout = spec["h"], spec["w"], spec["cout"]
                lanes_in = spec["lanes_in"]
                if li == 0:
                    src = x_ref                      # host-prepared H-padded slab
                else:
                    src = conv_scr[li]
                    if conv_stage[li - 1]["op"] == "conv":
                        # conv -> conv: one dense interior store + zeroed borders.
                        zero_borders(li)
                        src[:, 1:h + 1, :] = act.reshape(batch, h, lanes_in)

                # 3x3 conv (padding=1) = 3 row-shifted slab matmuls against
                # block-banded weights (kx taps + W boundary folded in on host).
                acc = None
                for ky in range(3):
                    tap = src[:, ky:ky + h, :].reshape(batch * h, lanes_in)
                    d = jnp.dot(tap.astype(_MXU_DTYPE), wblk_ref[ky],
                                preferred_element_type=jnp.float32)
                    acc = d if acc is None else acc + d

                # BatchNorm2d (training-mode batch stats, biased variance,
                # eps=1e-5) folded into one scale/shift FMA, then ReLU.
                # Rows are reduced first; the per-channel lane reduce then runs
                # on a single (1, w*cout) row instead of the whole slab.
                inv_n = 1.0 / float(batch * h * w)
                col_sum = jnp.sum(acc, axis=0, keepdims=True)
                col_sq = jnp.sum(acc * acc, axis=0, keepdims=True)
                mean = _sum_lane_groups(col_sum, cout) * inv_n
                ex2 = _sum_lane_groups(col_sq, cout) * inv_n
                var = jnp.maximum(ex2 - mean * mean, 0.0)
                scale = gamma_ref[...] * jax.lax.rsqrt(var + _BN_EPS)
                shift = beta_ref[...] - mean * scale
                act = jnp.maximum(
                    acc * _tile_lanes(scale, w) + _tile_lanes(shift, w), 0.0)

                if li == n_layers - 1:
                    # Conv feeds the FC stage directly: flatten via row stores.
                    act3 = act.reshape(batch, h, spec["lanes_out"])
                    emit_rows(None, h, lambda i: act3[:, i, :])
            else:
                # MaxPool2d(2).  W half: pair max lands in every other channel
                # group (selection is baked into the consumer's weights).  H
                # half: pair max; even rows go straight to the consumer's slab.
                h, c, lanes = spec["h"], spec["c"], spec["lanes"]
                sc = spec["stride_in"] * c
                hp = h // 2
                rolled = jnp.concatenate([act[:, sc:], act[:, :sc]], axis=-1)
                wmax = jnp.maximum(act, rolled).reshape(batch, h, lanes)
                pair = jnp.maximum(wmax[:, :h - 1, :], wmax[:, 1:, :])
                dst = li + 1 if li + 1 < n_layers else None
                # TODO(synk): at large batch, the per-row selection stores could
                # move onto the MXU (selection matmul) or a strided DMA.
                emit_rows(dst, hp, lambda i: pair[:, 2 * i, :])
                act = None

        # FC stage (lane-padded to 128-wide outputs; last FC has no ReLU,
        # matching fc_layer.pop()).
        x = fc_scr[...].astype(_MXU_DTYPE)
        for i, (wf_ref, bf_ref) in enumerate(fc_refs):
            x = jnp.dot(x, wf_ref[...],
                        preferred_element_type=jnp.float32) + bf_ref[...]
            if i != n_fc - 1:
                x = jnp.maximum(x, 0.0).astype(_MXU_DTYPE)
        o_ref[...] = x

    return kernel


def convnet_forward(x_nchw, operands, arch):
    b = x_nchw.shape[0]
    spec0 = arch["conv"][0]
    h0, w0, cin, cin_phys = spec0["h"], spec0["w"], spec0["cin"], spec0["cin_phys"]
    # NCHW -> zero-channel-padded NHWC -> (B, H+2, W*Cpad) slab with zero H-pad
    # border rows (the only host-side activation relayout).
    x = jnp.transpose(x_nchw, (0, 2, 3, 1))
    if cin_phys != cin:
        x = jnp.pad(x, ((0, 0), (0, 0), (0, 0), (0, cin_phys - cin)))
    x = x.reshape(b, h0, w0 * cin_phys)
    x = jnp.pad(x, ((0, 0), (1, 1), (0, 0)))
    out = pl.pallas_call(
        make_fused_kernel(arch, b),
        out_shape=jax.ShapeDtypeStruct((b, arch["n_out_pad"]), jnp.float32),
        in_specs=[_VMEM] * (1 + len(operands)),
        out_specs=_VMEM,
        scratch_shapes=make_scratch_shapes(arch, b),
        compiler_params=pltpu.CompilerParams(
            vmem_limit_bytes=_vmem_limit_bytes(arch, b, operands)),
    )(x, *operands)
    return out[:, :arch["n_out"]]          # drop the lane padding of the logits


# --------------------------------------------------------------------------
if __name__ == "__main__":
    layers = ["Conv8", "MaxPool", "Conv16", "MaxPool", "FC32", "FC10"]
    arch = parse_layers(layers)

    key = jax.random.PRNGKey(0)
    key_p, key_x = jax.random.split(key)
    conv_params, fc_params = init_params(key_p, arch)
    operands = prepare_operands(arch, conv_params, fc_params)  # one-time re-layout

    # ConvNet assumes CIFAR-like 32x32x3 inputs; keep batch small.
    x = jax.random.normal(key_x, (2, 3, 32, 32), jnp.float32)

    fwd = jax.jit(functools.partial(convnet_forward, arch=arch))
    out = jax.block_until_ready(fwd(x, operands))
    assert out.shape == (2, 10), out.shape
    print("KERNEL_OK")
</pallas_src>

<mosaic_0001>
module attributes {stable_mosaic.version = 11 : i64} {
  func.func @kernel(%arg0: memref<2x34x128xf32, #tpu.memory_space<vmem>>, %arg1: memref<3x128x256xbf16, #tpu.memory_space<vmem>>, %arg2: memref<1x8xf32, #tpu.memory_space<vmem>>, %arg3: memref<1x8xf32, #tpu.memory_space<vmem>>, %arg4: memref<3x256x256xbf16, #tpu.memory_space<vmem>>, %arg5: memref<1x16xf32, #tpu.memory_space<vmem>>, %arg6: memref<1x16xf32, #tpu.memory_space<vmem>>, %arg7: memref<2048x128xbf16, #tpu.memory_space<vmem>>, %arg8: memref<1x128xf32, #tpu.memory_space<vmem>>, %arg9: memref<128x128xbf16, #tpu.memory_space<vmem>>, %arg10: memref<1x128xf32, #tpu.memory_space<vmem>>, %arg11: memref<2x128xf32, #tpu.memory_space<vmem>>, %arg12: memref<2x18x256xf32, #tpu.memory_space<vmem>>, %arg13: memref<2x2048xf32, #tpu.memory_space<vmem>>) attributes {dimension_semantics = [], scalar_prefetch = 0 : i64, scratch_operands = 2 : i64, tpu.core_type = #tpu.core_type<tc>} {
    %c0 = arith.constant 0 : index
    %c0_0 = arith.constant 0 : index
    %c0_1 = arith.constant 0 : index
    %0 = vector.load %arg0[%c0, %c0_0, %c0_1] : memref<2x34x128xf32, #tpu.memory_space<vmem>>, vector<2x32x128xf32>
    %1 = vector.shape_cast %0 : vector<2x32x128xf32> to vector<64x128xf32>
    %2 = arith.truncf %1 : vector<64x128xf32> to vector<64x128xbf16>
    %c0_2 = arith.constant 0 : index
    %c0_3 = arith.constant 0 : index
    %c0_4 = arith.constant 0 : index
    %3 = vector.load %arg1[%c0_2, %c0_3, %c0_4] : memref<3x128x256xbf16, #tpu.memory_space<vmem>>, vector<1x128x256xbf16>
    %4 = vector.shape_cast %3 : vector<1x128x256xbf16> to vector<128x256xbf16>
    %cst = arith.constant dense<0.000000e+00> : vector<64x256xf32>
    %5 = tpu.matmul %2, %4, %cst {dimension_numbers = #tpu.dot_dimension_numbers<[1], [0], [0], [1], [0, 0, 1, 1], [], []>} : vector<64x128xbf16>, vector<128x256xbf16>, vector<64x256xf32> -> vector<64x256xf32>
    %c0_5 = arith.constant 0 : index
    %c1 = arith.constant 1 : index
    %c0_6 = arith.constant 0 : index
    %6 = vector.load %arg0[%c0_5, %c1, %c0_6] : memref<2x34x128xf32, #tpu.memory_space<vmem>>, vector<2x32x128xf32>
    %7 = vector.shape_cast %6 : vector<2x32x128xf32> to vector<64x128xf32>
    %8 = arith.truncf %7 : vector<64x128xf32> to vector<64x128xbf16>
    %c1_7 = arith.constant 1 : index
    %c0_8 = arith.constant 0 : index
    %c0_9 = arith.constant 0 : index
    %9 = vector.load %arg1[%c1_7, %c0_8, %c0_9] : memref<3x128x256xbf16, #tpu.memory_space<vmem>>, vector<1x128x256xbf16>
    %10 = vector.shape_cast %9 : vector<1x128x256xbf16> to vector<128x256xbf16>
    %cst_10 = arith.constant dense<0.000000e+00> : vector<64x256xf32>
    %11 = tpu.matmul %8, %10, %cst_10 {dimension_numbers = #tpu.dot_dimension_numbers<[1], [0], [0], [1], [0, 0, 1, 1], [], []>} : vector<64x128xbf16>, vector<128x256xbf16>, vector<64x256xf32> -> vector<64x256xf32>
    %12 = arith.addf %5, %11 : vector<64x256xf32>
    %c0_11 = arith.constant 0 : index
    %c2 = arith.constant 2 : index
    %c0_12 = arith.constant 0 : index
    %13 = vector.load %arg0[%c0_11, %c2, %c0_12] : memref<2x34x128xf32, #tpu.memory_space<vmem>>, vector<2x32x128xf32>
    %14 = vector.shape_cast %13 : vector<2x32x128xf32> to vector<64x128xf32>
    %15 = arith.truncf %14 : vector<64x128xf32> to vector<64x128xbf16>
    %c2_13 = arith.constant 2 : index
    %c0_14 = arith.constant 0 : index
    %c0_15 = arith.constant 0 : index
    %16 = vector.load %arg1[%c2_13, %c0_14, %c0_15] : memref<3x128x256xbf16, #tpu.memory_space<vmem>>, vector<1x128x256xbf16>
    %17 = vector.shape_cast %16 : vector<1x128x256xbf16> to vector<128x256xbf16>
    %cst_16 = arith.constant dense<0.000000e+00> : vector<64x256xf32>
    %18 = tpu.matmul %15, %17, %cst_16 {dimension_numbers = #tpu.dot_dimension_numbers<[1], [0], [0], [1], [0, 0, 1, 1], [], []>} : vector<64x128xbf16>, vector<128x256xbf16>, vector<64x256xf32> -> vector<64x256xf32>
    %19 = arith.addf %12, %18 : vector<64x256xf32>
    %cst_17 = arith.constant dense<0.000000e+00> : vector<256xf32>
    %20 = vector.multi_reduction <add>, %19, %cst_17 [0] : vector<64x256xf32> to vector<256xf32>
    %21 = vector.shape_cast %20 : vector<256xf32> to vector<1x256xf32>
    %22 = arith.mulf %19, %19 : vector<64x256xf32>
    %cst_18 = arith.constant dense<0.000000e+00> : vector<256xf32>
    %23 = vector.multi_reduction <add>, %22, %cst_18 [0] : vector<64x256xf32> to vector<256xf32>
    %24 = vector.shape_cast %23 : vector<256xf32> to vector<1x256xf32>
    %25 = vector.extract_strided_slice %21 {offsets = [0, 0], sizes = [1, 128], strides = [1, 1]} : vector<1x256xf32> to vector<1x128xf32>
    %26 = vector.extract_strided_slice %21 {offsets = [0, 128], sizes = [1, 128], strides = [1, 1]} : vector<1x256xf32> to vector<1x128xf32>
    %27 = arith.addf %25, %26 : vector<1x128xf32>
    %28 = vector.extract_strided_slice %27 {offsets = [0, 0], sizes = [1, 64], strides = [1, 1]} : vector<1x128xf32> to vector<1x64xf32>
    %29 = vector.extract_strided_slice %27 {offsets = [0, 64], sizes = [1, 64], strides = [1, 1]} : vector<1x128xf32> to vector<1x64xf32>
    %30 = arith.addf %28, %29 : vector<1x64xf32>
    %31 = vector.extract_strided_slice %30 {offsets = [0, 0], sizes = [1, 32], strides = [1, 1]} : vector<1x64xf32> to vector<1x32xf32>
    %32 = vector.extract_strided_slice %30 {offsets = [0, 32], sizes = [1, 32], strides = [1, 1]} : vector<1x64xf32> to vector<1x32xf32>
    %33 = arith.addf %31, %32 : vector<1x32xf32>
    %34 = vector.extract_strided_slice %33 {offsets = [0, 0], sizes = [1, 16], strides = [1, 1]} : vector<1x32xf32> to vector<1x16xf32>
    %35 = vector.extract_strided_slice %33 {offsets = [0, 16], sizes = [1, 16], strides = [1, 1]} : vector<1x32xf32> to vector<1x16xf32>
    %36 = arith.addf %34, %35 : vector<1x16xf32>
    %37 = vector.extract_strided_slice %36 {offsets = [0, 0], sizes = [1, 8], strides = [1, 1]} : vector<1x16xf32> to vector<1x8xf32>
    %38 = vector.extract_strided_slice %36 {offsets = [0, 8], sizes = [1, 8], strides = [1, 1]} : vector<1x16xf32> to vector<1x8xf32>
    %39 = arith.addf %37, %38 : vector<1x8xf32>
    %cst_19 = arith.constant 4.8828125E-4 : f32
    %40 = vector.broadcast %cst_19 : f32 to vector<1x8xf32>
    %41 = arith.mulf %39, %40 : vector<1x8xf32>
    %42 = vector.extract_strided_slice %24 {offsets = [0, 0], sizes = [1, 128], strides = [1, 1]} : vector<1x256xf32> to vector<1x128xf32>
    %43 = vector.extract_strided_slice %24 {offsets = [0, 128], sizes = [1, 128], strides = [1, 1]} : vector<1x256xf32> to vector<1x128xf32>
    %44 = arith.addf %42, %43 : vector<1x128xf32>
    %45 = vector.extract_strided_slice %44 {offsets = [0, 0], sizes = [1, 64], strides = [1, 1]} : vector<1x128xf32> to vector<1x64xf32>
    %46 = vector.extract_strided_slice %44 {offsets = [0, 64], sizes = [1, 64], strides = [1, 1]} : vector<1x128xf32> to vector<1x64xf32>
    %47 = arith.addf %45, %46 : vector<1x64xf32>
    %48 = vector.extract_strided_slice %47 {offsets = [0, 0], sizes = [1, 32], strides = [1, 1]} : vector<1x64xf32> to vector<1x32xf32>
    %49 = vector.extract_strided_slice %47 {offsets = [0, 32], sizes = [1, 32], strides = [1, 1]} : vector<1x64xf32> to vector<1x32xf32>
    %50 = arith.addf %48, %49 : vector<1x32xf32>
    %51 = vector.extract_strided_slice %50 {offsets = [0, 0], sizes = [1, 16], strides = [1, 1]} : vector<1x32xf32> to vector<1x16xf32>
    %52 = vector.extract_strided_slice %50 {offsets = [0, 16], sizes = [1, 16], strides = [1, 1]} : vector<1x32xf32> to vector<1x16xf32>
    %53 = arith.addf %51, %52 : vector<1x16xf32>
    %54 = vector.extract_strided_slice %53 {offsets = [0, 0], sizes = [1, 8], strides = [1, 1]} : vector<1x16xf32> to vector<1x8xf32>
    %55 = vector.extract_strided_slice %53 {offsets = [0, 8], sizes = [1, 8], strides = [1, 1]} : vector<1x16xf32> to vector<1x8xf32>
    %56 = arith.addf %54, %55 : vector<1x8xf32>
    %cst_20 = arith.constant 4.8828125E-4 : f32
    %57 = vector.broadcast %cst_20 : f32 to vector<1x8xf32>
    %58 = arith.mulf %56, %57 : vector<1x8xf32>
    %59 = arith.mulf %41, %41 : vector<1x8xf32>
    %60 = arith.subf %58, %59 : vector<1x8xf32>
    %cst_21 = arith.constant 0.000000e+00 : f32
    %61 = vector.broadcast %cst_21 : f32 to vector<1x8xf32>
    %62 = arith.maximumf %60, %61 : vector<1x8xf32>
    %c0_22 = arith.constant 0 : index
    %c0_23 = arith.constant 0 : index
    %63 = vector.load %arg2[%c0_22, %c0_23] : memref<1x8xf32, #tpu.memory_space<vmem>>, vector<1x8xf32>
    %cst_24 = arith.constant 9.99999974E-6 : f32
    %64 = vector.broadcast %cst_24 : f32 to vector<1x8xf32>
    %65 = arith.addf %62, %64 : vector<1x8xf32>
    %66 = math.rsqrt %65 : vector<1x8xf32>
    %67 = arith.mulf %63, %66 : vector<1x8xf32>
    %c0_25 = arith.constant 0 : index
    %c0_26 = arith.constant 0 : index
    %68 = vector.load %arg3[%c0_25, %c0_26] : memref<1x8xf32, #tpu.memory_space<vmem>>, vector<1x8xf32>
    %69 = arith.mulf %41, %67 : vector<1x8xf32>
    %70 = arith.subf %68, %69 : vector<1x8xf32>
    %71 = tpu.concatenate %67, %67 in 1 : vector<1x8xf32>, vector<1x8xf32> -> vector<1x16xf32>
    %72 = tpu.concatenate %71, %71 in 1 : vector<1x16xf32>, vector<1x16xf32> -> vector<1x32xf32>
    %73 = tpu.concatenate %72, %72 in 1 : vector<1x32xf32>, vector<1x32xf32> -> vector<1x64xf32>
    %74 = tpu.concatenate %73, %73 in 1 : vector<1x64xf32>, vector<1x64xf32> -> vector<1x128xf32>
    %75 = tpu.concatenate %74, %74 in 1 : vector<1x128xf32>, vector<1x128xf32> -> vector<1x256xf32>
    %76 = vector.broadcast %75 : vector<1x256xf32> to vector<64x256xf32>
    %77 = arith.mulf %19, %76 : vector<64x256xf32>
    %78 = tpu.concatenate %70, %70 in 1 : vector<1x8xf32>, vector<1x8xf32> -> vector<1x16xf32>
    %79 = tpu.concatenate %78, %78 in 1 : vector<1x16xf32>, vector<1x16xf32> -> vector<1x32xf32>
    %80 = tpu.concatenate %79, %79 in 1 : vector<1x32xf32>, vector<1x32xf32> -> vector<1x64xf32>
    %81 = tpu.concatenate %80, %80 in 1 : vector<1x64xf32>, vector<1x64xf32> -> vector<1x128xf32>
    %82 = tpu.concatenate %81, %81 in 1 : vector<1x128xf32>, vector<1x128xf32> -> vector<1x256xf32>
    %83 = vector.broadcast %82 : vector<1x256xf32> to vector<64x256xf32>
    %84 = arith.addf %77, %83 : vector<64x256xf32>
    %cst_27 = arith.constant 0.000000e+00 : f32
    %85 = vector.broadcast %cst_27 : f32 to vector<64x256xf32>
    %86 = arith.maximumf %84, %85 : vector<64x256xf32>
    %87 = vector.extract_strided_slice %86 {offsets = [0, 8], sizes = [64, 248], strides = [1, 1]} : vector<64x256xf32> to vector<64x248xf32>
    %88 = vector.extract_strided_slice %86 {offsets = [0, 0], sizes = [64, 8], strides = [1, 1]} : vector<64x256xf32> to vector<64x8xf32>
    %89 = tpu.concatenate %87, %88 in 1 : vector<64x248xf32>, vector<64x8xf32> -> vector<64x256xf32>
    %90 = arith.maximumf %86, %89 : vector<64x256xf32>
    %91 = vector.shape_cast %90 : vector<64x256xf32> to vector<2x32x256xf32>
    %92 = vector.extract_strided_slice %91 {offsets = [0, 0, 0], sizes = [2, 31, 256], strides = [1, 1, 1]} : vector<2x32x256xf32> to vector<2x31x256xf32>
    %93 = vector.extract_strided_slice %91 {offsets = [0, 1, 0], sizes = [2, 31, 256], strides = [1, 1, 1]} : vector<2x32x256xf32> to vector<2x31x256xf32>
    %94 = arith.maximumf %92, %93 : vector<2x31x256xf32>
    %cst_28 = arith.constant 0.000000e+00 : f32
    %95 = vector.broadcast %cst_28 : f32 to vector<2x256xf32>
    %c0_29 = arith.constant 0 : index
    %c0_30 = arith.constant 0 : index
    %c0_31 = arith.constant 0 : index
    %96 = vector.load %arg12[%c0_29, %c0_30, %c0_31] : memref<2x18x256xf32, #tpu.memory_space<vmem>>, vector<2x1x256xf32>
    %97 = vector.shape_cast %96 : vector<2x1x256xf32> to vector<2x256xf32>
    %98 = vector.shape_cast %95 : vector<2x256xf32> to vector<2x1x256xf32>
    tpu.vector_store %arg12[%c0_29, %c0_30, %c0_31], %98 {strides = array<i32>} : memref<2x18x256xf32, #tpu.memory_space<vmem>>, vector<2x1x256xf32>,
    %c0_32 = arith.constant 0 : index
    %c17 = arith.constant 17 : index
    %c0_33 = arith.constant 0 : index
    %99 = vector.load %arg12[%c0_32, %c17, %c0_33] : memref<2x18x256xf32, #tpu.memory_space<vmem>>, vector<2x1x256xf32>
    %100 = vector.shape_cast %99 : vector<2x1x256xf32> to vector<2x256xf32>
    %101 = vector.shape_cast %95 : vector<2x256xf32> to vector<2x1x256xf32>
    tpu.vector_store %arg12[%c0_32, %c17, %c0_33], %101 {strides = array<i32>} : memref<2x18x256xf32, #tpu.memory_space<vmem>>, vector<2x1x256xf32>,
    %102 = vector.extract_strided_slice %94 {offsets = [0, 0, 0], sizes = [2, 1, 256], strides = [1, 1, 1]} : vector<2x31x256xf32> to vector<2x1x256xf32>
    %103 = vector.shape_cast %102 : vector<2x1x256xf32> to vector<2x256xf32>
    %c0_34 = arith.constant 0 : index
    %c1_35 = arith.constant 1 : index
    %c0_36 = arith.constant 0 : index
    %104 = vector.load %arg12[%c0_34, %c1_35, %c0_36] : memref<2x18x256xf32, #tpu.memory_space<vmem>>, vector<2x1x256xf32>
    %105 = vector.shape_cast %104 : vector<2x1x256xf32> to vector<2x256xf32>
    %106 = vector.shape_cast %103 : vector<2x256xf32> to vector<2x1x256xf32>
    tpu.vector_store %arg12[%c0_34, %c1_35, %c0_36], %106 {strides = array<i32>} : memref<2x18x256xf32, #tpu.memory_space<vmem>>, vector<2x1x256xf32>,
    %107 = vector.extract_strided_slice %94 {offsets = [0, 2, 0], sizes = [2, 1, 256], strides = [1, 1, 1]} : vector<2x31x256xf32> to vector<2x1x256xf32>
    %108 = vector.shape_cast %107 : vector<2x1x256xf32> to vector<2x256xf32>
    %c0_37 = arith.constant 0 : index
    %c2_38 = arith.constant 2 : index
    %c0_39 = arith.constant 0 : index
    %109 = vector.load %arg12[%c0_37, %c2_38, %c0_39] : memref<2x18x256xf32, #tpu.memory_space<vmem>>, vector<2x1x256xf32>
    %110 = vector.shape_cast %109 : vector<2x1x256xf32> to vector<2x256xf32>
    %111 = vector.shape_cast %108 : vector<2x256xf32> to vector<2x1x256xf32>
    tpu.vector_store %arg12[%c0_37, %c2_38, %c0_39], %111 {strides = array<i32>} : memref<2x18x256xf32, #tpu.memory_space<vmem>>, vector<2x1x256xf32>,
    %112 = vector.extract_strided_slice %94 {offsets = [0, 4, 0], sizes = [2, 1, 256], strides = [1, 1, 1]} : vector<2x31x256xf32> to vector<2x1x256xf32>
    %113 = vector.shape_cast %112 : vector<2x1x256xf32> to vector<2x256xf32>
    %c0_40 = arith.constant 0 : index
    %c3 = arith.constant 3 : index
    %c0_41 = arith.constant 0 : index
    %114 = vector.load %arg12[%c0_40, %c3, %c0_41] : memref<2x18x256xf32, #tpu.memory_space<vmem>>, vector<2x1x256xf32>
    %115 = vector.shape_cast %114 : vector<2x1x256xf32> to vector<2x256xf32>
    %116 = vector.shape_cast %113 : vector<2x256xf32> to vector<2x1x256xf32>
    tpu.vector_store %arg12[%c0_40, %c3, %c0_41], %116 {strides = array<i32>} : memref<2x18x256xf32, #tpu.memory_space<vmem>>, vector<2x1x256xf32>,
    %117 = vector.extract_strided_slice %94 {offsets = [0, 6, 0], sizes = [2, 1, 256], strides = [1, 1, 1]} : vector<2x31x256xf32> to vector<2x1x256xf32>
    %118 = vector.shape_cast %117 : vector<2x1x256xf32> to vector<2x256xf32>
    %c0_42 = arith.constant 0 : index
    %c4 = arith.constant 4 : index
    %c0_43 = arith.constant 0 : index
    %119 = vector.load %arg12[%c0_42, %c4, %c0_43] : memref<2x18x256xf32, #tpu.memory_space<vmem>>, vector<2x1x256xf32>
    %120 = vector.shape_cast %119 : vector<2x1x256xf32> to vector<2x256xf32>
    %121 = vector.shape_cast %118 : vector<2x256xf32> to vector<2x1x256xf32>
    tpu.vector_store %arg12[%c0_42, %c4, %c0_43], %121 {strides = array<i32>} : memref<2x18x256xf32, #tpu.memory_space<vmem>>, vector<2x1x256xf32>,
    %122 = vector.extract_strided_slice %94 {offsets = [0, 8, 0], sizes = [2, 1, 256], strides = [1, 1, 1]} : vector<2x31x256xf32> to vector<2x1x256xf32>
    %123 = vector.shape_cast %122 : vector<2x1x256xf32> to vector<2x256xf32>
    %c0_44 = arith.constant 0 : index
    %c5 = arith.constant 5 : index
    %c0_45 = arith.constant 0 : index
    %124 = vector.load %arg12[%c0_44, %c5, %c0_45] : memref<2x18x256xf32, #tpu.memory_space<vmem>>, vector<2x1x256xf32>
    %125 = vector.shape_cast %124 : vector<2x1x256xf32> to vector<2x256xf32>
    %126 = vector.shape_cast %123 : vector<2x256xf32> to vector<2x1x256xf32>
    tpu.vector_store %arg12[%c0_44, %c5, %c0_45], %126 {strides = array<i32>} : memref<2x18x256xf32, #tpu.memory_space<vmem>>, vector<2x1x256xf32>,
    %127 = vector.extract_strided_slice %94 {offsets = [0, 10, 0], sizes = [2, 1, 256], strides = [1, 1, 1]} : vector<2x31x256xf32> to vector<2x1x256xf32>
    %128 = vector.shape_cast %127 : vector<2x1x256xf32> to vector<2x256xf32>
    %c0_46 = arith.constant 0 : index
    %c6 = arith.constant 6 : index
    %c0_47 = arith.constant 0 : index
    %129 = vector.load %arg12[%c0_46, %c6, %c0_47] : memref<2x18x256xf32, #tpu.memory_space<vmem>>, vector<2x1x256xf32>
    %130 = vector.shape_cast %129 : vector<2x1x256xf32> to vector<2x256xf32>
    %131 = vector.shape_cast %128 : vector<2x256xf32> to vector<2x1x256xf32>
    tpu.vector_store %arg12[%c0_46, %c6, %c0_47], %131 {strides = array<i32>} : memref<2x18x256xf32, #tpu.memory_space<vmem>>, vector<2x1x256xf32>,
    %132 = vector.extract_strided_slice %94 {offsets = [0, 12, 0], sizes = [2, 1, 256], strides = [1, 1, 1]} : vector<2x31x256xf32> to vector<2x1x256xf32>
    %133 = vector.shape_cast %132 : vector<2x1x256xf32> to vector<2x256xf32>
    %c0_48 = arith.constant 0 : index
    %c7 = arith.constant 7 : index
    %c0_49 = arith.constant 0 : index
    %134 = vector.load %arg12[%c0_48, %c7, %c0_49] : memref<2x18x256xf32, #tpu.memory_space<vmem>>, vector<2x1x256xf32>
    %135 = vector.shape_cast %134 : vector<2x1x256xf32> to vector<2x256xf32>
    %136 = vector.shape_cast %133 : vector<2x256xf32> to vector<2x1x256xf32>
    tpu.vector_store %arg12[%c0_48, %c7, %c0_49], %136 {strides = array<i32>} : memref<2x18x256xf32, #tpu.memory_space<vmem>>, vector<2x1x256xf32>,
    %137 = vector.extract_strided_slice %94 {offsets = [0, 14, 0], sizes = [2, 1, 256], strides = [1, 1, 1]} : vector<2x31x256xf32> to vector<2x1x256xf32>
    %138 = vector.shape_cast %137 : vector<2x1x256xf32> to vector<2x256xf32>
    %c0_50 = arith.constant 0 : index
    %c8 = arith.constant 8 : index
    %c0_51 = arith.constant 0 : index
    %139 = vector.load %arg12[%c0_50, %c8, %c0_51] : memref<2x18x256xf32, #tpu.memory_space<vmem>>, vector<2x1x256xf32>
    %140 = vector.shape_cast %139 : vector<2x1x256xf32> to vector<2x256xf32>
    %141 = vector.shape_cast %138 : vector<2x256xf32> to vector<2x1x256xf32>
    tpu.vector_store %arg12[%c0_50, %c8, %c0_51], %141 {strides = array<i32>} : memref<2x18x256xf32, #tpu.memory_space<vmem>>, vector<2x1x256xf32>,
    %142 = vector.extract_strided_slice %94 {offsets = [0, 16, 0], sizes = [2, 1, 256], strides = [1, 1, 1]} : vector<2x31x256xf32> to vector<2x1x256xf32>
    %143 = vector.shape_cast %142 : vector<2x1x256xf32> to vector<2x256xf32>
    %c0_52 = arith.constant 0 : index
    %c9 = arith.constant 9 : index
    %c0_53 = arith.constant 0 : index
    %144 = vector.load %arg12[%c0_52, %c9, %c0_53] : memref<2x18x256xf32, #tpu.memory_space<vmem>>, vector<2x1x256xf32>
    %145 = vector.shape_cast %144 : vector<2x1x256xf32> to vector<2x256xf32>
    %146 = vector.shape_cast %143 : vector<2x256xf32> to vector<2x1x256xf32>
    tpu.vector_store %arg12[%c0_52, %c9, %c0_53], %146 {strides = array<i32>} : memref<2x18x256xf32, #tpu.memory_space<vmem>>, vector<2x1x256xf32>,
    %147 = vector.extract_strided_slice %94 {offsets = [0, 18, 0], sizes = [2, 1, 256], strides = [1, 1, 1]} : vector<2x31x256xf32> to vector<2x1x256xf32>
    %148 = vector.shape_cast %147 : vector<2x1x256xf32> to vector<2x256xf32>
    %c0_54 = arith.constant 0 : index
    %c10 = arith.constant 10 : index
    %c0_55 = arith.constant 0 : index
    %149 = vector.load %arg12[%c0_54, %c10, %c0_55] : memref<2x18x256xf32, #tpu.memory_space<vmem>>, vector<2x1x256xf32>
    %150 = vector.shape_cast %149 : vector<2x1x256xf32> to vector<2x256xf32>
    %151 = vector.shape_cast %148 : vector<2x256xf32> to vector<2x1x256xf32>
    tpu.vector_store %arg12[%c0_54, %c10, %c0_55], %151 {strides = array<i32>} : memref<2x18x256xf32, #tpu.memory_space<vmem>>, vector<2x1x256xf32>,
    %152 = vector.extract_strided_slice %94 {offsets = [0, 20, 0], sizes = [2, 1, 256], strides = [1, 1, 1]} : vector<2x31x256xf32> to vector<2x1x256xf32>
    %153 = vector.shape_cast %152 : vector<2x1x256xf32> to vector<2x256xf32>
    %c0_56 = arith.constant 0 : index
    %c11 = arith.constant 11 : index
    %c0_57 = arith.constant 0 : index
    %154 = vector.load %arg12[%c0_56, %c11, %c0_57] : memref<2x18x256xf32, #tpu.memory_space<vmem>>, vector<2x1x256xf32>
    %155 = vector.shape_cast %154 : vector<2x1x256xf32> to vector<2x256xf32>
    %156 = vector.shape_cast %153 : vector<2x256xf32> to vector<2x1x256xf32>
    tpu.vector_store %arg12[%c0_56, %c11, %c0_57], %156 {strides = array<i32>} : memref<2x18x256xf32, #tpu.memory_space<vmem>>, vector<2x1x256xf32>,
    %157 = vector.extract_strided_slice %94 {offsets = [0, 22, 0], sizes = [2, 1, 256], strides = [1, 1, 1]} : vector<2x31x256xf32> to vector<2x1x256xf32>
    %158 = vector.shape_cast %157 : vector<2x1x256xf32> to vector<2x256xf32>
    %c0_58 = arith.constant 0 : index
    %c12 = arith.constant 12 : index
    %c0_59 = arith.constant 0 : index
    %159 = vector.load %arg12[%c0_58, %c12, %c0_59] : memref<2x18x256xf32, #tpu.memory_space<vmem>>, vector<2x1x256xf32>
    %160 = vector.shape_cast %159 : vector<2x1x256xf32> to vector<2x256xf32>
    %161 = vector.shape_cast %158 : vector<2x256xf32> to vector<2x1x256xf32>
    tpu.vector_store %arg12[%c0_58, %c12, %c0_59], %161 {strides = array<i32>} : memref<2x18x256xf32, #tpu.memory_space<vmem>>, vector<2x1x256xf32>,
    %162 = vector.extract_strided_slice %94 {offsets = [0, 24, 0], sizes = [2, 1, 256], strides = [1, 1, 1]} : vector<2x31x256xf32> to vector<2x1x256xf32>
    %163 = vector.shape_cast %162 : vector<2x1x256xf32> to vector<2x256xf32>
    %c0_60 = arith.constant 0 : index
    %c13 = arith.constant 13 : index
    %c0_61 = arith.constant 0 : index
    %164 = vector.load %arg12[%c0_60, %c13, %c0_61] : memref<2x18x256xf32, #tpu.memory_space<vmem>>, vector<2x1x256xf32>
    %165 = vector.shape_cast %164 : vector<2x1x256xf32> to vector<2x256xf32>
    %166 = vector.shape_cast %163 : vector<2x256xf32> to vector<2x1x256xf32>
    tpu.vector_store %arg12[%c0_60, %c13, %c0_61], %166 {strides = array<i32>} : memref<2x18x256xf32, #tpu.memory_space<vmem>>, vector<2x1x256xf32>,
    %167 = vector.extract_strided_slice %94 {offsets = [0, 26, 0], sizes = [2, 1, 256], strides = [1, 1, 1]} : vector<2x31x256xf32> to vector<2x1x256xf32>
    %168 = vector.shape_cast %167 : vector<2x1x256xf32> to vector<2x256xf32>
    %c0_62 = arith.constant 0 : index
    %c14 = arith.constant 14 : index
    %c0_63 = arith.constant 0 : index
    %169 = vector.load %arg12[%c0_62, %c14, %c0_63] : memref<2x18x256xf32, #tpu.memory_space<vmem>>, vector<2x1x256xf32>
    %170 = vector.shape_cast %169 : vector<2x1x256xf32> to vector<2x256xf32>
    %171 = vector.shape_cast %168 : vector<2x256xf32> to vector<2x1x256xf32>
    tpu.vector_store %arg12[%c0_62, %c14, %c0_63], %171 {strides = array<i32>} : memref<2x18x256xf32, #tpu.memory_space<vmem>>, vector<2x1x256xf32>,
    %172 = vector.extract_strided_slice %94 {offsets = [0, 28, 0], sizes = [2, 1, 256], strides = [1, 1, 1]} : vector<2x31x256xf32> to vector<2x1x256xf32>
    %173 = vector.shape_cast %172 : vector<2x1x256xf32> to vector<2x256xf32>
    %c0_64 = arith.constant 0 : index
    %c15 = arith.constant 15 : index
    %c0_65 = arith.constant 0 : index
    %174 = vector.load %arg12[%c0_64, %c15, %c0_65] : memref<2x18x256xf32, #tpu.memory_space<vmem>>, vector<2x1x256xf32>
    %175 = vector.shape_cast %174 : vector<2x1x256xf32> to vector<2x256xf32>
    %176 = vector.shape_cast %173 : vector<2x256xf32> to vector<2x1x256xf32>
    tpu.vector_store %arg12[%c0_64, %c15, %c0_65], %176 {strides = array<i32>} : memref<2x18x256xf32, #tpu.memory_space<vmem>>, vector<2x1x256xf32>,
    %177 = vector.extract_strided_slice %94 {offsets = [0, 30, 0], sizes = [2, 1, 256], strides = [1, 1, 1]} : vector<2x31x256xf32> to vector<2x1x256xf32>
    %178 = vector.shape_cast %177 : vector<2x1x256xf32> to vector<2x256xf32>
    %c0_66 = arith.constant 0 : index
    %c16 = arith.constant 16 : index
    %c0_67 = arith.constant 0 : index
    %179 = vector.load %arg12[%c0_66, %c16, %c0_67] : memref<2x18x256xf32, #tpu.memory_space<vmem>>, vector<2x1x256xf32>
    %180 = vector.shape_cast %179 : vector<2x1x256xf32> to vector<2x256xf32>
    %181 = vector.shape_cast %178 : vector<2x256xf32> to vector<2x1x256xf32>
    tpu.vector_store %arg12[%c0_66, %c16, %c0_67], %181 {strides = array<i32>} : memref<2x18x256xf32, #tpu.memory_space<vmem>>, vector<2x1x256xf32>,
    %c0_68 = arith.constant 0 : index
    %c0_69 = arith.constant 0 : index
    %c0_70 = arith.constant 0 : index
    %182 = vector.load %arg12[%c0_68, %c0_69, %c0_70] : memref<2x18x256xf32, #tpu.memory_space<vmem>>, vector<2x16x256xf32>
    %183 = vector.shape_cast %182 : vector<2x16x256xf32> to vector<32x256xf32>
    %184 = arith.truncf %183 : vector<32x256xf32> to vector<32x256xbf16>
    %c0_71 = arith.constant 0 : index
    %c0_72 = arith.constant 0 : index
    %c0_73 = arith.constant 0 : index
    %185 = vector.load %arg4[%c0_71, %c0_72, %c0_73] : memref<3x256x256xbf16, #tpu.memory_space<vmem>>, vector<1x256x256xbf16>
    %186 = vector.shape_cast %185 : vector<1x256x256xbf16> to vector<256x256xbf16>
    %cst_74 = arith.constant dense<0.000000e+00> : vector<32x256xf32>
    %187 = tpu.matmul %184, %186, %cst_74 {dimension_numbers = #tpu.dot_dimension_numbers<[1], [0], [0], [1], [0, 0, 1, 1], [], []>} : vector<32x256xbf16>, vector<256x256xbf16>, vector<32x256xf32> -> vector<32x256xf32>
    %c0_75 = arith.constant 0 : index
    %c1_76 = arith.constant 1 : index
    %c0_77 = arith.constant 0 : index
    %188 = vector.load %arg12[%c0_75, %c1_76, %c0_77] : memref<2x18x256xf32, #tpu.memory_space<vmem>>, vector<2x16x256xf32>
    %189 = vector.shape_cast %188 : vector<2x16x256xf32> to vector<32x256xf32>
    %190 = arith.truncf %189 : vector<32x256xf32> to vector<32x256xbf16>
    %c1_78 = arith.constant 1 : index
    %c0_79 = arith.constant 0 : index
    %c0_80 = arith.constant 0 : index
    %191 = vector.load %arg4[%c1_78, %c0_79, %c0_80] : memref<3x256x256xbf16, #tpu.memory_space<vmem>>, vector<1x256x256xbf16>
    %192 = vector.shape_cast %191 : vector<1x256x256xbf16> to vector<256x256xbf16>
    %cst_81 = arith.constant dense<0.000000e+00> : vector<32x256xf32>
    %193 = tpu.matmul %190, %192, %cst_81 {dimension_numbers = #tpu.dot_dimension_numbers<[1], [0], [0], [1], [0, 0, 1, 1], [], []>} : vector<32x256xbf16>, vector<256x256xbf16>, vector<32x256xf32> -> vector<32x256xf32>
    %194 = arith.addf %187, %193 : vector<32x256xf32>
    %c0_82 = arith.constant 0 : index
    %c2_83 = arith.constant 2 : index
    %c0_84 = arith.constant 0 : index
    %195 = vector.load %arg12[%c0_82, %c2_83, %c0_84] : memref<2x18x256xf32, #tpu.memory_space<vmem>>, vector<2x16x256xf32>
    %196 = vector.shape_cast %195 : vector<2x16x256xf32> to vector<32x256xf32>
    %197 = arith.truncf %196 : vector<32x256xf32> to vector<32x256xbf16>
    %c2_85 = arith.constant 2 : index
    %c0_86 = arith.constant 0 : index
    %c0_87 = arith.constant 0 : index
    %198 = vector.load %arg4[%c2_85, %c0_86, %c0_87] : memref<3x256x256xbf16, #tpu.memory_space<vmem>>, vector<1x256x256xbf16>
    %199 = vector.shape_cast %198 : vector<1x256x256xbf16> to vector<256x256xbf16>
    %cst_88 = arith.constant dense<0.000000e+00> : vector<32x256xf32>
    %200 = tpu.matmul %197, %199, %cst_88 {dimension_numbers = #tpu.dot_dimension_numbers<[1], [0], [0], [1], [0, 0, 1, 1], [], []>} : vector<32x256xbf16>, vector<256x256xbf16>, vector<32x256xf32> -> vector<32x256xf32>
    %201 = arith.addf %194, %200 : vector<32x256xf32>
    %cst_89 = arith.constant dense<0.000000e+00> : vector<256xf32>
    %202 = vector.multi_reduction <add>, %201, %cst_89 [0] : vector<32x256xf32> to vector<256xf32>
    %203 = vector.shape_cast %202 : vector<256xf32> to vector<1x256xf32>
    %204 = arith.mulf %201, %201 : vector<32x256xf32>
    %cst_90 = arith.constant dense<0.000000e+00> : vector<256xf32>
    %205 = vector.multi_reduction <add>, %204, %cst_90 [0] : vector<32x256xf32> to vector<256xf32>
    %206 = vector.shape_cast %205 : vector<256xf32> to vector<1x256xf32>
    %207 = vector.extract_strided_slice %203 {offsets = [0, 0], sizes = [1, 128], strides = [1, 1]} : vector<1x256xf32> to vector<1x128xf32>
    %208 = vector.extract_strided_slice %203 {offsets = [0, 128], sizes = [1, 128], strides = [1, 1]} : vector<1x256xf32> to vector<1x128xf32>
    %209 = arith.addf %207, %208 : vector<1x128xf32>
    %210 = vector.extract_strided_slice %209 {offsets = [0, 0], sizes = [1, 64], strides = [1, 1]} : vector<1x128xf32> to vector<1x64xf32>
    %211 = vector.extract_strided_slice %209 {offsets = [0, 64], sizes = [1, 64], strides = [1, 1]} : vector<1x128xf32> to vector<1x64xf32>
    %212 = arith.addf %210, %211 : vector<1x64xf32>
    %213 = vector.extract_strided_slice %212 {offsets = [0, 0], sizes = [1, 32], strides = [1, 1]} : vector<1x64xf32> to vector<1x32xf32>
    %214 = vector.extract_strided_slice %212 {offsets = [0, 32], sizes = [1, 32], strides = [1, 1]} : vector<1x64xf32> to vector<1x32xf32>
    %215 = arith.addf %213, %214 : vector<1x32xf32>
    %216 = vector.extract_strided_slice %215 {offsets = [0, 0], sizes = [1, 16], strides = [1, 1]} : vector<1x32xf32> to vector<1x16xf32>
    %217 = vector.extract_strided_slice %215 {offsets = [0, 16], sizes = [1, 16], strides = [1, 1]} : vector<1x32xf32> to vector<1x16xf32>
    %218 = arith.addf %216, %217 : vector<1x16xf32>
    %cst_91 = arith.constant 0.001953125 : f32
    %219 = vector.broadcast %cst_91 : f32 to vector<1x16xf32>
    %220 = arith.mulf %218, %219 : vector<1x16xf32>
    %221 = vector.extract_strided_slice %206 {offsets = [0, 0], sizes = [1, 128], strides = [1, 1]} : vector<1x256xf32> to vector<1x128xf32>
    %222 = vector.extract_strided_slice %206 {offsets = [0, 128], sizes = [1, 128], strides = [1, 1]} : vector<1x256xf32> to vector<1x128xf32>
    %223 = arith.addf %221, %222 : vector<1x128xf32>
    %224 = vector.extract_strided_slice %223 {offsets = [0, 0], sizes = [1, 64], strides = [1, 1]} : vector<1x128xf32> to vector<1x64xf32>
    %225 = vector.extract_strided_slice %223 {offsets = [0, 64], sizes = [1, 64], strides = [1, 1]} : vector<1x128xf32> to vector<1x64xf32>
    %226 = arith.addf %224, %225 : vector<1x64xf32>
    %227 = vector.extract_strided_slice %226 {offsets = [0, 0], sizes = [1, 32], strides = [1, 1]} : vector<1x64xf32> to vector<1x32xf32>
    %228 = vector.extract_strided_slice %226 {offsets = [0, 32], sizes = [1, 32], strides = [1, 1]} : vector<1x64xf32> to vector<1x32xf32>
    %229 = arith.addf %227, %228 : vector<1x32xf32>
    %230 = vector.extract_strided_slice %229 {offsets = [0, 0], sizes = [1, 16], strides = [1, 1]} : vector<1x32xf32> to vector<1x16xf32>
    %231 = vector.extract_strided_slice %229 {offsets = [0, 16], sizes = [1, 16], strides = [1, 1]} : vector<1x32xf32> to vector<1x16xf32>
    %232 = arith.addf %230, %231 : vector<1x16xf32>
    %cst_92 = arith.constant 0.001953125 : f32
    %233 = vector.broadcast %cst_92 : f32 to vector<1x16xf32>
    %234 = arith.mulf %232, %233 : vector<1x16xf32>
    %235 = arith.mulf %220, %220 : vector<1x16xf32>
    %236 = arith.subf %234, %235 : vector<1x16xf32>
    %cst_93 = arith.constant 0.000000e+00 : f32
    %237 = vector.broadcast %cst_93 : f32 to vector<1x16xf32>
    %238 = arith.maximumf %236, %237 : vector<1x16xf32>
    %c0_94 = arith.constant 0 : index
    %c0_95 = arith.constant 0 : index
    %239 = vector.load %arg5[%c0_94, %c0_95] : memref<1x16xf32, #tpu.memory_space<vmem>>, vector<1x16xf32>
    %cst_96 = arith.constant 9.99999974E-6 : f32
    %240 = vector.broadcast %cst_96 : f32 to vector<1x16xf32>
    %241 = arith.addf %238, %240 : vector<1x16xf32>
    %242 = math.rsqrt %241 : vector<1x16xf32>
    %243 = arith.mulf %239, %242 : vector<1x16xf32>
    %c0_97 = arith.constant 0 : index
    %c0_98 = arith.constant 0 : index
    %244 = vector.load %arg6[%c0_97, %c0_98] : memref<1x16xf32, #tpu.memory_space<vmem>>, vector<1x16xf32>
    %245 = arith.mulf %220, %243 : vector<1x16xf32>
    %246 = arith.subf %244, %245 : vector<1x16xf32>
    %247 = tpu.concatenate %243, %243 in 1 : vector<1x16xf32>, vector<1x16xf32> -> vector<1x32xf32>
    %248 = tpu.concatenate %247, %247 in 1 : vector<1x32xf32>, vector<1x32xf32> -> vector<1x64xf32>
    %249 = tpu.concatenate %248, %248 in 1 : vector<1x64xf32>, vector<1x64xf32> -> vector<1x128xf32>
    %250 = tpu.concatenate %249, %249 in 1 : vector<1x128xf32>, vector<1x128xf32> -> vector<1x256xf32>
    %251 = vector.broadcast %250 : vector<1x256xf32> to vector<32x256xf32>
    %252 = arith.mulf %201, %251 : vector<32x256xf32>
    %253 = tpu.concatenate %246, %246 in 1 : vector<1x16xf32>, vector<1x16xf32> -> vector<1x32xf32>
    %254 = tpu.concatenate %253, %253 in 1 : vector<1x32xf32>, vector<1x32xf32> -> vector<1x64xf32>
    %255 = tpu.concatenate %254, %254 in 1 : vector<1x64xf32>, vector<1x64xf32> -> vector<1x128xf32>
    %256 = tpu.concatenate %255, %255 in 1 : vector<1x128xf32>, vector<1x128xf32> -> vector<1x256xf32>
    %257 = vector.broadcast %256 : vector<1x256xf32> to vector<32x256xf32>
    %258 = arith.addf %252, %257 : vector<32x256xf32>
    %cst_99 = arith.constant 0.000000e+00 : f32
    %259 = vector.broadcast %cst_99 : f32 to vector<32x256xf32>
    %260 = arith.maximumf %258, %259 : vector<32x256xf32>
    %261 = vector.extract_strided_slice %260 {offsets = [0, 16], sizes = [32, 240], strides = [1, 1]} : vector<32x256xf32> to vector<32x240xf32>
    %262 = vector.extract_strided_slice %260 {offsets = [0, 0], sizes = [32, 16], strides = [1, 1]} : vector<32x256xf32> to vector<32x16xf32>
    %263 = tpu.concatenate %261, %262 in 1 : vector<32x240xf32>, vector<32x16xf32> -> vector<32x256xf32>
    %264 = arith.maximumf %260, %263 : vector<32x256xf32>
    %265 = vector.shape_cast %264 : vector<32x256xf32> to vector<2x16x256xf32>
    %266 = vector.extract_strided_slice %265 {offsets = [0, 0, 0], sizes = [2, 15, 256], strides = [1, 1, 1]} : vector<2x16x256xf32> to vector<2x15x256xf32>
    %267 = vector.extract_strided_slice %265 {offsets = [0, 1, 0], sizes = [2, 15, 256], strides = [1, 1, 1]} : vector<2x16x256xf32> to vector<2x15x256xf32>
    %268 = arith.maximumf %266, %267 : vector<2x15x256xf32>
    %269 = vector.extract_strided_slice %268 {offsets = [0, 0, 0], sizes = [2, 1, 256], strides = [1, 1, 1]} : vector<2x15x256xf32> to vector<2x1x256xf32>
    %270 = vector.shape_cast %269 : vector<2x1x256xf32> to vector<2x256xf32>
    %c0_100 = arith.constant 0 : index
    %c0_101 = arith.constant 0 : index
    %271 = vector.load %arg13[%c0_100, %c0_101] : memref<2x2048xf32, #tpu.memory_space<vmem>>, vector<2x256xf32>
    tpu.vector_store %arg13[%c0_100, %c0_101], %270 {strides = array<i32>} : memref<2x2048xf32, #tpu.memory_space<vmem>>, vector<2x256xf32>,
    %272 = vector.extract_strided_slice %268 {offsets = [0, 2, 0], sizes = [2, 1, 256], strides = [1, 1, 1]} : vector<2x15x256xf32> to vector<2x1x256xf32>
    %273 = vector.shape_cast %272 : vector<2x1x256xf32> to vector<2x256xf32>
    %c0_102 = arith.constant 0 : index
    %c256 = arith.constant 256 : index
    %274 = vector.load %arg13[%c0_102, %c256] : memref<2x2048xf32, #tpu.memory_space<vmem>>, vector<2x256xf32>
    tpu.vector_store %arg13[%c0_102, %c256], %273 {strides = array<i32>} : memref<2x2048xf32, #tpu.memory_space<vmem>>, vector<2x256xf32>,
    %275 = vector.extract_strided_slice %268 {offsets = [0, 4, 0], sizes = [2, 1, 256], strides = [1, 1, 1]} : vector<2x15x256xf32> to vector<2x1x256xf32>
    %276 = vector.shape_cast %275 : vector<2x1x256xf32> to vector<2x256xf32>
    %c0_103 = arith.constant 0 : index
    %c512 = arith.constant 512 : index
    %277 = vector.load %arg13[%c0_103, %c512] : memref<2x2048xf32, #tpu.memory_space<vmem>>, vector<2x256xf32>
    tpu.vector_store %arg13[%c0_103, %c512], %276 {strides = array<i32>} : memref<2x2048xf32, #tpu.memory_space<vmem>>, vector<2x256xf32>,
    %278 = vector.extract_strided_slice %268 {offsets = [0, 6, 0], sizes = [2, 1, 256], strides = [1, 1, 1]} : vector<2x15x256xf32> to vector<2x1x256xf32>
    %279 = vector.shape_cast %278 : vector<2x1x256xf32> to vector<2x256xf32>
    %c0_104 = arith.constant 0 : index
    %c768 = arith.constant 768 : index
    %280 = vector.load %arg13[%c0_104, %c768] : memref<2x2048xf32, #tpu.memory_space<vmem>>, vector<2x256xf32>
    tpu.vector_store %arg13[%c0_104, %c768], %279 {strides = array<i32>} : memref<2x2048xf32, #tpu.memory_space<vmem>>, vector<2x256xf32>,
    %281 = vector.extract_strided_slice %268 {offsets = [0, 8, 0], sizes = [2, 1, 256], strides = [1, 1, 1]} : vector<2x15x256xf32> to vector<2x1x256xf32>
    %282 = vector.shape_cast %281 : vector<2x1x256xf32> to vector<2x256xf32>
    %c0_105 = arith.constant 0 : index
    %c1024 = arith.constant 1024 : index
    %283 = vector.load %arg13[%c0_105, %c1024] : memref<2x2048xf32, #tpu.memory_space<vmem>>, vector<2x256xf32>
    tpu.vector_store %arg13[%c0_105, %c1024], %282 {strides = array<i32>} : memref<2x2048xf32, #tpu.memory_space<vmem>>, vector<2x256xf32>,
    %284 = vector.extract_strided_slice %268 {offsets = [0, 10, 0], sizes = [2, 1, 256], strides = [1, 1, 1]} : vector<2x15x256xf32> to vector<2x1x256xf32>
    %285 = vector.shape_cast %284 : vector<2x1x256xf32> to vector<2x256xf32>
    %c0_106 = arith.constant 0 : index
    %c1280 = arith.constant 1280 : index
    %286 = vector.load %arg13[%c0_106, %c1280] : memref<2x2048xf32, #tpu.memory_space<vmem>>, vector<2x256xf32>
    tpu.vector_store %arg13[%c0_106, %c1280], %285 {strides = array<i32>} : memref<2x2048xf32, #tpu.memory_space<vmem>>, vector<2x256xf32>,
    %287 = vector.extract_strided_slice %268 {offsets = [0, 12, 0], sizes = [2, 1, 256], strides = [1, 1, 1]} : vector<2x15x256xf32> to vector<2x1x256xf32>
    %288 = vector.shape_cast %287 : vector<2x1x256xf32> to vector<2x256xf32>
    %c0_107 = arith.constant 0 : index
    %c1536 = arith.constant 1536 : index
    %289 = vector.load %arg13[%c0_107, %c1536] : memref<2x2048xf32, #tpu.memory_space<vmem>>, vector<2x256xf32>
    tpu.vector_store %arg13[%c0_107, %c1536], %288 {strides = array<i32>} : memref<2x2048xf32, #tpu.memory_space<vmem>>, vector<2x256xf32>,
    %290 = vector.extract_strided_slice %268 {offsets = [0, 14, 0], sizes = [2, 1, 256], strides = [1, 1, 1]} : vector<2x15x256xf32> to vector<2x1x256xf32>
    %291 = vector.shape_cast %290 : vector<2x1x256xf32> to vector<2x256xf32>
    %c0_108 = arith.constant 0 : index
    %c1792 = arith.constant 1792 : index
    %292 = vector.load %arg13[%c0_108, %c1792] : memref<2x2048xf32, #tpu.memory_space<vmem>>, vector<2x256xf32>
    tpu.vector_store %arg13[%c0_108, %c1792], %291 {strides = array<i32>} : memref<2x2048xf32, #tpu.memory_space<vmem>>, vector<2x256xf32>,
    %c0_109 = arith.constant 0 : index
    %c0_110 = arith.constant 0 : index
    %293 = vector.load %arg13[%c0_109, %c0_110] : memref<2x2048xf32, #tpu.memory_space<vmem>>, vector<2x2048xf32>
    %294 = arith.truncf %293 : vector<2x2048xf32> to vector<2x2048xbf16>
    %c0_111 = arith.constant 0 : index
    %c0_112 = arith.constant 0 : index
    %295 = vector.load %arg7[%c0_111, %c0_112] : memref<2048x128xbf16, #tpu.memory_space<vmem>>, vector<2048x128xbf16>
    %cst_113 = arith.constant dense<0.000000e+00> : vector<2x128xf32>
    %296 = tpu.matmul %294, %295, %cst_113 {dimension_numbers = #tpu.dot_dimension_numbers<[1], [0], [0], [1], [0, 0, 1, 1], [], []>} : vector<2x2048xbf16>, vector<2048x128xbf16>, vector<2x128xf32> -> vector<2x128xf32>
    %c0_114 = arith.constant 0 : index
    %c0_115 = arith.constant 0 : index
    %297 = vector.load %arg8[%c0_114, %c0_115] : memref<1x128xf32, #tpu.memory_space<vmem>>, vector<1x128xf32>
    %298 = vector.broadcast %297 : vector<1x128xf32> to vector<2x128xf32>
    %299 = arith.addf %296, %298 : vector<2x128xf32>
    %cst_116 = arith.constant 0.000000e+00 : f32
    %300 = vector.broadcast %cst_116 : f32 to vector<2x128xf32>
    %301 = arith.maximumf %299, %300 : vector<2x128xf32>
    %302 = arith.truncf %301 : vector<2x128xf32> to vector<2x128xbf16>
    %c0_117 = arith.constant 0 : index
    %c0_118 = arith.constant 0 : index
    %303 = vector.load %arg9[%c0_117, %c0_118] : memref<128x128xbf16, #tpu.memory_space<vmem>>, vector<128x128xbf16>
    %cst_119 = arith.constant dense<0.000000e+00> : vector<2x128xf32>
    %304 = tpu.matmul %302, %303, %cst_119 {dimension_numbers = #tpu.dot_dimension_numbers<[1], [0], [0], [1], [0, 0, 1, 1], [], []>} : vector<2x128xbf16>, vector<128x128xbf16>, vector<2x128xf32> -> vector<2x128xf32>
    %c0_120 = arith.constant 0 : index
    %c0_121 = arith.constant 0 : index
    %305 = vector.load %arg10[%c0_120, %c0_121] : memref<1x128xf32, #tpu.memory_space<vmem>>, vector<1x128xf32>
    %306 = vector.broadcast %305 : vector<1x128xf32> to vector<2x128xf32>
    %307 = arith.addf %304, %306 : vector<2x128xf32>
    %c0_122 = arith.constant 0 : index
    %c0_123 = arith.constant 0 : index
    %308 = vector.load %arg11[%c0_122, %c0_123] : memref<2x128xf32, #tpu.memory_space<vmem>>, vector<2x128xf32>
    tpu.vector_store %arg11[%c0_122, %c0_123], %307 {strides = array<i32>} : memref<2x128xf32, #tpu.memory_space<vmem>>, vector<2x128xf32>,
    return
  }
}

</mosaic_0001>

<bundles_post_ra>
// kernel: convnet_forward.1
= control target key start
LH: loop header
LB: loop body
LE: loop exit
PB: predicated region body
PF: predicated region fallthrough
CT: control target
= control target key end

     0   :  { %16 = vsyncpa [#allocation5], 0  ;;  %s6778_s0 = inlined_call_operand.vmem [shape: f32[2,34,128], index: 0, kind: input, shape index: {}]   ;;  %s6779_s1 = inlined_call_operand.vmem [shape: bf16[3,128,256], index: 1, kind: input, shape index: {}]   ;;  %s6780_s2 = inlined_call_operand.vmem [shape: f32[1,8], index: 2, kind: input, shape index: {}]   ;;  %s6781_s3 = inlined_call_operand.vmem [shape: f32[1,8], index: 3, kind: input, shape index: {}]   ;;  %s6782_s4 = inlined_call_operand.hbm [shape: bf16[3,256,256], index: 4, kind: input, shape index: {}]   ;;  %s6783_s5 = inlined_call_operand.vmem [shape: f32[1,16], index: 5, kind: input, shape index: {}]   ;;  %s6784_s6 = inlined_call_operand.vmem [shape: f32[1,16], index: 6, kind: input, shape index: {}]   ;;  %s6785_s7 = inlined_call_operand.vmem [shape: bf16[2048,128], index: 7, kind: input, shape index: {}]   ;;  %s6786_s8 = inlined_call_operand.vmem [shape: f32[1,128], index: 8, kind: input, shape index: {}]   ;;  %s6787_s9 = inlined_call_operand.hbm [shape: bf16[128,128], index: 9, kind: input, shape index: {}]   ;;  %s6788_s10 = inlined_call_operand.vmem [shape: f32[1,128], index: 10, kind: input, shape index: {}]   ;;  %s6789_s11 = inlined_call_operand.hbm [shape: f32[2,128], index: 11, kind: output, shape index: {}]  }
   0x1   :  { %17 = vsyncpa [#allocation8], 0 }
   0x2   :  { %18 = vsyncpa [#allocation6], 0  ;;  %s5324_s17 = smov [#allocation4]   ;;  %s5252_s21 = scalar_lea.hbm %s6782_s4, 12288 }
   0x3   :  { %s32_s18 = sshll.u32 %s5324_s17, 4  ;;  %p5253_p0 = scmp.ne.s32.totalorder %s6782_s4, %s5252_s21  ;;  %s33_s18 = int_to_ptr.vmem [resolvable:$true] %s32_s18 }
   0x4   :  { %p5256_p1 = scmp.lt.u32.totalorder %s5252_s21, %s6782_s4 }
   0x6   :  { %p5258_p2 = pnand %p5256_p1, %p5253_p0 }
   0x8   :  { %5261 = shalt.err (!%p5258_p2)
}
   0x9   :  { %s5262_s26 = scalar_lea.vmem %s33_s18, 12288  ;;  %p5267_p4 = scmp.lt.s32.totalorder %s33_s18, %s33_s18 }
   0xa   :  { %p5263_p3 = scmp.ne.s32.totalorder %s33_s18, %s5262_s26  ;;  %p5268_p5 = scmp.lt.s32.totalorder %s5262_s26, %s5262_s26 }
   0xc   :  { %p5269_p6 = por %p5268_p5, %p5267_p4 }
   0xe   :  { %p5270_p7 = pnand %p5269_p6, %p5263_p3 }
  0x10   :  { %5273 = shalt.err (!%p5270_p7)
}
  0x11   :  { %s5325_s27 = smov 128   ;;  %s5326_s28 = smov 8  }
  0x12   :  { %38 = dma.hbm_to_vmem [thread:$0]  %s6782_s4, 12288, %s33_s18, [#allocation5], %s5325_s27, %s5325_s27, %s5326_s28  }
  0x13   :  { %s5327_s12 = smov [#allocation7]   ;;  %s5274_s16 = scalar_lea.hbm %s6787_s9, 1024 }
  0x14   :  { %s52_s13 = sshll.u32 %s5327_s12, 4  ;;  %p5275_p8 = scmp.ne.s32.totalorder %s6787_s9, %s5274_s16  ;;  %s53_s13 = int_to_ptr.vmem [resolvable:$true] %s52_s13 }
  0x15   :  { %p5278_p9 = scmp.lt.u32.totalorder %s5274_s16, %s6787_s9 }
  0x17   :  { %p5280_p10 = pnand %p5278_p9, %p5275_p8 }
  0x19   :  { %5283 = shalt.err (!%p5280_p10)
}
  0x1a   :  { %s5284_s22 = scalar_lea.vmem %s53_s13, 1024  ;;  %p5289_p12 = scmp.lt.s32.totalorder %s53_s13, %s53_s13 }
  0x1b   :  { %p5285_p11 = scmp.ne.s32.totalorder %s53_s13, %s5284_s22  ;;  %p5290_p13 = scmp.lt.s32.totalorder %s5284_s22, %s5284_s22 }
  0x1d   :  { %p5291_p0 = por %p5290_p13, %p5289_p12 }
  0x1f   :  { %p5292_p1 = pnand %p5291_p0, %p5285_p11 }
  0x21   :  { %5295 = shalt.err (!%p5292_p1)
}
  0x22   :  { %s5328_s4 = smov 64   ;;  %s5329_s18 = smov 4  }
  0x23   :  { %58 = dma.hbm_to_vmem [thread:$0]  %s6787_s9, 1024, %s53_s13, [#allocation8], %s5328_s4, %s5328_s4, %s5329_s18  }
  0x24   :  { %5318 = dma.done.wait [#allocation5], 12288  }
  0x25   :  { %5319 = vsyncadd [#allocation5], 4294955008 }
  0x26   :  { %5320 = dma.done.wait [#allocation8], 1024  }
  0x27   :  { %5321 = vsyncadd [#allocation8], 4294966272  ;;  %v5330_v0 = vmov 0   ;;  %v4892_v1 = vld [vmem:[%s6779_s1 + $0x84] ss:$8 sps:$4 sm:$0xff]   ;;  %v98_v24 = vld [vmem:[%s6778_s0 + $0x11] sm:$0xff] }
  0x28   :  { %237 = vmatprep.mubr.bf16.mxu0 %v5330_v0  ;;  %v4894_v2 = vld [vmem:[%s6779_s1 + $0x80] ss:$8 sps:$4 sm:$0xff]   ;;  %205 = vmatprep.subr.bf16.mxu0 %v4892_v1  ;;  %v4895_v3 = vld [vmem:[%s6779_s1 + $0x94] ss:$8 sps:$4 sm:$0xff]   ;;  %v4897_v4 = vld [vmem:[%s6779_s1 + $0x90] ss:$8 sps:$4 sm:$0xff]  }
  0x29   :  { %206 = vmatpush1.bf16.msra.mxu0 %v4894_v2  ;;  %v4898_v5 = vld [vmem:[%s6779_s1 + $0xa4] ss:$8 sps:$4 sm:$0xff]   ;;  %v4900_v6 = vld [vmem:[%s6779_s1 + $0xa0] ss:$8 sps:$4 sm:$0xff]   ;;  %v4901_v7 = vld [vmem:[%s6779_s1 + $0xb4] ss:$8 sps:$4 sm:$0xff]  }
  0x2a   :  { %207 = vmatprep.subr.bf16.mxu0 %v4895_v3  ;;  %v4903_v8 = vld [vmem:[%s6779_s1 + $0xb0] ss:$8 sps:$4 sm:$0xff]   ;;  %v4904_v9 = vld [vmem:[%s6779_s1 + $0xc4] ss:$8 sps:$4 sm:$0xff]   ;;  %v4906_v10 = vld [vmem:[%s6779_s1 + $0xc0] ss:$8 sps:$4 sm:$0xff]  }
  0x2b   :  { %v4907_v11 = vld [vmem:[%s6779_s1 + $0xd4] ss:$8 sps:$4 sm:$0xff]   ;;  %v4909_v12 = vld [vmem:[%s6779_s1 + $0xd0] ss:$8 sps:$4 sm:$0xff]   ;;  %v4910_v13 = vld [vmem:[%s6779_s1 + $0xe4] ss:$8 sps:$4 sm:$0xff]  }
  0x2c   :  { %v4912_v14 = vld [vmem:[%s6779_s1 + $0xe0] ss:$8 sps:$4 sm:$0xff]   ;;  %v4913_v15 = vld [vmem:[%s6779_s1 + $0xf4] ss:$8 sps:$4 sm:$0xff]   ;;  %v4915_v16 = vld [vmem:[%s6779_s1 + $0xf0] ss:$8 sps:$4 sm:$0xff]  }
  0x2d   :  { %208 = vmatpush1.bf16.msra.mxu0 %v4897_v4  ;;  %v96_v17 = vld [vmem:[%s6778_s0 + $0x1] sm:$0xff]  ;;  %v97_v18 = vld [vmem:[%s6778_s0 + $0x9] sm:$0xff]  ;;  %v4921_v22 = vld [vmem:[%s6779_s1 + $0x14] ss:$8 sps:$4 sm:$0xff]   ;;  %s5332_s16 = smov 112   ;;  %s5333_s17 = smov 120  }
  0x2e   :  { %209 = vmatprep.subr.bf16.mxu0 %v4898_v5  ;;  %v4918_v19 = vld [vmem:[%s6779_s1 + $0x4] ss:$8 sps:$4 sm:$0xff]   ;;  %v104_v20 = vpack.c.bf16 %v97_v18, %v96_v17  ;;  %v4916_v21 = vld [vmem:[%s6779_s1] ss:$8 sps:$4 sm:$0xff]   ;;  %v4919_v23 = vld [vmem:[%s6779_s1 + $0x10] ss:$8 sps:$4 sm:$0xff]  }
  0x2f   :  { %v99_v25 = vld [vmem:[%s6778_s0 + $0x19] sm:$0xff]  ;;  %v4924_v26 = vld [vmem:[%s6779_s1 + $0x24] ss:$8 sps:$4 sm:$0xff]   ;;  %v101_v32 = vld [vmem:[%s6778_s0 + $0x31] sm:$0xff]  ;;  %vm759_vm0 = vcmask 64512   ;;  %vm765_vm1 = vcmask 130048  }
  0x30   :  { %v105_v27 = vpack.c.bf16 %v99_v25, %v98_v24  ;;  %v4922_v28 = vld [vmem:[%s6779_s1 + $0x20] ss:$8 sps:$4 sm:$0xff]   ;;  %v4927_v29 = vld [vmem:[%s6779_s1 + $0x34] ss:$8 sps:$4 sm:$0xff]   ;;  %v4925_v30 = vld [vmem:[%s6779_s1 + $0x30] ss:$8 sps:$4 sm:$0xff]  }
  0x31   :  { %210 = vmatpush1.bf16.msra.mxu0 %v4900_v6  ;;  %v100_v31 = vld [vmem:[%s6778_s0 + $0x29] sm:$0xff]  ;;  %v4933_v36 = vld [vmem:[%s6779_s1 + $0x54] ss:$8 sps:$4 sm:$0xff]   ;;  %v103_v39 = vld [vmem:[%s6778_s0 + $0x41] sm:$0xff]  ;;  %vm771_vm2 = vcmask 261120   ;;  %vm777_vm3 = vcmask 523264  }
  0x32   :  { %211 = vmatprep.subr.bf16.mxu0 %v4901_v7  ;;  %v4930_v33 = vld [vmem:[%s6779_s1 + $0x44] ss:$8 sps:$4 sm:$0xff]   ;;  %v4928_v34 = vld [vmem:[%s6779_s1 + $0x40] ss:$8 sps:$4 sm:$0xff]   ;;  %v106_v35 = vpack.c.bf16 %v101_v32, %v100_v31  ;;  %v4931_v37 = vld [vmem:[%s6779_s1 + $0x50] ss:$8 sps:$4 sm:$0xff]  }
  0x33   :  { %v102_v38 = vld [vmem:[%s6778_s0 + $0x39] sm:$0xff]  ;;  %v4936_v40 = vld [vmem:[%s6779_s1 + $0x64] ss:$8 sps:$4 sm:$0xff]   ;;  %v70_v52 = vld [vmem:[%s6778_s0 + $0x10] sm:$0xff]  ;;  %vm907_vm5 = vcmask 982016   ;;  %vm980_vm6 = vcmask 1046528  }
  0x34   :  { %v4934_v41 = vld [vmem:[%s6779_s1 + $0x60] ss:$8 sps:$4 sm:$0xff]   ;;  %v107_v42 = vpack.c.bf16 %v103_v39, %v102_v38  ;;  %v4939_v43 = vld [vmem:[%s6779_s1 + $0x74] ss:$8 sps:$4 sm:$0xff]   ;;  %v4937_v44 = vld [vmem:[%s6779_s1 + $0x70] ss:$8 sps:$4 sm:$0xff]  }
  0x35   :  { %212 = vmatpush1.bf16.msra.mxu0 %v4903_v8  ;;  %v68_v45 = vld [vmem:[%s6778_s0] sm:$0xff]  ;;  %v69_v46 = vld [vmem:[%s6778_s0 + $0x8] sm:$0xff]  ;;  %v4945_v50 = vld [vmem:[%s6779_s1 + $0x114] ss:$8 sps:$4 sm:$0xff]   ;;  %vm2027_vm7 = vcmask 1045504   ;;  %vm2496_vm8 = vcmask 916480  }
  0x36   :  { %213 = vmatprep.subr.bf16.mxu0 %v4904_v9  ;;  %v4942_v47 = vld [vmem:[%s6779_s1 + $0x104] ss:$8 sps:$4 sm:$0xff]   ;;  %v4940_v48 = vld [vmem:[%s6779_s1 + $0x100] ss:$8 sps:$4 sm:$0xff]   ;;  %v76_v49 = vpack.c.bf16 %v69_v46, %v68_v45  ;;  %v4943_v51 = vld [vmem:[%s6779_s1 + $0x110] ss:$8 sps:$4 sm:$0xff]  }
  0x37   :  { %v71_v53 = vld [vmem:[%s6778_s0 + $0x18] sm:$0xff]  ;;  %v4948_v54 = vld [vmem:[%s6779_s1 + $0x124] ss:$8 sps:$4 sm:$0xff]   ;;  %v4946_v55 = vld [vmem:[%s6779_s1 + $0x120] ss:$8 sps:$4 sm:$0xff]   ;;  %vm2586_vm9 = vcmask 1041409  }
  0x38   :  { %v77_v56 = vpack.c.bf16 %v71_v53, %v70_v52  ;;  %v4951_v57 = vld [vmem:[%s6779_s1 + $0x134] ss:$8 sps:$4 sm:$0xff]   ;;  %v4949_v58 = vld [vmem:[%s6779_s1 + $0x130] ss:$8 sps:$4 sm:$0xff]   ;;  %v72_v59 = vld [vmem:[%s6778_s0 + $0x28] sm:$0xff]  ;;  %vm2588_vm10 = vcmask 1043459  }
  0x39   :  { %214 = vmatpush1.bf16.msra.mxu0 %v4906_v10  ;;  %v73_v60 = vld [vmem:[%s6778_s0 + $0x30] sm:$0xff]  ;;  %v4954_v61 = vld [vmem:[%s6779_s1 + $0x144] ss:$8 sps:$4 sm:$0xff]   ;;  %v4952_v62 = vld [vmem:[%s6779_s1 + $0x140] ss:$8 sps:$4 sm:$0xff]   ;;  %vm2590_vm11 = vcmask 1045509  }
  0x3a   :  { %215 = vmatprep.subr.bf16.mxu0 %v4907_v11  ;;  %v78_v63 = vpack.c.bf16 %v73_v60, %v72_v59  ;;  %v4957_v1 = vld [vmem:[%s6779_s1 + $0x154] ss:$8 sps:$4 sm:$0xff]   ;;  %v4955_v2 = vld [vmem:[%s6779_s1 + $0x150] ss:$8 sps:$4 sm:$0xff]   ;;  %v75_v4 = vld [vmem:[%s6778_s0 + $0x40] sm:$0xff]  ;;  %vm2592_vm12 = vcmask 1047559  }
  0x3b   :  { %v74_v3 = vld [vmem:[%s6778_s0 + $0x38] sm:$0xff]  ;;  %v4960_v5 = vld [vmem:[%s6779_s1 + $0x164] ss:$8 sps:$4 sm:$0xff]   ;;  %v4958_v6 = vld [vmem:[%s6779_s1 + $0x160] ss:$8 sps:$4 sm:$0xff]   ;;  %vm5339_vm13 = vmmov 0  }
  0x3c   :  { %v79_v7 = vpack.c.bf16 %v75_v4, %v74_v3  ;;  %v4963_v8 = vld [vmem:[%s6779_s1 + $0x174] ss:$8 sps:$4 sm:$0xff]   ;;  %v4961_v9 = vld [vmem:[%s6779_s1 + $0x170] ss:$8 sps:$4 sm:$0xff]   ;;  %v431_v10 = vld [vmem:[%s6778_s0 + $0x2] sm:$0xff] }
  0x3d   :  { %216 = vmatpush1.bf16.msra.mxu0 %v4909_v12  ;;  %v432_v11 = vld [vmem:[%s6778_s0 + $0xa] sm:$0xff]  ;;  %v436_v17 = vld [vmem:[%s6778_s0 + $0x32] sm:$0xff] }
  0x3e   :  { %217 = vmatprep.subr.bf16.mxu0 %v4910_v13  ;;  %v439_v12 = vpack.c.bf16 %v432_v11, %v431_v10  ;;  %v433_v13 = vld [vmem:[%s6778_s0 + $0x12] sm:$0xff] }
  0x41   :  { %218 = vmatpush1.bf16.msra.mxu0 %v4912_v14  ;;  %v434_v14 = vld [vmem:[%s6778_s0 + $0x1a] sm:$0xff] }
  0x42   :  { %219 = vmatprep.subr.bf16.mxu0 %v4913_v15  ;;  %v440_v15 = vpack.c.bf16 %v434_v14, %v433_v13 }
  0x45   :  { %220 = vmatpush1.bf16.msra.mxu0 %v4915_v16  ;;  %v435_v16 = vld [vmem:[%s6778_s0 + $0x2a] sm:$0xff] }
  0x46   :  { %358 = vmatprep.subr.bf16.mxu0 %v4918_v19  ;;  %v441_v18 = vpack.c.bf16 %v436_v17, %v435_v16  ;;  %v437_v19 = vld [vmem:[%s6778_s0 + $0x3a] sm:$0xff] }
  0x48   :  { %238 = vmatmul.mubr.bf16.vlgmr.msra.gmra.mrb[0].mxu0 %v104_v20  ;;  %v438_v20 = vld [vmem:[%s6778_s0 + $0x42] sm:$0xff]  ;;  %s5331_s0 = smov 96  }
  0x49   :  { %359 = vmatpush1.bf16.msra.mxu0 %v4916_v21  ;;  %247 = vmatprep.mubr.bf16.mxu0 %v5330_v0  ;;  %v442_v21 = vpack.c.bf16 %v438_v20, %v437_v19 }
  0x4a   :  { %360 = vmatprep.subr.bf16.mxu0 %v4921_v22 }
  0x4d   :  { %361 = vmatpush1.bf16.msra.mxu0 %v4919_v23 }
  0x4e   :  { %362 = vmatprep.subr.bf16.mxu0 %v4924_v26 }
  0x50   :  { %248 = vmatmul.mubr.bf16.gmra.mrb[4].mxu0 %v105_v27 }
  0x51   :  { %363 = vmatpush1.bf16.msra.mxu0 %v4922_v28  ;;  %257 = vmatprep.mubr.bf16.mxu0 %v5330_v0 }
  0x52   :  { %364 = vmatprep.subr.bf16.mxu0 %v4927_v29 }
  0x55   :  { %365 = vmatpush1.bf16.msra.mxu0 %v4925_v30 }
  0x56   :  { %366 = vmatprep.subr.bf16.mxu0 %v4930_v33 }
  0x58   :  { %258 = vmatmul.mubr.bf16.gmra.mrb[8].mxu0 %v106_v35 }
  0x59   :  { %367 = vmatpush1.bf16.msra.mxu0 %v4928_v34  ;;  %267 = vmatprep.mubr.bf16.mxu0 %v5330_v0 }
  0x5a   :  { %368 = vmatprep.subr.bf16.mxu0 %v4933_v36 }
  0x5d   :  { %369 = vmatpush1.bf16.msra.mxu0 %v4931_v37 }
  0x5e   :  { %370 = vmatprep.subr.bf16.mxu0 %v4936_v40 }
  0x60   :  { %268 = vmatmul.mubr.bf16.gmra.mrb[12].mxu0 %v107_v42 }
  0x61   :  { %371 = vmatpush1.bf16.msra.mxu0 %v4934_v41  ;;  %390 = vmatprep.mubr.bf16.mxu0 %v5330_v0 }
  0x62   :  { %372 = vmatprep.subr.bf16.mxu0 %v4939_v43 }
  0x65   :  { %373 = vmatpush1.bf16.msra.mxu0 %v4937_v44 }
  0x66   :  { %540 = vmatprep.subr.bf16.mxu0 %v4942_v47 }
  0x68   :  { %391 = vmatmul.mubr.bf16.vlgmr.msra.gmra.mrb[0].mxu0 %v76_v49 }
  0x69   :  { %541 = vmatpush1.bf16.msra.mxu0 %v4940_v48  ;;  %400 = vmatprep.mubr.bf16.mxu0 %v5330_v0 }
  0x6a   :  { %542 = vmatprep.subr.bf16.mxu0 %v4945_v50 }
  0x6d   :  { %543 = vmatpush1.bf16.msra.mxu0 %v4943_v51 }
  0x6e   :  { %544 = vmatprep.subr.bf16.mxu0 %v4948_v54 }
  0x70   :  { %401 = vmatmul.mubr.bf16.gmra.mrb[4].mxu0 %v77_v56 }
  0x71   :  { %545 = vmatpush1.bf16.msra.mxu0 %v4946_v55  ;;  %410 = vmatprep.mubr.bf16.mxu0 %v5330_v0 }
  0x72   :  { %546 = vmatprep.subr.bf16.mxu0 %v4951_v57 }
  0x75   :  { %547 = vmatpush1.bf16.msra.mxu0 %v4949_v58 }
  0x76   :  { %548 = vmatprep.subr.bf16.mxu0 %v4954_v61 }
  0x78   :  { %411 = vmatmul.mubr.bf16.gmra.mrb[8].mxu0 %v78_v63 }
  0x79   :  { %549 = vmatpush1.bf16.msra.mxu0 %v4952_v62  ;;  %420 = vmatprep.mubr.bf16.mxu0 %v5330_v0 }
  0x7a   :  { %550 = vmatprep.subr.bf16.mxu0 %v4957_v1 }
  0x7d   :  { %551 = vmatpush1.bf16.msra.mxu0 %v4955_v2 }
  0x7e   :  { %552 = vmatprep.subr.bf16.mxu0 %v4960_v5 }
  0x80   :  { %421 = vmatmul.mubr.bf16.gmra.mrb[12].mxu0 %v79_v7 }
  0x81   :  { %553 = vmatpush1.bf16.msra.mxu0 %v4958_v6  ;;  %572 = vmatprep.mubr.bf16.mxu0 %v5330_v0 }
  0x82   :  { %554 = vmatprep.subr.bf16.mxu0 %v4963_v8 }
  0x85   :  { %555 = vmatpush1.bf16.msra.mxu0 %v4961_v9 }
  0x88   :  { %573 = vmatmul.mubr.bf16.vlgmr.msra.gmra.mrb[0].mxu0 %v439_v12 }
  0x89   :  { %582 = vmatprep.mubr.bf16.mxu0 %v5330_v0 }
  0x90   :  { %583 = vmatmul.mubr.bf16.gmra.mrb[4].mxu0 %v440_v15 }
  0x91   :  { %592 = vmatprep.mubr.bf16.mxu0 %v5330_v0 }
  0x98   :  { %593 = vmatmul.mubr.bf16.gmra.mrb[8].mxu0 %v441_v18 }
  0x99   :  { %602 = vmatprep.mubr.bf16.mxu0 %v5330_v0 }
  0xa0   :  { %603 = vmatmul.mubr.bf16.gmra.mrb[12].mxu0 %v442_v21 }
 0x15b   :  { %v5656_v22 = vpop.f32.mrb[0].mxu0 }
 0x15c   :  { %v5658_v23 = vpop.f32.mrb[1].mxu0  ;;  %v655_v25 = vmul.f32 %v5656_v22, %v5656_v22 }
 0x15d   :  { %v5660_v24 = vpop.f32.mrb[2].mxu0  ;;  %v656_v0 = vmul.f32 %v5658_v23, %v5658_v23 }
 0x15e   :  { %v629_v26 = vadd.f32 %v5660_v24, %v5656_v22  ;;  %v657_v27 = vmul.f32 %v5660_v24, %v5660_v24  ;;  %v5668_v28 = vpop.f32.mrb[3].mxu0 }
 0x15f   :  { %v642_v29 = vadd.f32 %v5668_v28, %v5658_v23  ;;  %v658_v30 = vmul.f32 %v5668_v28, %v5668_v28 }
 0x160   :  { %v671_v31 = vadd.f32 %v657_v27, %v655_v25 }
 0x161   :  { %v684_v32 = vadd.f32 %v658_v30, %v656_v0 }
 0x163   :  { %v5676_v33 = vpop.f32.mrb[4].mxu0 }
 0x164   :  { %v630_v34 = vadd.f32 %v629_v26, %v5676_v33  ;;  %v659_v35 = vmul.f32 %v5676_v33, %v5676_v33  ;;  %v5681_v36 = vpop.f32.mrb[5].mxu0 }
 0x165   :  { %v643_v37 = vadd.f32 %v642_v29, %v5681_v36  ;;  %v660_v38 = vmul.f32 %v5681_v36, %v5681_v36  ;;  %v5686_v39 = vpop.f32.mrb[6].mxu0 }
 0x166   :  { %v672_v40 = vadd.f32 %v671_v31, %v659_v35  ;;  %v631_v41 = vadd.f32 %v630_v34, %v5686_v39  ;;  %v661_v42 = vmul.f32 %v5686_v39, %v5686_v39  ;;  %v5691_v43 = vpop.f32.mrb[7].mxu0 }
 0x167   :  { %v685_v44 = vadd.f32 %v684_v32, %v660_v38  ;;  %v644_v45 = vadd.f32 %v643_v37, %v5691_v43  ;;  %v662_v46 = vmul.f32 %v5691_v43, %v5691_v43 }
 0x168   :  { %v673_v47 = vadd.f32 %v672_v40, %v661_v42 }
 0x169   :  { %v686_v48 = vadd.f32 %v685_v44, %v662_v46 }
 0x16b   :  { %v5696_v49 = vpop.f32.mrb[8].mxu0 }
 0x16c   :  { %v632_v50 = vadd.f32 %v631_v41, %v5696_v49  ;;  %v663_v51 = vmul.f32 %v5696_v49, %v5696_v49  ;;  %v5701_v52 = vpop.f32.mrb[9].mxu0 }
 0x16d   :  { %v645_v53 = vadd.f32 %v644_v45, %v5701_v52  ;;  %v664_v54 = vmul.f32 %v5701_v52, %v5701_v52  ;;  %v5706_v55 = vpop.f32.mrb[10].mxu0 }
 0x16e   :  { %v674_v56 = vadd.f32 %v673_v47, %v663_v51  ;;  %v633_v57 = vadd.f32 %v632_v50, %v5706_v55  ;;  %v665_v58 = vmul.f32 %v5706_v55, %v5706_v55  ;;  %v5711_v59 = vpop.f32.mrb[11].mxu0 }
 0x16f   :  { %v687_v60 = vadd.f32 %v686_v48, %v664_v54  ;;  %v646_v61 = vadd.f32 %v645_v53, %v5711_v59  ;;  %v666_v62 = vmul.f32 %v5711_v59, %v5711_v59 }
 0x170   :  { %v675_v63 = vadd.f32 %v674_v56, %v665_v58 }
 0x171   :  { %v688_v1 = vadd.f32 %v687_v60, %v666_v62 }
 0x173   :  { %v5716_v2 = vpop.f32.mrb[12].mxu0 }
 0x174   :  { %v634_v3 = vadd.f32 %v633_v57, %v5716_v2  ;;  %v667_v4 = vmul.f32 %v5716_v2, %v5716_v2  ;;  %v5721_v5 = vpop.f32.mrb[13].mxu0 }
 0x175   :  { %v647_v6 = vadd.f32 %v646_v61, %v5721_v5  ;;  %v668_v7 = vmul.f32 %v5721_v5, %v5721_v5  ;;  %v5726_v8 = vpop.f32.mrb[14].mxu0 }
 0x176   :  { %v676_v9 = vadd.f32 %v675_v63, %v667_v4  ;;  %v635_v10 = vadd.f32 %v634_v3, %v5726_v8  ;;  %v669_v11 = vmul.f32 %v5726_v8, %v5726_v8  ;;  %v5731_v12 = vpop.f32.mrb[15].mxu0 }
 0x177   :  { %v689_v13 = vadd.f32 %v688_v1, %v668_v7  ;;  %v648_v14 = vadd.f32 %v647_v6, %v5731_v12  ;;  %v670_v15 = vmul.f32 %v5731_v12, %v5731_v12 }
 0x178   :  { %v636_v16 = vrot.slane %v635_v10, 4  ;;  %v677_v17 = vadd.f32 %v676_v9, %v669_v11 }
 0x179   :  { %v649_v18 = vrot.slane %v648_v14, 4  ;;  %v690_v19 = vadd.f32 %v689_v13, %v670_v15 }
 0x17a   :  { %v637_v20 = vadd.f32 %v636_v16, %v635_v10  ;;  %v678_v21 = vrot.slane %v677_v17, 4 }
 0x17b   :  { %v650_v25 = vadd.f32 %v649_v18, %v648_v14  ;;  %v691_v26 = vrot.slane %v690_v19, 4  ;;  %v752_v18 = vlaneseq }
 0x17c   :  { %v638_v27 = vrot.slane %v637_v20, 2  ;;  %v679_v0 = vadd.f32 %v678_v21, %v677_v17 }
 0x17d   :  { %v651_v29 = vrot.slane %v650_v25, 2  ;;  %v692_v30 = vadd.f32 %v691_v26, %v690_v19  ;;  %v5745_v19 = vshrl.u32 %v752_v18, 7  ;;  %vm5891_vm4 = vcmp.lt.s32.totalorder %v752_v18, 256 }
 0x17e   :  { %v639_v31 = vadd.f32 %v638_v27, %v637_v20  ;;  %v680_v32 = vrot.slane %v679_v0, 2  ;;  %v744_v20 = vld [vmem:[%s6780_s2] sm:$0x1]  ;;  %s5334_s2 = smov 16   ;;  %v5336_v18 = vmov 0.0  }
 0x17f   :  { %v652_v34 = vadd.f32 %v651_v29, %v650_v25  ;;  %v693_v35 = vrot.slane %v692_v30, 2  ;;  %v5751_v21 = vsub.s32 0, %v5745_v19  ;;  %v748_v27 = vld [vmem:[%s6781_s3] sm:$0x1]  ;;  %s5335_s3 = smov 32  }
 0x180   :  { %v640_v37 = vrot.slane %v639_v31, 1  ;;  %v681_v38 = vadd.f32 %v680_v32, %v679_v0  ;;  %1045 = vst.msk [vmem:[#allocation2] ss:$8 sm:$0x3] %vm5891_vm4, %v5336_v18 }
 0x181   :  { %v653_v40 = vrot.slane %v652_v34, 1  ;;  %v694_v41 = vadd.f32 %v693_v35, %v692_v30  ;;  %1048 = vst.msk [vmem:[#allocation2 + $0x30] ss:$8 sm:$0x3] %vm5891_vm4, %v5336_v18 }
 0x182   :  { %v641_v42 = vadd.f32 %v640_v37, %v639_v31  ;;  %v682_v44 = vrot.slane %v681_v38, 1  ;;  %1051 = vst.msk [vmem:[#allocation2 + $0x21] ss:$8 sm:$0x3] %vm5891_vm4, %v5336_v18 }
 0x183   :  { %v654_v45 = vadd.f32 %v653_v40, %v652_v34  ;;  %v695_v46 = vrot.slane %v694_v41, 1  ;;  %1054 = vst.msk [vmem:[#allocation2 + $0x51] ss:$8 sm:$0x3] %vm5891_vm4, %v5336_v18 }
 0x184   :  { %v683_v47 = vadd.f32 %v682_v44, %v681_v38 }
 0x185   :  { %v697_v48 = vadd.f32 %v654_v45, %v641_v42  ;;  %v696_v50 = vadd.f32 %v695_v46, %v694_v41 }
 0x187   :  { %699 = vrot.lane.b32.xlu0 %v697_v48, %s5328_s4  ;;  %v719_v51 = vadd.f32 %v696_v50, %v683_v47  ;;  %v4966_v50 = vld [vmem:[#allocation4 + $0x100] ss:$8 sps:$4 sm:$0xff]  }
 0x18b   :  { %721 = vrot.lane.b32.xlu0 %v719_v51, %s5328_s4 }
 0x1f9   :  { %v700_v53 = vpop.permute.xlu0 %699 }
 0x1fa   :  { %v702_v54 = vadd.f32 %v700_v53, %v697_v48  ;;  %v4964_v48 = vld [vmem:[#allocation4 + $0x104] ss:$8 sps:$4 sm:$0xff]   ;;  %v4969_v53 = vld [vmem:[#allocation4 + $0x110] ss:$8 sps:$4 sm:$0xff]  }
 0x1fb   :  { %1745 = vmatprep.subr.bf16.mxu1 %v4964_v48 }
 0x1fc   :  { %704 = vrot.lane.b32.xlu1 %v702_v54, %s5331_s0  ;;  %1746 = vmatpush1.bf16.msra.mxu1 %v4966_v50  ;;  %v4994_v50 = vld [vmem:[#allocation4 + $0x1a4] ss:$8 sps:$4 sm:$0xff]  }
 0x1fd   :  { %v722_v56 = vpop.permute.xlu0 %721 }
 0x1fe   :  { %v724_v57 = vadd.f32 %v722_v56, %v719_v51  ;;  %v4967_v51 = vld [vmem:[#allocation4 + $0x114] ss:$8 sps:$4 sm:$0xff]   ;;  %v4972_v56 = vld [vmem:[#allocation4 + $0x120] ss:$8 sps:$4 sm:$0xff]  }
 0x1ff   :  { %1747 = vmatprep.subr.bf16.mxu1 %v4967_v51  ;;  %v4996_v51 = vld [vmem:[#allocation4 + $0x1a0] ss:$8 sps:$4 sm:$0xff]  }
 0x200   :  { %726 = vrot.lane.b32.xlu1 %v724_v57, %s5331_s0  ;;  %1748 = vmatpush1.bf16.msra.mxu1 %v4969_v53 }
 0x26e   :  { %v705_v58 = vpop.permute.xlu1 %704 }
 0x26f   :  { %v707_v60 = vadd.f32 %v705_v58, %v702_v54  ;;  %v4970_v54 = vld [vmem:[#allocation4 + $0x124] ss:$8 sps:$4 sm:$0xff]   ;;  %v4975_v58 = vld [vmem:[#allocation4 + $0x130] ss:$8 sps:$4 sm:$0xff]  }
 0x270   :  { %1749 = vmatprep.subr.bf16.mxu1 %v4970_v54 }
 0x271   :  { %709 = vrot.lane.b32.xlu0 %v707_v60, %s5332_s16  ;;  %1750 = vmatpush1.bf16.msra.mxu1 %v4972_v56 }
 0x272   :  { %v727_v61 = vpop.permute.xlu1 %726 }
 0x273   :  { %v729_v62 = vadd.f32 %v727_v61, %v724_v57  ;;  %v4973_v57 = vld [vmem:[#allocation4 + $0x134] ss:$8 sps:$4 sm:$0xff]   ;;  %v4978_v61 = vld [vmem:[#allocation4 + $0x140] ss:$8 sps:$4 sm:$0xff]  }
 0x274   :  { %1751 = vmatprep.subr.bf16.mxu1 %v4973_v57 }
 0x275   :  { %731 = vrot.lane.b32.xlu1 %v729_v62, %s5332_s16  ;;  %1752 = vmatpush1.bf16.msra.mxu1 %v4975_v58  ;;  %v4997_v58 = vld [vmem:[#allocation4 + $0x1b4] ss:$8 sps:$4 sm:$0xff]  }
 0x2e3   :  { %v710_v63 = vpop.permute.xlu0 %709 }
 0x2e4   :  { %v712_v1 = vadd.f32 %v710_v63, %v707_v60  ;;  %v4976_v60 = vld [vmem:[#allocation4 + $0x144] ss:$8 sps:$4 sm:$0xff]   ;;  %v4981_v63 = vld [vmem:[#allocation4 + $0x150] ss:$8 sps:$4 sm:$0xff]  }
 0x2e5   :  { %1753 = vmatprep.subr.bf16.mxu1 %v4976_v60  ;;  %v4999_v60 = vld [vmem:[#allocation4 + $0x1b0] ss:$8 sps:$4 sm:$0xff]  }
 0x2e6   :  { %714 = vrot.lane.b32.xlu0 %v712_v1, %s5333_s17  ;;  %1754 = vmatpush1.bf16.msra.mxu1 %v4978_v61 }
 0x2e7   :  { %v732_v3 = vpop.permute.xlu1 %731 }
 0x2e8   :  { %v734_v4 = vadd.f32 %v732_v3, %v729_v62  ;;  %v4979_v62 = vld [vmem:[#allocation4 + $0x154] ss:$8 sps:$4 sm:$0xff]  }
 0x2e9   :  { %1755 = vmatprep.subr.bf16.mxu1 %v4979_v62 }
 0x2ea   :  { %736 = vrot.lane.b32.xlu1 %v734_v4, %s5333_s17  ;;  %1756 = vmatpush1.bf16.msra.mxu1 %v4981_v63 }
 0x358   :  { %v715_v6 = vpop.permute.xlu0 %714 }
 0x359   :  { %v717_v7 = vadd.f32 %v715_v6, %v712_v1  ;;  %v4982_v6 = vld [vmem:[#allocation4 + $0x164] ss:$8 sps:$4 sm:$0xff]  }
 0x35a   :  { %1757 = vmatprep.subr.bf16.mxu1 %v4982_v6  ;;  %v5000_v6 = vld [vmem:[#allocation4 + $0x1c4] ss:$8 sps:$4 sm:$0xff]  }
 0x35b   :  { %v718_v9 = vmul.f32 0.00048828125, %v717_v7  ;;  %v4984_v7 = vld [vmem:[#allocation4 + $0x160] ss:$8 sps:$4 sm:$0xff]  }
 0x35c   :  { %v737_v10 = vpop.permute.xlu1 %736  ;;  %1758 = vmatpush1.bf16.msra.mxu1 %v4984_v7  ;;  %v5002_v7 = vld [vmem:[#allocation4 + $0x1c0] ss:$8 sps:$4 sm:$0xff]  }
 0x35d   :  { %v739_v11 = vadd.f32 %v737_v10, %v734_v4  ;;  %v741_v13 = vmul.f32 %v718_v9, %v718_v9 }
 0x35f   :  { %v740_v14 = vmul.f32 0.00048828125, %v739_v11 }
 0x361   :  { %v742_v15 = vsub.f32 %v740_v14, %v741_v13 }
 0x363   :  { %v743_v16 = vmax.f32 %v742_v15, 0.0 }
 0x365   :  { %v745_v17 = vadd.f32 1e-05, %v743_v16 }
 0x367   :  { %5248 = vrsqrt.f32 %v745_v17 }
 0x371   :  { %v5249_v25 = vpop.eup %5248 }
 0x372   :  { %v747_v26 = vmul.f32 %v5249_v25, %v744_v20 }
 0x374   :  { %v755_v0 = vrot.slane %v747_v26, %v5751_v21  ;;  %v749_v29 = vmul.f32 %v747_v26, %v718_v9 }
 0x376   :  { %756 = vrot.lane.b32.xlu0 %v755_v0, %s5326_s28  ;;  %v750_v30 = vsub.f32 %v748_v27, %v749_v29  ;;  %v4985_v27 = vld [vmem:[#allocation4 + $0x174] ss:$8 sps:$4 sm:$0xff]   ;;  %v4987_v0 = vld [vmem:[#allocation4 + $0x170] ss:$8 sps:$4 sm:$0xff]  }
 0x377   :  { %1759 = vmatprep.subr.bf16.mxu1 %v4985_v27  ;;  %v5014_v27 = vld [vmem:[#allocation4 + $0x4] ss:$8 sps:$4 sm:$0xff]  }
 0x378   :  { %v803_v31 = vrot.slane %v750_v30, %v5751_v21  ;;  %1760 = vmatpush1.bf16.msra.mxu1 %v4987_v0 }
 0x37a   :  { %804 = vrot.lane.b32.xlu1 %v803_v31, %s5326_s28 }
 0x3e8   :  { %v757_v32 = vpop.permute.xlu0 %756 }
 0x3e9   :  { %v760_v34 = vsel %vm759_vm0, %v747_v26, %v757_v32 }
 0x3ea   :  { %762 = vrot.lane.b32.xlu0 %v760_v34, %s5334_s2 }
 0x3ec   :  { %v805_v35 = vpop.permute.xlu1 %804 }
 0x3ed   :  { %v807_v37 = vsel %vm759_vm0, %v750_v30, %v805_v35  ;;  %v4990_v35 = vld [vmem:[#allocation4 + $0x180] ss:$8 sps:$4 sm:$0xff]  }
 0x3ee   :  { %809 = vrot.lane.b32.xlu1 %v807_v37, %s5334_s2 }
 0x45c   :  { %v763_v38 = vpop.permute.xlu0 %762 }
 0x45d   :  { %v766_v40 = vsel %vm765_vm1, %v760_v34, %v763_v38  ;;  %v4988_v34 = vld [vmem:[#allocation4 + $0x184] ss:$8 sps:$4 sm:$0xff]  }
 0x45e   :  { %768 = vrot.lane.b32.xlu0 %v766_v40, %s5335_s3  ;;  %1761 = vmatprep.subr.bf16.mxu1 %v4988_v34 }
 0x45f   :  { %1762 = vmatpush1.bf16.msra.mxu1 %v4990_v35  ;;  %v5337_v35 = vmov 1966171168  }
 0x460   :  { %v810_v41 = vpop.permute.xlu1 %809 }
 0x461   :  { %v812_v42 = vsel %vm765_vm1, %v807_v37, %v810_v41 }
 0x462   :  { %814 = vrot.lane.b32.xlu1 %v812_v42, %s5335_s3 }
 0x4d0   :  { %v769_v44 = vpop.permute.xlu0 %768 }
 0x4d1   :  { %v772_v45 = vsel %vm771_vm2, %v766_v40, %v769_v44  ;;  %v4993_v44 = vld [vmem:[#allocation4 + $0x190] ss:$8 sps:$4 sm:$0xff]  }
 0x4d2   :  { %774 = vrot.lane.b32.xlu0 %v772_v45, %s5328_s4 }
 0x4d4   :  { %v815_v46 = vpop.permute.xlu1 %814 }
 0x4d5   :  { %v817_v47 = vsel %vm771_vm2, %v812_v42, %v815_v46  ;;  %v4991_v42 = vld [vmem:[#allocation4 + $0x194] ss:$8 sps:$4 sm:$0xff]  }
 0x4d6   :  { %819 = vrot.lane.b32.xlu1 %v817_v47, %s5328_s4  ;;  %1763 = vmatprep.subr.bf16.mxu1 %v4991_v42 }
 0x4d7   :  { %1764 = vmatpush1.bf16.msra.mxu1 %v4993_v44 }
 0x4d8   :  { %1765 = vmatprep.subr.bf16.mxu1 %v4994_v50 }
 0x4db   :  { %1766 = vmatpush1.bf16.msra.mxu1 %v4996_v51 }
 0x4dc   :  { %1767 = vmatprep.subr.bf16.mxu1 %v4997_v58 }
 0x4df   :  { %1768 = vmatpush1.bf16.msra.mxu1 %v4999_v60 }
 0x4e0   :  { %1769 = vmatprep.subr.bf16.mxu1 %v5000_v6 }
 0x4e3   :  { %1770 = vmatpush1.bf16.msra.mxu1 %v5002_v7 }
 0x544   :  { %v775_v1 = vpop.permute.xlu0 %774 }
 0x545   :  { %v778_v3 = vsel %vm777_vm3, %v772_v45, %v775_v1 }
 0x546   :  { %v5772_v4 = vrot.slane %v778_v3, %v5751_v21 }
 0x548   :  { %v820_v9 = vpop.permute.xlu1 %819  ;;  %v784_v13 = vmul.f32 %v5772_v4, %v5658_v23  ;;  %v783_v14 = vmul.f32 %v5772_v4, %v5656_v22  ;;  %v786_v17 = vmul.f32 %v5772_v4, %v5668_v28  ;;  %v785_v20 = vmul.f32 %v5772_v4, %v5660_v24 }
 0x549   :  { %v822_v10 = vsel %vm777_vm3, %v817_v47, %v820_v9  ;;  %v788_v24 = vmul.f32 %v5772_v4, %v5681_v36  ;;  %v787_v28 = vmul.f32 %v5772_v4, %v5676_v33  ;;  %v790_v33 = vmul.f32 %v5772_v4, %v5691_v43 }
 0x54a   :  { %v5776_v11 = vrot.slane %v822_v10, %v5751_v21  ;;  %v789_v36 = vmul.f32 %v5772_v4, %v5686_v39  ;;  %v792_v39 = vmul.f32 %v5772_v4, %v5701_v52  ;;  %v791_v43 = vmul.f32 %v5772_v4, %v5696_v49  ;;  %v5003_v10 = vld [vmem:[#allocation4 + $0x1d4] ss:$8 sps:$4 sm:$0xff]  }
 0x54b   :  { %v794_v49 = vmul.f32 %v5772_v4, %v5711_v59  ;;  %v793_v52 = vmul.f32 %v5772_v4, %v5706_v55  ;;  %v796_v55 = vmul.f32 %v5772_v4, %v5721_v5  ;;  %v795_v59 = vmul.f32 %v5772_v4, %v5716_v2  ;;  %1771 = vmatprep.subr.bf16.mxu1 %v5003_v10 }
 0x54c   :  { %v5783_v15 = vadd.f32 %v5776_v11, %v784_v13  ;;  %v5786_v16 = vadd.f32 %v5776_v11, %v783_v14  ;;  %v5795_v23 = vadd.f32 %v5776_v11, %v786_v17  ;;  %v5798_v22 = vadd.f32 %v5776_v11, %v785_v20  ;;  %v5005_v13 = vld [vmem:[#allocation4 + $0x1d0] ss:$8 sps:$4 sm:$0xff]   ;;  %v5008_v20 = vld [vmem:[#allocation4 + $0x1e0] ss:$8 sps:$4 sm:$0xff]  }
 0x54d   :  { %v5813_v31 = vadd.f32 %v5776_v11, %v788_v24  ;;  %v5816_v32 = vadd.f32 %v5776_v11, %v787_v28  ;;  %v5831_v40 = vadd.f32 %v5776_v11, %v790_v33  ;;  %v5834_v41 = vadd.f32 %v5776_v11, %v789_v36  ;;  %1772 = vmatpush1.bf16.msra.mxu1 %v5005_v13  ;;  %v5009_v24 = vld [vmem:[#allocation4 + $0x1f4] ss:$8 sps:$4 sm:$0xff]   ;;  %v5011_v28 = vld [vmem:[#allocation4 + $0x1f0] ss:$8 sps:$4 sm:$0xff]  }
 0x54e   :  { %v844_v25 = vmax.f32 %v5783_v15, 0.0  ;;  %v843_v26 = vmax.f32 %v5786_v16, 0.0  ;;  %v846_v29 = vmax.f32 %v5795_v23, 0.0  ;;  %v845_v30 = vmax.f32 %v5798_v22, 0.0 }
 0x54f   :  { %v848_v37 = vmax.f32 %v5813_v31, 0.0  ;;  %v847_v38 = vmax.f32 %v5816_v32, 0.0  ;;  %v850_v45 = vmax.f32 %v5831_v40, 0.0  ;;  %v849_v46 = vmax.f32 %v5834_v41, 0.0 }
 0x550   :  { %877 = vrot.lane.b32.xlu1 %v844_v25, %s5333_s17  ;;  %875 = vrot.lane.b32.xlu0 %v843_v26, %s5333_s17  ;;  %v5849_v47 = vadd.f32 %v5776_v11, %v792_v39  ;;  %v5852_v48 = vadd.f32 %v5776_v11, %v791_v43  ;;  %v5867_v56 = vadd.f32 %v5776_v11, %v794_v49  ;;  %v1062_v39 = vunpack.c.l.s4 %v5337_v35 }
 0x551   :  { %v5870_v57 = vadd.f32 %v5776_v11, %v793_v52  ;;  %v5885_v63 = vadd.f32 %v5776_v11, %v796_v55  ;;  %v5888_v1 = vadd.f32 %v5776_v11, %v795_v59  ;;  %v798_v2 = vmul.f32 %v5772_v4, %v5731_v12 }
 0x552   :  { %v852_v53 = vmax.f32 %v5849_v47, 0.0  ;;  %v851_v54 = vmax.f32 %v5852_v48, 0.0  ;;  %v854_v61 = vmax.f32 %v5867_v56, 0.0  ;;  %v797_v3 = vmul.f32 %v5772_v4, %v5726_v8 }
 0x553   :  { %v853_v62 = vmax.f32 %v5870_v57, 0.0  ;;  %v856_v8 = vmax.f32 %v5885_v63, 0.0  ;;  %v855_v12 = vmax.f32 %v5888_v1, 0.0  ;;  %v5920_v4 = vadd.f32 %v5776_v11, %v798_v2 }
 0x554   :  { %881 = vrot.lane.b32.xlu1 %v846_v29, %s5333_s17  ;;  %879 = vrot.lane.b32.xlu0 %v845_v30, %s5333_s17  ;;  %v5923_v9 = vadd.f32 %v5776_v11, %v797_v3  ;;  %v5006_v11 = vld [vmem:[#allocation4 + $0x1e4] ss:$8 sps:$4 sm:$0xff]   ;;  %v1063_v59 = vunpack.c.0.s8 %v1062_v39 }
 0x555   :  { %v858_v14 = vmax.f32 %v5920_v4, 0.0  ;;  %1773 = vmatprep.subr.bf16.mxu1 %v5006_v11 }
 0x556   :  { %v857_v17 = vmax.f32 %v5923_v9, 0.0  ;;  %1774 = vmatpush1.bf16.msra.mxu1 %v5008_v20 }
 0x557   :  { %1775 = vmatprep.subr.bf16.mxu1 %v5009_v24 }
 0x558   :  { %885 = vrot.lane.b32.xlu1 %v848_v37, %s5333_s17  ;;  %883 = vrot.lane.b32.xlu0 %v847_v38, %s5333_s17 }
 0x55a   :  { %1776 = vmatpush1.bf16.msra.mxu1 %v5011_v28 }
 0x55b   :  { %1958 = vmatprep.subr.bf16.mxu1 %v5014_v27 }
 0x55c   :  { %889 = vrot.lane.b32.xlu1 %v850_v45, %s5333_s17  ;;  %887 = vrot.lane.b32.xlu0 %v849_v46, %s5333_s17 }
 0x560   :  { %893 = vrot.lane.b32.xlu1 %v852_v53, %s5333_s17  ;;  %891 = vrot.lane.b32.xlu0 %v851_v54, %s5333_s17 }
 0x564   :  { %897 = vrot.lane.b32.xlu1 %v854_v61, %s5333_s17  ;;  %895 = vrot.lane.b32.xlu0 %v853_v62, %s5333_s17 }
 0x568   :  { %901 = vrot.lane.b32.xlu1 %v856_v8, %s5333_s17  ;;  %899 = vrot.lane.b32.xlu0 %v855_v12, %s5333_s17 }
 0x56c   :  { %905 = vrot.lane.b32.xlu1 %v858_v14, %s5333_s17  ;;  %903 = vrot.lane.b32.xlu0 %v857_v17, %s5333_s17  ;;  %s5340_s17 = smov [#allocation9]  }
 0x56d   :  { %s4298_s19 = sshll.u32 %s5340_s17, 4  ;;  %s4299_s19 = int_to_ptr.vmem [resolvable:$true] %s4298_s19 }
 0x56e   :  { %s5296_s20 = scalar_lea.vmem %s4299_s19, 32  ;;  %p5301_p3 = scmp.lt.s32.totalorder %s4299_s19, %s4299_s19 }
 0x56f   :  { %p5297_p2 = scmp.ne.s32.totalorder %s4299_s19, %s5296_s20  ;;  %p5302_p4 = scmp.lt.s32.totalorder %s5296_s20, %s5296_s20 }
 0x571   :  { %p5303_p5 = por %p5302_p4, %p5301_p3 }
 0x573   :  { %p5304_p6 = pnand %p5303_p5, %p5297_p2 }
 0x5c2   :  { %v878_v0 = vpop.permute.xlu1 %877  ;;  %v876_v33 = vpop.permute.xlu0 %875 }
 0x5c3   :  { %v908_v36 = vsel %vm907_vm5, %v876_v33, %v878_v0  ;;  %v940_v34 = vsel %vm907_vm5, %v878_v0, %v876_v33 }
 0x5c4   :  { %v948_v43 = vmax.f32 %v843_v26, %v908_v36  ;;  %v949_v42 = vmax.f32 %v844_v25, %v940_v34 }
 0x5c6   :  { %v882_v44 = vpop.permute.xlu1 %881  ;;  %v880_v49 = vpop.permute.xlu0 %879  ;;  %v981_v58 = vrot.slane %v948_v43, 1  ;;  %v984_v16 = vrot.slane %v949_v42, 1 }
 0x5c7   :  { %v909_v52 = vsel %vm907_vm5, %v880_v49, %v882_v44  ;;  %v941_v50 = vsel %vm907_vm5, %v882_v44, %v880_v49 }
 0x5c8   :  { %v950_v51 = vmax.f32 %v845_v30, %v909_v52  ;;  %v951_v55 = vmax.f32 %v846_v29, %v941_v50  ;;  %v5960_v30 = vsub.s32 %v1063_v59, %v5745_v19 }
 0x5ca   :  { %v982_v26 = vrot.slane %v950_v51, 1  ;;  %v985_v60 = vrot.slane %v951_v55, 1  ;;  %v886_v15 = vpop.permute.xlu1 %885  ;;  %v884_v25 = vpop.permute.xlu0 %883 }
 0x5cb   :  { %v910_v2 = vsel %vm907_vm5, %v884_v25, %v886_v15  ;;  %v942_v3 = vsel %vm907_vm5, %v886_v15, %v884_v25 }
 0x5cc   :  { %v983_v6 = vsel %vm980_vm6, %v981_v58, %v982_v26  ;;  %v986_v22 = vsel %vm980_vm6, %v984_v16, %v985_v60  ;;  %v952_v23 = vmax.f32 %v847_v38, %v910_v2  ;;  %v953_v29 = vmax.f32 %v848_v37, %v942_v3 }
 0x5cd   :  { %v1025_v7 = vmax.f32 %v948_v43, %v983_v6  ;;  %v1026_v10 = vmax.f32 %v949_v42, %v986_v22 }
 0x5ce   :  { %v987_v13 = vrot.slane %v952_v23, 1  ;;  %v989_v11 = vrot.slane %v953_v29, 1  ;;  %v890_v20 = vpop.permute.xlu1 %889  ;;  %v888_v24 = vpop.permute.xlu0 %887 }
 0x5cf   :  { %v1060_v28 = vcombine.low %v1025_v7, %v1026_v10  ;;  %v1108_v27 = vcombine.high %v1025_v7, %v1026_v10  ;;  %v911_v0 = vsel %vm907_vm5, %v888_v24, %v890_v20  ;;  %v943_v33 = vsel %vm907_vm5, %v890_v20, %v888_v24 }
 0x5d0   :  { %v988_v32 = vsel %vm980_vm6, %v982_v26, %v987_v13  ;;  %v990_v31 = vsel %vm980_vm6, %v985_v60, %v989_v11  ;;  %v954_v37 = vmax.f32 %v849_v46, %v911_v0  ;;  %v955_v38 = vmax.f32 %v850_v45, %v943_v33 }
 0x5d1   :  { %v1067_v36 = vrot.slane %v1060_v28, %v5960_v30  ;;  %v1115_v34 = vrot.slane %v1108_v27, %v5960_v30  ;;  %v1027_v35 = vmax.f32 %v950_v51, %v988_v32  ;;  %v1028_v39 = vmax.f32 %v951_v55, %v990_v31 }
 0x5d2   :  { %v991_v43 = vrot.slane %v954_v37, 1  ;;  %v993_v42 = vrot.slane %v955_v38, 1  ;;  %v894_v44 = vpop.permute.xlu1 %893  ;;  %v892_v49 = vpop.permute.xlu0 %891 }
 0x5d3   :  { %v1074_v52 = vrot.slane %v1067_v36, %v5960_v30  ;;  %v1122_v50 = vrot.slane %v1115_v34, %v5960_v30  ;;  %v1160_v59 = vcombine.low %v1027_v35, %v1028_v39  ;;  %v1208_v41 = vcombine.high %v1027_v35, %v1028_v39 }
 0x5d4   :  { %v992_v46 = vsel %vm980_vm6, %v987_v13, %v991_v43  ;;  %v994_v40 = vsel %vm980_vm6, %v989_v11, %v993_v42  ;;  %v1031_v45 = vmax.f32 %v954_v37, %v991_v43  ;;  %v1032_v58 = vmax.f32 %v955_v38, %v993_v42 }
 0x5d5   :  { %1093 = vst.msk [vmem:[#allocation2 + $0x1] ss:$8 sm:$0x3] %vm5891_vm4, %v1074_v52  ;;  %v1098_v51 = vcombine.high %v1074_v52, %v1074_v52  ;;  %1141 = vst.msk [vmem:[#allocation2 + $0x3] ss:$8 sm:$0x3] %vm5891_vm4, %v1122_v50  ;;  %v1146_v55 = vcombine.high %v1122_v50, %v1122_v50  ;;  %v1167_v16 = vrot.slane %v1160_v59, %v5960_v30 }
 0x5d6   :  { %v1215_v26 = vrot.slane %v1208_v41, %v5960_v30  ;;  %v1029_v60 = vmax.f32 %v952_v23, %v992_v46  ;;  %v1030_v15 = vmax.f32 %v953_v29, %v994_v40  ;;  %v1360_v25 = vcombine.low %v1031_v45, %v1032_v58  ;;  %v898_v3 = vpop.permute.xlu1 %897  ;;  %v896_v6 = vpop.permute.xlu0 %895 }
 0x5d7   :  { %v1408_v2 = vcombine.high %v1031_v45, %v1032_v58  ;;  %1103 = vst.msk [vmem:[#allocation2 + $0x2] ss:$8 sm:$0x3] %vm5891_vm4, %v1098_v51  ;;  %1151 = vst.msk [vmem:[#allocation2 + $0x4] ss:$8 sm:$0x3] %vm5891_vm4, %v1146_v55  ;;  %v1174_v22 = vrot.slane %v1167_v16, %v5960_v30  ;;  %v912_v10 = vsel %vm907_vm5, %v892_v49, %v894_v44 }
 0x5d8   :  { %v1222_v7 = vrot.slane %v1215_v26, %v5960_v30  ;;  %v944_v13 = vsel %vm907_vm5, %v894_v44, %v892_v49  ;;  %v1260_v23 = vcombine.low %v1029_v60, %v1030_v15  ;;  %v1308_v29 = vcombine.high %v1029_v60, %v1030_v15 }
 0x5d9   :  { %v1367_v11 = vrot.slane %v1360_v25, %v5960_v30  ;;  %v1415_v20 = vrot.slane %v1408_v2, %v5960_v30  ;;  %1193 = vst.msk [vmem:[#allocation2 + $0x5] ss:$8 sm:$0x3] %vm5891_vm4, %v1174_v22  ;;  %v1198_v24 = vcombine.high %v1174_v22, %v1174_v22  ;;  %v956_v27 = vmax.f32 %v851_v54, %v912_v10 }
 0x5da   :  { %1241 = vst.msk [vmem:[#allocation2 + $0x7] ss:$8 sm:$0x3] %vm5891_vm4, %v1222_v7  ;;  %v1246_v28 = vcombine.high %v1222_v7, %v1222_v7  ;;  %v957_v0 = vmax.f32 %v852_v53, %v944_v13  ;;  %v1267_v33 = vrot.slane %v1260_v23, %v5960_v30  ;;  %v1315_v32 = vrot.slane %v1308_v29, %v5960_v30  ;;  %v902_v38 = vpop.permute.xlu1 %901  ;;  %v900_v36 = vpop.permute.xlu0 %899 }
 0x5db   :  { %v1374_v31 = vrot.slane %v1367_v11, %v5960_v30  ;;  %v1422_v37 = vrot.slane %v1415_v20, %v5960_v30  ;;  %1203 = vst.msk [vmem:[#allocation2 + $0x6] ss:$8 sm:$0x3] %vm5891_vm4, %v1198_v24  ;;  %v995_v48 = vrot.slane %v956_v27, 1  ;;  %v913_v47 = vsel %vm907_vm5, %v896_v6, %v898_v3 }
 0x5dc   :  { %1251 = vst.msk [vmem:[#allocation2 + $0x10] ss:$8 sm:$0x3] %vm5891_vm4, %v1246_v28  ;;  %v998_v54 = vrot.slane %v957_v0, 1  ;;  %v945_v53 = vsel %vm907_vm5, %v898_v3, %v896_v6  ;;  %v1274_v34 = vrot.slane %v1267_v33, %v5960_v30  ;;  %v1322_v35 = vrot.slane %v1315_v32, %v5960_v30 }
 0x5dd   :  { %1393 = vst.msk [vmem:[#allocation2 + $0x15] ss:$8 sm:$0x3] %vm5891_vm4, %v1374_v31  ;;  %v1398_v39 = vcombine.high %v1374_v31, %v1374_v31  ;;  %1441 = vst.msk [vmem:[#allocation2 + $0x17] ss:$8 sm:$0x3] %vm5891_vm4, %v1422_v37  ;;  %v1446_v43 = vcombine.high %v1422_v37, %v1422_v37  ;;  %v958_v42 = vmax.f32 %v853_v62, %v913_v47 }
 0x5de   :  { %v959_v44 = vmax.f32 %v854_v61, %v945_v53  ;;  %v914_v49 = vsel %vm907_vm5, %v900_v36, %v902_v38  ;;  %v946_v52 = vsel %vm907_vm5, %v902_v38, %v900_v36  ;;  %1293 = vst.msk [vmem:[#allocation2 + $0x11] ss:$8 sm:$0x3] %vm5891_vm4, %v1274_v34  ;;  %v1298_v50 = vcombine.high %v1274_v34, %v1274_v34  ;;  %v906_v61 = vpop.permute.xlu1 %905  ;;  %v904_v62 = vpop.permute.xlu0 %903 }
 0x5df   :  { %1341 = vst.msk [vmem:[#allocation2 + $0x13] ss:$8 sm:$0x3] %vm5891_vm4, %v1322_v35  ;;  %v1346_v59 = vcombine.high %v1322_v35, %v1322_v35  ;;  %1403 = vst.msk [vmem:[#allocation2 + $0x16] ss:$8 sm:$0x3] %vm5891_vm4, %v1398_v39  ;;  %v960_v56 = vmax.f32 %v855_v12, %v914_v49  ;;  %v961_v57 = vmax.f32 %v856_v8, %v946_v52 }
 0x5e0   :  { %1451 = vst.msk [vmem:[#allocation2 + $0x20] ss:$8 sm:$0x3] %vm5891_vm4, %v1446_v43  ;;  %v996_v41 = vrot.slane %v958_v42, 1  ;;  %v999_v46 = vrot.slane %v959_v44, 1  ;;  %v915_v40 = vsel %vm907_vm5, %v904_v62, %v906_v61  ;;  %v947_v45 = vsel %vm907_vm5, %v906_v61, %v904_v62 }
 0x5e1   :  { %1303 = vst.msk [vmem:[#allocation2 + $0x12] ss:$8 sm:$0x3] %vm5891_vm4, %v1298_v50  ;;  %1351 = vst.msk [vmem:[#allocation2 + $0x14] ss:$8 sm:$0x3] %vm5891_vm4, %v1346_v59  ;;  %v962_v63 = vmax.f32 %v857_v17, %v915_v40  ;;  %v963_v8 = vmax.f32 %v858_v14, %v947_v45 }
 0x5e2   :  { %v1001_v58 = vrot.slane %v960_v56, 1  ;;  %v1003_v1 = vrot.slane %v961_v57, 1  ;;  %v997_v12 = vsel %vm980_vm6, %v995_v48, %v996_v41  ;;  %v1000_v51 = vsel %vm980_vm6, %v998_v54, %v999_v46  ;;  %v6048_v15 = vld [vmem:[#allocation2 + $0x8] sm:$0xfe]  ;;  %v6050_v25 = vld [vmem:[#allocation2] sm:$0xfe] }
 0x5e3   :  { %v1033_v55 = vmax.f32 %v956_v27, %v997_v12  ;;  %v1034_v16 = vmax.f32 %v957_v0, %v1000_v51  ;;  %v1005_v17 = vrot.slane %v962_v63, 1  ;;  %v1007_v3 = vrot.slane %v963_v8, 1 }
 0x5e4   :  { %v1002_v26 = vsel %vm980_vm6, %v996_v41, %v1001_v58  ;;  %v1004_v60 = vsel %vm980_vm6, %v999_v46, %v1003_v1  ;;  %v1523_v6 = vrot.slane %v6048_v15, 1  ;;  %v1520_v22 = vrot.slane %v6050_v25, 1  ;;  %v5017_v25 = vld [vmem:[#allocation4 + $0x14] ss:$8 sps:$4 sm:$0xff]  }
 0x5e5   :  { %v1035_v2 = vmax.f32 %v958_v42, %v1002_v26  ;;  %v1036_v9 = vmax.f32 %v959_v44, %v1004_v60  ;;  %v1075_v4 = vcombine.low %v1033_v55, %v1034_v16  ;;  %v1123_v14 = vcombine.high %v1033_v55, %v1034_v16  ;;  %v5012_v26 = vld [vmem:[#allocation4] ss:$8 sps:$4 sm:$0xff]  }
 0x5e6   :  { %v1006_v13 = vsel %vm980_vm6, %v1001_v58, %v1005_v17  ;;  %v1008_v23 = vsel %vm980_vm6, %v1003_v1, %v1007_v3  ;;  %v1039_v0 = vmax.f32 %v962_v63, %v1005_v17  ;;  %v1040_v33 = vmax.f32 %v963_v8, %v1007_v3 }
 0x5e7   :  { %v1175_v7 = vcombine.low %v1035_v2, %v1036_v9  ;;  %v1223_v10 = vcombine.high %v1035_v2, %v1036_v9  ;;  %v1082_v29 = vrot.slane %v1075_v4, %v5960_v30  ;;  %v1130_v11 = vrot.slane %v1123_v14, %v5960_v30  ;;  %v1503_v34 = vld [vmem:[#allocation2 + $0x28] sm:$0x1]  ;;  %v1502_v49 = vld [vmem:[#allocation2 + $0x20] sm:$0x1]  ;;  %v5015_v2 = vld [vmem:[#allocation4 + $0x10] ss:$8 sps:$4 sm:$0xff]  }
 0x5e8   :  { %v1037_v20 = vmax.f32 %v960_v56, %v1006_v13  ;;  %v1038_v24 = vmax.f32 %v961_v57, %v1008_v23  ;;  %v1375_v54 = vcombine.low %v1039_v0, %v1040_v33  ;;  %v1423_v47 = vcombine.high %v1039_v0, %v1040_v33  ;;  %v6064_v53 = vld [vmem:[#allocation2 + $0x18] sm:$0xff]  ;;  %v6072_v44 = vld [vmem:[#allocation2 + $0x10] sm:$0xff]  ;;  %v5020_v9 = vld [vmem:[#allocation4 + $0x24] ss:$8 sps:$4 sm:$0xff]  }
 0x5e9   :  { %v1182_v28 = vrot.slane %v1175_v7, %v5960_v30  ;;  %v1230_v27 = vrot.slane %v1223_v10, %v5960_v30  ;;  %v1089_v32 = vrot.slane %v1082_v29, %v5960_v30  ;;  %v1137_v31 = vrot.slane %v1130_v11, %v5960_v30  ;;  %v5018_v4 = vld [vmem:[#allocation4 + $0x20] ss:$8 sps:$4 sm:$0xff]   ;;  %v5023_v14 = vld [vmem:[#allocation4 + $0x34] ss:$8 sps:$4 sm:$0xff]   ;;  %v5021_v0 = vld [vmem:[#allocation4 + $0x30] ss:$8 sps:$4 sm:$0xff]  }
 0x5ea   :  { %v1275_v37 = vcombine.low %v1037_v20, %v1038_v24  ;;  %v1323_v38 = vcombine.high %v1037_v20, %v1038_v24  ;;  %v1382_v59 = vrot.slane %v1375_v54, %v5960_v30  ;;  %v1430_v56 = vrot.slane %v1423_v47, %v5960_v30  ;;  %v5029_v54 = vld [vmem:[#allocation4 + $0x54] ss:$8 sps:$4 sm:$0xff]   ;;  %v5027_v47 = vld [vmem:[#allocation4 + $0x50] ss:$8 sps:$4 sm:$0xff]  }
 0x5eb   :  { %v1189_v36 = vrot.slane %v1182_v28, %v5960_v30  ;;  %v1237_v48 = vrot.slane %v1230_v27, %v5960_v30  ;;  %1096 = vst.msk [vmem:[#allocation2 + $0x31] ss:$8 sm:$0x3] %vm5891_vm4, %v1089_v32  ;;  %v1099_v35 = vcombine.high %v1089_v32, %v1089_v32  ;;  %1144 = vst.msk [vmem:[#allocation2 + $0x33] ss:$8 sm:$0x3] %vm5891_vm4, %v1137_v31 }
 0x5ec   :  { %v1147_v39 = vcombine.high %v1137_v31, %v1137_v31  ;;  %v1282_v43 = vrot.slane %v1275_v37, %v5960_v30  ;;  %v1330_v42 = vrot.slane %v1323_v38, %v5960_v30  ;;  %v1524_v62 = vrot.slane %v6064_v53, 1  ;;  %v5026_v31 = vld [vmem:[#allocation4 + $0x44] ss:$8 sps:$4 sm:$0xff]  }
 0x5ed   :  { %1196 = vst.msk [vmem:[#allocation2 + $0x35] ss:$8 sm:$0x3] %vm5891_vm4, %v1189_v36  ;;  %v1199_v52 = vcombine.high %v1189_v36, %v1189_v36  ;;  %1244 = vst.msk [vmem:[#allocation2 + $0x37] ss:$8 sm:$0x3] %vm5891_vm4, %v1237_v48  ;;  %v1247_v50 = vcombine.high %v1237_v48, %v1237_v48  ;;  %v1389_v46 = vrot.slane %v1382_v59, %v5960_v30 }
 0x5ee   :  { %1106 = vst.msk [vmem:[#allocation2 + $0x32] ss:$8 sm:$0x3] %vm5891_vm4, %v1099_v35  ;;  %1154 = vst.msk [vmem:[#allocation2 + $0x34] ss:$8 sm:$0x3] %vm5891_vm4, %v1147_v39  ;;  %v1289_v57 = vrot.slane %v1282_v43, %v5960_v30  ;;  %v1337_v61 = vrot.slane %v1330_v42, %v5960_v30  ;;  %v1437_v40 = vrot.slane %v1430_v56, %v5960_v30 }
 0x5ef   :  { %v1528_v41 = vrot.slane %v1503_v34, 1  ;;  %1206 = vst.msk [vmem:[#allocation2 + $0x36] ss:$8 sm:$0x3] %vm5891_vm4, %v1199_v52  ;;  %v1521_v45 = vrot.slane %v6072_v44, 1  ;;  %v1526_v58 = vrot.slane %v1502_v49, 1  ;;  %v1525_v8 = vsel %vm980_vm6, %v1523_v6, %v1524_v62 }
 0x5f0   :  { %1254 = vst.msk [vmem:[#allocation2 + $0x40] ss:$8 sm:$0x3] %vm5891_vm4, %v1247_v50  ;;  %1296 = vst.msk [vmem:[#allocation2 + $0x41] ss:$8 sm:$0x3] %vm5891_vm4, %v1289_v57  ;;  %v1299_v1 = vcombine.high %v1289_v57, %v1289_v57  ;;  %v1347_v63 = vcombine.high %v1337_v61, %v1337_v61  ;;  %v1399_v51 = vcombine.high %v1389_v46, %v1389_v46 }
 0x5f1   :  { %1344 = vst.msk [vmem:[#allocation2 + $0x43] ss:$8 sm:$0x3] %vm5891_vm4, %v1337_v61  ;;  %v1529_v12 = vsel %vm980_vm6, %v1524_v62, %v1528_v41  ;;  %1396 = vst.msk [vmem:[#allocation2 + $0x45] ss:$8 sm:$0x3] %vm5891_vm4, %v1389_v46  ;;  %v1447_v30 = vcombine.high %v1437_v40, %v1437_v40  ;;  %v1522_v16 = vsel %vm980_vm6, %v1520_v22, %v1521_v45 }
 0x5f2   :  { %1444 = vst.msk [vmem:[#allocation2 + $0x47] ss:$8 sm:$0x3] %vm5891_vm4, %v1437_v40  ;;  %v1549_v55 = vpack.c.bf16 %v1529_v12, %v1525_v8  ;;  %1306 = vst.msk [vmem:[#allocation2 + $0x42] ss:$8 sm:$0x3] %vm5891_vm4, %v1299_v1  ;;  %v1527_v60 = vsel %vm980_vm6, %v1521_v45, %v1526_v58 }
 0x5f3   :  { %1354 = vst.msk [vmem:[#allocation2 + $0x44] ss:$8 sm:$0x3] %vm5891_vm4, %v1347_v63  ;;  %1406 = vst.msk [vmem:[#allocation2 + $0x46] ss:$8 sm:$0x3] %vm5891_vm4, %v1399_v51  ;;  %v1548_v15 = vpack.c.bf16 %v1527_v60, %v1522_v16 }
 0x5f4   :  { %1454 = vst.msk [vmem:[#allocation2 + $0x50] ss:$8 sm:$0x3] %vm5891_vm4, %v1447_v30  ;;  %1777 = vmatprep.mubr.bf16.mxu1 %v1549_v55  ;;  %v1457_v38 = vld [vmem:[#allocation2 + $0x8] sm:$0xff]  ;;  %v5035_v39 = vld [vmem:[#allocation4 + $0x74] ss:$8 sps:$4 sm:$0xff]  }
 0x5f5   :  { %1778 = vmatmul.mubr.bf16.vlgmr.msra.gmra.mrb[0].mxu1 %v1548_v15  ;;  %v1465_v36 = vpack.c.bf16 %v6064_v53, %v1457_v38  ;;  %v5024_v48 = vld [vmem:[#allocation4 + $0x40] ss:$8 sps:$4 sm:$0xff]   ;;  %v5032_v34 = vld [vmem:[#allocation4 + $0x64] ss:$8 sps:$4 sm:$0xff]   ;;  %v5033_v43 = vld [vmem:[#allocation4 + $0x70] ss:$8 sps:$4 sm:$0xff]  }
 0x5f6   :  { %1959 = vmatpush1.bf16.msra.mxu1 %v5012_v26  ;;  %v1505_v17 = vld [vmem:[#allocation2 + $0x38] sm:$0xfe]  ;;  %v1504_v3 = vld [vmem:[#allocation2 + $0x30] sm:$0xfe]  ;;  %v5030_v35 = vld [vmem:[#allocation4 + $0x60] ss:$8 sps:$4 sm:$0xff]  }
 0x5f7   :  { %1960 = vmatprep.subr.bf16.mxu1 %v5017_v25  ;;  %v1533_v7 = vrot.slane %v1505_v17, 1  ;;  %v1530_v29 = vrot.slane %v1504_v3, 1  ;;  %v5038_v42 = vld [vmem:[#allocation4 + $0x84] ss:$8 sps:$4 sm:$0xff]   ;;  %v5036_v49 = vld [vmem:[#allocation4 + $0x80] ss:$8 sps:$4 sm:$0xff]  }
 0x5f8   :  { %v5041_v52 = vld [vmem:[#allocation4 + $0x94] ss:$8 sps:$4 sm:$0xff]   ;;  %v5039_v50 = vld [vmem:[#allocation4 + $0x90] ss:$8 sps:$4 sm:$0xff]   ;;  %v5044_v59 = vld [vmem:[#allocation4 + $0xa4] ss:$8 sps:$4 sm:$0xff]  }
 0x5f9   :  { %v5042_v56 = vld [vmem:[#allocation4 + $0xa0] ss:$8 sps:$4 sm:$0xff]   ;;  %v5047_v57 = vld [vmem:[#allocation4 + $0xb4] ss:$8 sps:$4 sm:$0xff]   ;;  %v5045_v61 = vld [vmem:[#allocation4 + $0xb0] ss:$8 sps:$4 sm:$0xff]  }
 0x5fa   :  { %1961 = vmatpush1.bf16.msra.mxu1 %v5015_v2  ;;  %v6114_v6 = vld [vmem:[#allocation2 + $0x48] sm:$0xff]  ;;  %v6116_v10 = vld [vmem:[#allocation2 + $0x40] sm:$0xff]  ;;  %v5053_v46 = vld [vmem:[#allocation4 + $0xd4] ss:$8 sps:$4 sm:$0xff]   ;;  %v2032_v25 = vrot.slane %v6064_v53, 2 }
 0x5fb   :  { %v1507_v22 = vld [vmem:[#allocation2 + $0x58] sm:$0x1]  ;;  %1962 = vmatprep.subr.bf16.mxu1 %v5020_v9  ;;  %v1534_v5 = vrot.slane %v6114_v6, 1  ;;  %v1506_v23 = vld [vmem:[#allocation2 + $0x50] sm:$0x1]  ;;  %v1531_v11 = vrot.slane %v6116_v10, 1 }
 0x5fc   :  { %v1538_v13 = vrot.slane %v1507_v22, 1  ;;  %v1536_v20 = vrot.slane %v1506_v23, 1  ;;  %v5050_v62 = vld [vmem:[#allocation4 + $0xc4] ss:$8 sps:$4 sm:$0xff]   ;;  %v5048_v41 = vld [vmem:[#allocation4 + $0xc0] ss:$8 sps:$4 sm:$0xff]  }
 0x5fd   :  { %v1535_v24 = vsel %vm980_vm6, %v1533_v7, %v1534_v5  ;;  %v1532_v27 = vsel %vm980_vm6, %v1530_v29, %v1531_v11  ;;  %v5051_v40 = vld [vmem:[#allocation4 + $0xd0] ss:$8 sps:$4 sm:$0xff]   ;;  %v5056_v45 = vld [vmem:[#allocation4 + $0xe4] ss:$8 sps:$4 sm:$0xff]   ;;  %v5054_v58 = vld [vmem:[#allocation4 + $0xe0] ss:$8 sps:$4 sm:$0xff]  }
 0x5fe   :  { %v1539_v28 = vsel %vm980_vm6, %v1534_v5, %v1538_v13  ;;  %1963 = vmatpush1.bf16.msra.mxu1 %v5018_v4  ;;  %v1537_v32 = vsel %vm980_vm6, %v1531_v11, %v1536_v20  ;;  %v5059_v1 = vld [vmem:[#allocation4 + $0xf4] ss:$8 sps:$4 sm:$0xff]   ;;  %v5057_v63 = vld [vmem:[#allocation4 + $0xf0] ss:$8 sps:$4 sm:$0xff]   ;;  %v5062_v8 = vld [vmem:[#allocation4 + $0x204] ss:$8 sps:$4 sm:$0xff]  }
 0x5ff   :  { %v1551_v33 = vpack.c.bf16 %v1539_v28, %v1535_v24  ;;  %1964 = vmatprep.subr.bf16.mxu1 %v5023_v14  ;;  %v1550_v37 = vpack.c.bf16 %v1537_v32, %v1532_v27  ;;  %v1456_v12 = vld [vmem:[#allocation2] sm:$0xff]  ;;  %v2014_v30 = vld [vmem:[#allocation2 + $0x28] sm:$0x3]  ;;  %v1461_v16 = vld [vmem:[#allocation2 + $0x38] sm:$0xff] }
 0x600   :  { %v5060_v51 = vld [vmem:[#allocation4 + $0x200] ss:$8 sps:$4 sm:$0xff]   ;;  %v1464_v55 = vpack.c.bf16 %v6072_v44, %v1456_v12  ;;  %v5065_v26 = vld [vmem:[#allocation4 + $0x214] ss:$8 sps:$4 sm:$0xff]   ;;  %v1467_v60 = vpack.c.bf16 %v6114_v6, %v1461_v16  ;;  %v2036_v2 = vrot.slane %v2014_v30, 2 }
 0x601   :  { %1787 = vmatprep.mubr.bf16.mxu1 %v1551_v33  ;;  %v2012_v15 = vld [vmem:[#allocation2 + $0x8] sm:$0xfc]  ;;  %v5063_v9 = vld [vmem:[#allocation4 + $0x210] ss:$8 sps:$4 sm:$0xff]   ;;  %v5071_v13 = vld [vmem:[#allocation4 + $0x234] ss:$8 sps:$4 sm:$0xff]  }
 0x602   :  { %1788 = vmatmul.mubr.bf16.gmra.mrb[4].mxu1 %v1550_v37  ;;  %v5068_v17 = vld [vmem:[#allocation4 + $0x224] ss:$8 sps:$4 sm:$0xff]   ;;  %v2031_v3 = vrot.slane %v2012_v15, 2  ;;  %v2037_v14 = vsel %vm2027_vm7, %v2032_v25, %v2036_v2  ;;  %v1460_v22 = vld [vmem:[#allocation2 + $0x30] sm:$0xff]  ;;  %v5066_v7 = vld [vmem:[#allocation4 + $0x220] ss:$8 sps:$4 sm:$0xff]  }
 0x603   :  { %1965 = vmatpush1.bf16.msra.mxu1 %v5021_v0  ;;  %1990 = vmatprep.mubr.bf16.mxu1 %v1465_v36  ;;  %v1466_v5 = vpack.c.bf16 %v6116_v10, %v1460_v22  ;;  %v5069_v23 = vld [vmem:[#allocation4 + $0x230] ss:$8 sps:$4 sm:$0xff]   ;;  %v5074_v29 = vld [vmem:[#allocation4 + $0x244] ss:$8 sps:$4 sm:$0xff]   ;;  %v5072_v11 = vld [vmem:[#allocation4 + $0x240] ss:$8 sps:$4 sm:$0xff]  }
 0x604   :  { %1966 = vmatprep.subr.bf16.mxu1 %v5026_v31  ;;  %v2033_v4 = vsel %vm2027_vm7, %v2031_v3, %v2032_v25  ;;  %v5077_v20 = vld [vmem:[#allocation4 + $0x254] ss:$8 sps:$4 sm:$0xff]   ;;  %v5075_v24 = vld [vmem:[#allocation4 + $0x250] ss:$8 sps:$4 sm:$0xff]   ;;  %v5080_v28 = vld [vmem:[#allocation4 + $0x264] ss:$8 sps:$4 sm:$0xff]  }
 0x605   :  { %v2057_v53 = vpack.c.bf16 %v2037_v14, %v2033_v4  ;;  %v5078_v27 = vld [vmem:[#allocation4 + $0x260] ss:$8 sps:$4 sm:$0xff]   ;;  %v5083_v0 = vld [vmem:[#allocation4 + $0x274] ss:$8 sps:$4 sm:$0xff]   ;;  %v5081_v33 = vld [vmem:[#allocation4 + $0x270] ss:$8 sps:$4 sm:$0xff]  }
 0x606   :  { %v5086_v32 = vld [vmem:[#allocation4 + $0x284] ss:$8 sps:$4 sm:$0xff]   ;;  %v5084_v31 = vld [vmem:[#allocation4 + $0x280] ss:$8 sps:$4 sm:$0xff]   ;;  %v5089_v37 = vld [vmem:[#allocation4 + $0x294] ss:$8 sps:$4 sm:$0xff]  }
 0x607   :  { %1967 = vmatpush1.bf16.msra.mxu1 %v5024_v48  ;;  %v5087_v38 = vld [vmem:[#allocation4 + $0x290] ss:$8 sps:$4 sm:$0xff]   ;;  %v5092_v36 = vld [vmem:[#allocation4 + $0x2a4] ss:$8 sps:$4 sm:$0xff]   ;;  %v5090_v48 = vld [vmem:[#allocation4 + $0x2a0] ss:$8 sps:$4 sm:$0xff]  }
 0x608   :  { %1968 = vmatprep.subr.bf16.mxu1 %v5029_v54  ;;  %v5095_v54 = vld [vmem:[#allocation4 + $0x2b4] ss:$8 sps:$4 sm:$0xff]  }
 0x609   :  { %v2015_v30 = vld [vmem:[#allocation2 + $0x30] sm:$0xfc] }
 0x60b   :  { %1969 = vmatpush1.bf16.msra.mxu1 %v5027_v47  ;;  %v5093_v47 = vld [vmem:[#allocation4 + $0x2b0] ss:$8 sps:$4 sm:$0xff]  }
 0x60c   :  { %1970 = vmatprep.subr.bf16.mxu1 %v5032_v34  ;;  %v5098_v34 = vld [vmem:[#allocation4 + $0x2c4] ss:$8 sps:$4 sm:$0xff]  }
 0x60f   :  { %1971 = vmatpush1.bf16.msra.mxu1 %v5030_v35  ;;  %v5096_v35 = vld [vmem:[#allocation4 + $0x2c0] ss:$8 sps:$4 sm:$0xff]  }
 0x610   :  { %1972 = vmatprep.subr.bf16.mxu1 %v5035_v39  ;;  %v5101_v39 = vld [vmem:[#allocation4 + $0x2d4] ss:$8 sps:$4 sm:$0xff]  }
 0x613   :  { %1973 = vmatpush1.bf16.msra.mxu1 %v5033_v43  ;;  %v5099_v43 = vld [vmem:[#allocation4 + $0x2d0] ss:$8 sps:$4 sm:$0xff]  }
 0x614   :  { %1974 = vmatprep.subr.bf16.mxu1 %v5038_v42  ;;  %v5104_v42 = vld [vmem:[#allocation4 + $0x2e4] ss:$8 sps:$4 sm:$0xff]  }
 0x617   :  { %1975 = vmatpush1.bf16.msra.mxu1 %v5036_v49  ;;  %v2013_v49 = vld [vmem:[#allocation2 + $0x20] sm:$0x3] }
 0x618   :  { %1976 = vmatprep.subr.bf16.mxu1 %v5041_v52  ;;  %v5102_v52 = vld [vmem:[#allocation4 + $0x2e0] ss:$8 sps:$4 sm:$0xff]  }
 0x61b   :  { %1977 = vmatpush1.bf16.msra.mxu1 %v5039_v50  ;;  %v2018_v50 = vld [vmem:[#allocation2 + $0x58] sm:$0x3] }
 0x61c   :  { %1978 = vmatprep.subr.bf16.mxu1 %v5044_v59  ;;  %v5107_v59 = vld [vmem:[#allocation4 + $0x2f4] ss:$8 sps:$4 sm:$0xff]  }
 0x61f   :  { %1979 = vmatpush1.bf16.msra.mxu1 %v5042_v56  ;;  %v2011_v56 = vld [vmem:[#allocation2] sm:$0xfc] }
 0x620   :  { %1980 = vmatprep.subr.bf16.mxu1 %v5047_v57  ;;  %v2029_v57 = vrot.slane %v6072_v44, 2 }
 0x623   :  { %1981 = vmatpush1.bf16.msra.mxu1 %v5045_v61  ;;  %v2034_v61 = vrot.slane %v2013_v49, 2 }
 0x624   :  { %1982 = vmatprep.subr.bf16.mxu1 %v5050_v62  ;;  %v2016_v62 = vld [vmem:[#allocation2 + $0x38] sm:$0xfc] }
 0x627   :  { %1983 = vmatpush1.bf16.msra.mxu1 %v5048_v41  ;;  %v2042_v41 = vrot.slane %v6114_v6, 2  ;;  %v2039_v6 = vrot.slane %v6116_v10, 2 }
 0x628   :  { %1984 = vmatprep.subr.bf16.mxu1 %v5053_v46  ;;  %v2046_v46 = vrot.slane %v2018_v50, 2 }
 0x62a   :  { %v2047_v12 = vsel %vm2027_vm7, %v2042_v41, %v2046_v46 }
 0x62b   :  { %1985 = vmatpush1.bf16.msra.mxu1 %v5051_v40  ;;  %v5105_v40 = vld [vmem:[#allocation4 + $0x2f0] ss:$8 sps:$4 sm:$0xff]  }
 0x62c   :  { %1986 = vmatprep.subr.bf16.mxu1 %v5056_v45  ;;  %v2028_v45 = vrot.slane %v2011_v56, 2 }
 0x62f   :  { %1987 = vmatpush1.bf16.msra.mxu1 %v5054_v58  ;;  %v2041_v58 = vrot.slane %v2016_v62, 2 }
 0x630   :  { %1988 = vmatprep.subr.bf16.mxu1 %v5059_v1  ;;  %v2030_v1 = vsel %vm2027_vm7, %v2028_v45, %v2029_v57 }
 0x633   :  { %1989 = vmatpush1.bf16.msra.mxu1 %v5057_v63  ;;  %v2035_v63 = vsel %vm2027_vm7, %v2029_v57, %v2034_v61 }
 0x634   :  { %2253 = vmatprep.subr.bf16.mxu1 %v5062_v8  ;;  %v2043_v8 = vsel %vm2027_vm7, %v2041_v58, %v2042_v41  ;;  %v2056_v44 = vpack.c.bf16 %v2035_v63, %v2030_v1 }
 0x636   :  { %1991 = vmatmul.mubr.bf16.vlgmr.msra.gmra.mrb[0].mxu1 %v1464_v55  ;;  %v2059_v55 = vpack.c.bf16 %v2047_v12, %v2043_v8 }
 0x637   :  { %2000 = vmatprep.mubr.bf16.mxu1 %v1467_v60  ;;  %2254 = vmatpush1.bf16.msra.mxu1 %v5060_v51  ;;  %v2017_v51 = vld [vmem:[#allocation2 + $0x50] sm:$0x3] }
 0x638   :  { %2255 = vmatprep.subr.bf16.mxu1 %v5065_v26  ;;  %v2044_v16 = vrot.slane %v2017_v51, 2  ;;  %v2038_v26 = vrot.slane %v2015_v30, 2 }
 0x63a   :  { %v2040_v60 = vsel %vm2027_vm7, %v2038_v26, %v2039_v6  ;;  %v2045_v15 = vsel %vm2027_vm7, %v2039_v6, %v2044_v16 }
 0x63b   :  { %2256 = vmatpush1.bf16.msra.mxu1 %v5063_v9  ;;  %v2058_v25 = vpack.c.bf16 %v2045_v15, %v2040_v60 }
 0x63c   :  { %2257 = vmatprep.subr.bf16.mxu1 %v5068_v17 }
 0x63e   :  { %2001 = vmatmul.mubr.bf16.gmra.mrb[4].mxu1 %v1466_v5 }
 0x63f   :  { %2258 = vmatpush1.bf16.msra.mxu1 %v5066_v7  ;;  %2285 = vmatprep.mubr.bf16.mxu1 %v2057_v53 }
 0x640   :  { %2259 = vmatprep.subr.bf16.mxu1 %v5071_v13 }
 0x643   :  { %2260 = vmatpush1.bf16.msra.mxu1 %v5069_v23 }
 0x644   :  { %2261 = vmatprep.subr.bf16.mxu1 %v5074_v29 }
 0x647   :  { %2262 = vmatpush1.bf16.msra.mxu1 %v5072_v11 }
 0x648   :  { %2263 = vmatprep.subr.bf16.mxu1 %v5077_v20 }
 0x64b   :  { %2264 = vmatpush1.bf16.msra.mxu1 %v5075_v24 }
 0x64c   :  { %2265 = vmatprep.subr.bf16.mxu1 %v5080_v28 }
 0x64f   :  { %2266 = vmatpush1.bf16.msra.mxu1 %v5078_v27 }
 0x650   :  { %2267 = vmatprep.subr.bf16.mxu1 %v5083_v0 }
 0x653   :  { %2268 = vmatpush1.bf16.msra.mxu1 %v5081_v33 }
 0x654   :  { %2269 = vmatprep.subr.bf16.mxu1 %v5086_v32 }
 0x657   :  { %2270 = vmatpush1.bf16.msra.mxu1 %v5084_v31 }
 0x658   :  { %2271 = vmatprep.subr.bf16.mxu1 %v5089_v37 }
 0x65b   :  { %2272 = vmatpush1.bf16.msra.mxu1 %v5087_v38 }
 0x65c   :  { %2273 = vmatprep.subr.bf16.mxu1 %v5092_v36 }
 0x65f   :  { %2274 = vmatpush1.bf16.msra.mxu1 %v5090_v48 }
 0x660   :  { %2275 = vmatprep.subr.bf16.mxu1 %v5095_v54 }
 0x663   :  { %2276 = vmatpush1.bf16.msra.mxu1 %v5093_v47 }
 0x664   :  { %2277 = vmatprep.subr.bf16.mxu1 %v5098_v34 }
 0x667   :  { %2278 = vmatpush1.bf16.msra.mxu1 %v5096_v35 }
 0x668   :  { %2279 = vmatprep.subr.bf16.mxu1 %v5101_v39 }
 0x66b   :  { %2280 = vmatpush1.bf16.msra.mxu1 %v5099_v43 }
 0x66c   :  { %2281 = vmatprep.subr.bf16.mxu1 %v5104_v42 }
 0x66f   :  { %2282 = vmatpush1.bf16.msra.mxu1 %v5102_v52 }
 0x670   :  { %2283 = vmatprep.subr.bf16.mxu1 %v5107_v59 }
 0x673   :  { %2284 = vmatpush1.bf16.msra.mxu1 %v5105_v40 }
 0x676   :  { %2286 = vmatmul.mubr.bf16.vlgmr.msra.gmra.mrb[0].mxu1 %v2056_v44 }
 0x677   :  { %2295 = vmatprep.mubr.bf16.mxu1 %v2059_v55 }
 0x67e   :  { %2296 = vmatmul.mubr.bf16.gmra.mrb[4].mxu1 %v2058_v25 }
 0x749   :  { %v6140_v2 = vpop.f32.mrb[0].mxu1 }
 0x74a   :  { %v6142_v9 = vpop.f32.mrb[1].mxu1  ;;  %v2332_v3 = vmul.f32 %v6140_v2, %v6140_v2 }
 0x74b   :  { %v6144_v17 = vpop.f32.mrb[2].mxu1  ;;  %v2333_v22 = vmul.f32 %v6142_v9, %v6142_v9 }
 0x74c   :  { %v2314_v10 = vadd.f32 %v6144_v17, %v6140_v2  ;;  %v2334_v4 = vmul.f32 %v6144_v17, %v6144_v17  ;;  %v6152_v14 = vpop.f32.mrb[3].mxu1 }
 0x74d   :  { %v2323_v7 = vadd.f32 %v6152_v14, %v6142_v9  ;;  %v2335_v5 = vmul.f32 %v6152_v14, %v6152_v14 }
 0x74e   :  { %v2340_v13 = vadd.f32 %v2334_v4, %v2332_v3 }
 0x74f   :  { %v2349_v53 = vadd.f32 %v2335_v5, %v2333_v22 }
 0x751   :  { %v6160_v23 = vpop.f32.mrb[4].mxu1 }
 0x752   :  { %v2315_v29 = vadd.f32 %v2314_v10, %v6160_v23  ;;  %v2336_v11 = vmul.f32 %v6160_v23, %v6160_v23  ;;  %v6165_v20 = vpop.f32.mrb[5].mxu1 }
 0x753   :  { %v2324_v24 = vadd.f32 %v2323_v7, %v6165_v20  ;;  %v2337_v28 = vmul.f32 %v6165_v20, %v6165_v20  ;;  %v6170_v27 = vpop.f32.mrb[6].mxu1 }
 0x754   :  { %v2341_v0 = vadd.f32 %v2340_v13, %v2336_v11  ;;  %v2316_v33 = vadd.f32 %v2315_v29, %v6170_v27  ;;  %v2338_v32 = vmul.f32 %v6170_v27, %v6170_v27  ;;  %v6175_v31 = vpop.f32.mrb[7].mxu1 }
 0x755   :  { %v2350_v37 = vadd.f32 %v2349_v53, %v2337_v28  ;;  %v2325_v38 = vadd.f32 %v2324_v24, %v6175_v31  ;;  %v2339_v36 = vmul.f32 %v6175_v31, %v6175_v31  ;;  %v2395_v28 = vld [vmem:[%s6783_s5] sm:$0x1] }
 0x756   :  { %v2317_v48 = vrot.slane %v2316_v33, 4  ;;  %v2342_v54 = vadd.f32 %v2341_v0, %v2338_v32  ;;  %v2399_v32 = vld [vmem:[%s6784_s6] sm:$0x1] }
 0x757   :  { %v2326_v47 = vrot.slane %v2325_v38, 4  ;;  %v2351_v34 = vadd.f32 %v2350_v37, %v2339_v36 }
 0x758   :  { %v2318_v35 = vadd.f32 %v2317_v48, %v2316_v33  ;;  %v2343_v39 = vrot.slane %v2342_v54, 4 }
 0x759   :  { %v2327_v43 = vadd.f32 %v2326_v47, %v2325_v38  ;;  %v2352_v42 = vrot.slane %v2351_v34, 4 }
 0x75a   :  { %v2319_v49 = vrot.slane %v2318_v35, 2  ;;  %v2344_v52 = vadd.f32 %v2343_v39, %v2342_v54 }
 0x75b   :  { %v2328_v50 = vrot.slane %v2327_v43, 2  ;;  %v2353_v59 = vadd.f32 %v2352_v42, %v2351_v34 }
 0x75c   :  { %v2320_v56 = vadd.f32 %v2319_v49, %v2318_v35  ;;  %v2345_v57 = vrot.slane %v2344_v52, 2 }
 0x75d   :  { %v2329_v61 = vadd.f32 %v2328_v50, %v2327_v43  ;;  %v2354_v62 = vrot.slane %v2353_v59, 2 }
 0x75e   :  { %v2321_v41 = vrot.slane %v2320_v56, 1  ;;  %v2346_v46 = vadd.f32 %v2345_v57, %v2344_v52 }
 0x75f   :  { %v2330_v40 = vrot.slane %v2329_v61, 1  ;;  %v2355_v45 = vadd.f32 %v2354_v62, %v2353_v59 }
 0x760   :  { %v2322_v58 = vadd.f32 %v2321_v41, %v2320_v56  ;;  %v2347_v1 = vrot.slane %v2346_v46, 1 }
 0x761   :  { %v2331_v63 = vadd.f32 %v2330_v40, %v2329_v61  ;;  %v2356_v8 = vrot.slane %v2355_v45, 1 }
 0x762   :  { %v2348_v12 = vadd.f32 %v2347_v1, %v2346_v46 }
 0x763   :  { %v2358_v51 = vadd.f32 %v2331_v63, %v2322_v58  ;;  %v2357_v44 = vadd.f32 %v2356_v8, %v2355_v45 }
 0x765   :  { %2360 = vrot.lane.b32.xlu0 %v2358_v51, %s5328_s4  ;;  %v2375_v30 = vadd.f32 %v2357_v44, %v2348_v12  ;;  %v5108_v44 = vld [vmem:[%s6785_s7 + $0x240] sm:$0xff]  }
 0x766   :  { %4710 = vmatprep.subr.bf16.mxu1 %v5108_v44 }
 0x767   :  { %2377 = vrot.lane.b32.xlu1 %v2375_v30, %s5328_s4 }
 0x7d7   :  { %v2361_v55 = vpop.permute.xlu0 %2360 }
 0x7d8   :  { %v2363_v6 = vadd.f32 %v2361_v55, %v2358_v51  ;;  %v5110_v55 = vld [vmem:[%s6785_s7 + $0x200] sm:$0xff]  }
 0x7d9   :  { %v2378_v16 = vpop.permute.xlu1 %2377  ;;  %4711 = vmatpush3.bf16.msra.mxu1 %v5110_v55 }
 0x7da   :  { %v2380_v26 = vadd.f32 %v2378_v16, %v2375_v30  ;;  %2365 = vrot.lane.b32.xlu0 %v2363_v6, %s5331_s0  ;;  %v5109_v30 = vld [vmem:[%s6785_s7 + $0x40] sm:$0xff]  }
 0x7db   :  { %4622 = vmatprep.subr.bf16.mxu0 %v5109_v30 }
 0x7dc   :  { %2382 = vrot.lane.b32.xlu1 %v2380_v26, %s5331_s0 }
 0x84c   :  { %v2366_v60 = vpop.permute.xlu0 %2365 }
 0x84d   :  { %v2368_v15 = vadd.f32 %v2366_v60, %v2363_v6  ;;  %v5112_v60 = vld [vmem:[%s6785_s7 + $0x248] sm:$0xff]  }
 0x84e   :  { %v2383_v25 = vpop.permute.xlu1 %2382  ;;  %4712 = vmatprep.subr.bf16.mxu1 %v5112_v60 }
 0x84f   :  { %v2385_v3 = vadd.f32 %v2383_v25, %v2380_v26  ;;  %2370 = vrot.lane.b32.xlu0 %v2368_v15, %s5332_s16  ;;  %v5114_v25 = vld [vmem:[%s6785_s7 + $0x208] sm:$0xff]  }
 0x850   :  { %4713 = vmatpush3.bf16.msra.mxu1 %v5114_v25 }
 0x851   :  { %2387 = vrot.lane.b32.xlu1 %v2385_v3, %s5332_s16 }
 0x8c1   :  { %v2371_v10 = vpop.permute.xlu0 %2370 }
 0x8c2   :  { %v2373_v4 = vadd.f32 %v2371_v10, %v2368_v15  ;;  %v5113_v15 = vld [vmem:[%s6785_s7 + $0x48] sm:$0xff]  }
 0x8c3   :  { %v2388_v22 = vpop.permute.xlu1 %2387 }
 0x8c4   :  { %v2374_v7 = vmul.f32 0.001953125, %v2373_v4  ;;  %v2390_v5 = vadd.f32 %v2388_v22, %v2385_v3  ;;  %v5115_v4 = vld [vmem:[%s6785_s7 + $0x8] sm:$0xff]   ;;  %v5116_v22 = vld [vmem:[%s6785_s7 + $0x250] sm:$0xff]  }
 0x8c5   :  { %4714 = vmatprep.subr.bf16.mxu1 %v5116_v22 }
 0x8c6   :  { %v2392_v13 = vmul.f32 %v2374_v7, %v2374_v7  ;;  %v2391_v53 = vmul.f32 0.001953125, %v2390_v5  ;;  %v5118_v5 = vld [vmem:[%s6785_s7 + $0x210] sm:$0xff]  }
 0x8c7   :  { %4715 = vmatpush3.bf16.msra.mxu1 %v5118_v5 }
 0x8c8   :  { %v2393_v29 = vsub.f32 %v2391_v53, %v2392_v13  ;;  %v5119_v13 = vld [vmem:[%s6785_s7 + $0x10] sm:$0xff]   ;;  %v5120_v53 = vld [vmem:[%s6785_s7 + $0x258] sm:$0xff]  }
 0x8c9   :  { %4716 = vmatprep.subr.bf16.mxu1 %v5120_v53 }
 0x8ca   :  { %v2394_v11 = vmax.f32 %v2393_v29, 0.0  ;;  %v5121_v29 = vld [vmem:[%s6785_s7 + $0x58] sm:$0xff]  }
 0x8cc   :  { %v2396_v24 = vadd.f32 1e-05, %v2394_v11  ;;  %v5122_v11 = vld [vmem:[%s6785_s7 + $0x218] sm:$0xff]  }
 0x8cd   :  { %4717 = vmatpush3.bf16.msra.mxu1 %v5122_v11 }
 0x8ce   :  { %5250 = vrsqrt.f32 %v2396_v24  ;;  %v5123_v24 = vld [vmem:[%s6785_s7 + $0x18] sm:$0xff]  }
 0x8d8   :  { %v5251_v0 = vpop.eup %5250 }
 0x8d9   :  { %v2398_v33 = vmul.f32 %v5251_v0, %v2395_v28  ;;  %v5124_v28 = vld [vmem:[%s6785_s7 + $0x260] sm:$0xff]  }
 0x8da   :  { %v5125_v0 = vld [vmem:[%s6785_s7 + $0x60] sm:$0xff]   ;;  %4718 = vmatprep.subr.bf16.mxu1 %v5124_v28 }
 0x8db   :  { %v2406_v37 = vrot.slane %v2398_v33, %v5751_v21  ;;  %v2400_v38 = vmul.f32 %v2398_v33, %v2374_v7  ;;  %v5117_v7 = vld [vmem:[%s6785_s7 + $0x50] sm:$0xff]  }
 0x8dd   :  { %2407 = vrot.lane.b32.xlu0 %v2406_v37, %s5334_s2  ;;  %v2401_v36 = vsub.f32 %v2399_v32, %v2400_v38  ;;  %v5127_v32 = vld [vmem:[%s6785_s7 + $0x20] sm:$0xff]   ;;  %v5128_v37 = vld [vmem:[%s6785_s7 + $0x268] sm:$0xff]  }
 0x8de   :  { %v5129_v38 = vld [vmem:[%s6785_s7 + $0x68] sm:$0xff]  }
 0x8df   :  { %v2437_v48 = vrot.slane %v2401_v36, %v5751_v21 }
 0x8e1   :  { %2438 = vrot.lane.b32.xlu1 %v2437_v48, %s5334_s2  ;;  %v5132_v48 = vld [vmem:[%s6785_s7 + $0x270] sm:$0xff]  }
 0x94f   :  { %v2408_v54 = vpop.permute.xlu0 %2407 }
 0x950   :  { %v2410_v47 = vsel %vm765_vm1, %v2398_v33, %v2408_v54  ;;  %v5126_v33 = vld [vmem:[%s6785_s7 + $0x220] sm:$0xff]   ;;  %v5131_v54 = vld [vmem:[%s6785_s7 + $0x28] sm:$0xff]  }
 0x951   :  { %2412 = vrot.lane.b32.xlu0 %v2410_v47, %s5335_s3  ;;  %4719 = vmatpush3.bf16.msra.mxu1 %v5126_v33 }
 0x952   :  { %4720 = vmatprep.subr.bf16.mxu1 %v5128_v37 }
 0x953   :  { %v2439_v34 = vpop.permute.xlu1 %2438 }
 0x954   :  { %v2441_v35 = vsel %vm765_vm1, %v2401_v36, %v2439_v34  ;;  %v5130_v36 = vld [vmem:[%s6785_s7 + $0x228] sm:$0xff]   ;;  %v5134_v34 = vld [vmem:[%s6785_s7 + $0x230] sm:$0xff]  }
 0x955   :  { %2443 = vrot.lane.b32.xlu1 %v2441_v35, %s5335_s3  ;;  %4721 = vmatpush3.bf16.msra.mxu1 %v5130_v36 }
 0x956   :  { %4722 = vmatprep.subr.bf16.mxu1 %v5132_v48 }
 0x959   :  { %4723 = vmatpush3.bf16.msra.mxu1 %v5134_v34 }
 0x9c3   :  { %v2413_v39 = vpop.permute.xlu0 %2412 }
 0x9c4   :  { %v2415_v43 = vsel %vm771_vm2, %v2410_v47, %v2413_v39  ;;  %v5133_v47 = vld [vmem:[%s6785_s7 + $0x70] sm:$0xff]  }
 0x9c5   :  { %2417 = vrot.lane.b32.xlu0 %v2415_v43, %s5328_s4  ;;  %v5135_v39 = vld [vmem:[%s6785_s7 + $0x30] sm:$0xff]  }
 0x9c7   :  { %v2444_v42 = vpop.permute.xlu1 %2443 }
 0x9c8   :  { %v2446_v49 = vsel %vm771_vm2, %v2441_v35, %v2444_v42  ;;  %v5136_v35 = vld [vmem:[%s6785_s7 + $0x278] sm:$0xff]  }
 0x9c9   :  { %2448 = vrot.lane.b32.xlu1 %v2446_v49, %s5328_s4  ;;  %v5138_v42 = vld [vmem:[%s6785_s7 + $0x238] sm:$0xff]   ;;  %4724 = vmatprep.subr.bf16.mxu1 %v5136_v35 }
 0x9ca   :  { %4725 = vmatpush3.bf16.msra.mxu1 %v5138_v42 }
 0xa37   :  { %v2418_v52 = vpop.permute.xlu0 %2417 }
 0xa38   :  { %v2420_v50 = vsel %vm777_vm3, %v2415_v43, %v2418_v52  ;;  %v5137_v43 = vld [vmem:[%s6785_s7 + $0x78] sm:$0xff]   ;;  %v5140_v52 = vld [vmem:[%s6785_s7 + $0x340] sm:$0xff]  }
 0xa39   :  { %v2424_v59 = vrot.slane %v2420_v50, %v5751_v21  ;;  %v5141_v50 = vld [vmem:[%s6785_s7 + $0xc0] sm:$0xff]   ;;  %4754 = vmatprep.subr.bf16.mxu1 %v5140_v52 }
 0xa3b   :  { %v2449_v56 = vpop.permute.xlu1 %2448  ;;  %v2430_v62 = vmul.f32 %v2424_v59, %v6165_v20  ;;  %v2429_v41 = vmul.f32 %v2424_v59, %v6160_v23  ;;  %v2432_v45 = vmul.f32 %v2424_v59, %v6175_v31  ;;  %v2431_v58 = vmul.f32 %v2424_v59, %v6170_v27 }
 0xa3c   :  { %v2451_v57 = vsel %vm777_vm3, %v2446_v49, %v2449_v56  ;;  %v2425_v23 = vmul.f32 %v2424_v59, %v6140_v2  ;;  %v2427_v2 = vmul.f32 %v2424_v59, %v6144_v17  ;;  %v5111_v17 = vld [vmem:[%s6785_s7] sm:$0xff]   ;;  %v5139_v49 = vld [vmem:[%s6785_s7 + $0x38] sm:$0xff]  }
 0xa3d   :  { %v2455_v61 = vrot.slane %v2451_v57, %v5751_v21  ;;  %v2426_v21 = vmul.f32 %v2424_v59, %v6142_v9  ;;  %v2428_v9 = vmul.f32 %v2424_v59, %v6152_v14  ;;  %4623 = vmatpush3.bf16.msra.mxu0 %v5111_v17  ;;  %v5338_v57 = vmov 1983009808  }
 0xa3e   :  { %4624 = vmatprep.subr.bf16.mxu0 %v5113_v15 }
 0xa3f   :  { %v6210_v46 = vadd.f32 %v2455_v61, %v2430_v62  ;;  %v6212_v40 = vadd.f32 %v2455_v61, %v2429_v41  ;;  %v6218_v8 = vadd.f32 %v2455_v61, %v2432_v45  ;;  %v6220_v12 = vadd.f32 %v2455_v61, %v2431_v58 }
 0xa40   :  { %v6232_v31 = vadd.f32 %v2455_v61, %v2426_v21  ;;  %v6234_v51 = vadd.f32 %v2455_v61, %v2425_v23  ;;  %v6255_v26 = vadd.f32 %v2455_v61, %v2428_v9  ;;  %v6257_v14 = vadd.f32 %v2455_v61, %v2427_v2 }
 0xa41   :  { %v2469_v1 = vmax.f32 %v6210_v46, 0.0  ;;  %v2468_v63 = vmax.f32 %v6212_v40, 0.0  ;;  %v2471_v20 = vmax.f32 %v6218_v8, 0.0  ;;  %v2470_v27 = vmax.f32 %v6220_v12, 0.0  ;;  %4625 = vmatpush3.bf16.msra.mxu0 %v5115_v4 }
 0xa42   :  { %v2465_v6 = vmax.f32 %v6232_v31, 0.0  ;;  %v2464_v16 = vmax.f32 %v6234_v51, 0.0  ;;  %v2467_v3 = vmax.f32 %v6255_v26, 0.0  ;;  %v2466_v10 = vmax.f32 %v6257_v14, 0.0  ;;  %4626 = vmatprep.subr.bf16.mxu0 %v5117_v7 }
 0xa43   :  { %2490 = vrot.lane.b32.xlu1 %v2469_v1, %s5332_s16  ;;  %2488 = vrot.lane.b32.xlu0 %v2468_v63, %s5332_s16  ;;  %v2567_v61 = vunpack.c.l.s4 %v5338_v57 }
 0xa45   :  { %4627 = vmatpush3.bf16.msra.mxu0 %v5119_v13  ;;  %v2568_v9 = vunpack.c.0.s8 %v2567_v61 }
 0xa46   :  { %4628 = vmatprep.subr.bf16.mxu0 %v5121_v29 }
 0xa47   :  { %2494 = vrot.lane.b32.xlu1 %v2471_v20, %s5332_s16  ;;  %2492 = vrot.lane.b32.xlu0 %v2470_v27, %s5332_s16 }
 0xa49   :  { %4629 = vmatpush3.bf16.msra.mxu0 %v5123_v24 }
 0xa4a   :  { %4630 = vmatprep.subr.bf16.mxu0 %v5125_v0 }
 0xa4b   :  { %2482 = vrot.lane.b32.xlu1 %v2465_v6, %s5332_s16  ;;  %2480 = vrot.lane.b32.xlu0 %v2464_v16, %s5332_s16 }
 0xa4d   :  { %4631 = vmatpush3.bf16.msra.mxu0 %v5127_v32 }
 0xa4e   :  { %4632 = vmatprep.subr.bf16.mxu0 %v5129_v38 }
 0xa4f   :  { %2486 = vrot.lane.b32.xlu1 %v2467_v3, %s5332_s16  ;;  %2484 = vrot.lane.b32.xlu0 %v2466_v10, %s5332_s16 }
 0xa51   :  { %4633 = vmatpush3.bf16.msra.mxu0 %v5131_v54 }
 0xa52   :  { %4634 = vmatprep.subr.bf16.mxu0 %v5133_v47 }
 0xa55   :  { %4635 = vmatpush3.bf16.msra.mxu0 %v5135_v39 }
 0xa56   :  { %4636 = vmatprep.subr.bf16.mxu0 %v5137_v43 }
 0xa59   :  { %4637 = vmatpush3.bf16.msra.mxu0 %v5139_v49 }
 0xa5a   :  { %4644 = vmatprep.subr.bf16.mxu0 %v5141_v50 }
 0xab5   :  { %v2491_v59 = vpop.permute.xlu1 %2490  ;;  %v2489_v56 = vpop.permute.xlu0 %2488 }
 0xab6   :  { %v2499_v62 = vsel %vm2496_vm8, %v2489_v56, %v2491_v59  ;;  %v2515_v41 = vsel %vm2496_vm8, %v2491_v59, %v2489_v56 }
 0xab7   :  { %v2521_v45 = vmax.f32 %v2468_v63, %v2499_v62  ;;  %v2522_v58 = vmax.f32 %v2469_v1, %v2515_v41  ;;  %v6379_v1 = vsub.s32 %v2568_v9, %v5745_v19 }
 0xab9   :  { %v2495_v21 = vpop.permute.xlu1 %2494  ;;  %v2493_v23 = vpop.permute.xlu0 %2492  ;;  %v2539_v17 = vrot.slane %v2521_v45, 1  ;;  %v2542_v60 = vrot.slane %v2522_v58, 1 }
 0xaba   :  { %v2500_v2 = vsel %vm2496_vm8, %v2493_v23, %v2495_v21  ;;  %v2516_v44 = vsel %vm2496_vm8, %v2495_v21, %v2493_v23 }
 0xabb   :  { %v2523_v30 = vmax.f32 %v2470_v27, %v2500_v2  ;;  %v2524_v55 = vmax.f32 %v2471_v20, %v2516_v44 }
 0xabd   :  { %v2540_v40 = vrot.slane %v2523_v30, 1  ;;  %v2543_v63 = vrot.slane %v2524_v55, 1  ;;  %v2483_v15 = vpop.permute.xlu1 %2482  ;;  %v2481_v46 = vpop.permute.xlu0 %2480 }
 0xabe   :  { %v2497_v8 = vsel %vm2496_vm8, %v2481_v46, %v2483_v15  ;;  %v2513_v20 = vsel %vm2496_vm8, %v2483_v15, %v2481_v46 }
 0xabf   :  { %v2541_v25 = vsel %vm980_vm6, %v2539_v17, %v2540_v40  ;;  %v2544_v4 = vsel %vm980_vm6, %v2542_v60, %v2543_v63  ;;  %v2559_v22 = vmax.f32 %v2523_v30, %v2540_v40  ;;  %v2560_v7 = vmax.f32 %v2524_v55, %v2543_v63 }
 0xac0   :  { %v2557_v12 = vmax.f32 %v2521_v45, %v2541_v25  ;;  %v2558_v27 = vmax.f32 %v2522_v58, %v2544_v4  ;;  %v2517_v19 = vmax.f32 %v2464_v16, %v2497_v8  ;;  %v2518_v28 = vmax.f32 %v2465_v6, %v2513_v20 }
 0xac1   :  { %v2655_v5 = vcombine.low %v2559_v22, %v2560_v7  ;;  %v2691_v13 = vcombine.high %v2559_v22, %v2560_v7  ;;  %v2487_v53 = vpop.permute.xlu1 %2486  ;;  %v2485_v29 = vpop.permute.xlu0 %2484 }
 0xac2   :  { %v2573_v11 = vcombine.low %v2557_v12, %v2558_v27  ;;  %v2615_v24 = vcombine.high %v2557_v12, %v2558_v27  ;;  %v2498_v0 = vsel %vm2496_vm8, %v2485_v29, %v2487_v53  ;;  %v2514_v33 = vsel %vm2496_vm8, %v2487_v53, %v2485_v29 }
 0xac3   :  { %v2662_v32 = vrot.slane %v2655_v5, %v6379_v1  ;;  %v2698_v37 = vrot.slane %v2691_v13, %v6379_v1  ;;  %v2519_v38 = vmax.f32 %v2466_v10, %v2498_v0  ;;  %v2520_v36 = vmax.f32 %v2467_v3, %v2514_v33 }
 0xac4   :  { %v2580_v51 = vrot.slane %v2573_v11, %v6379_v1  ;;  %v2622_v16 = vrot.slane %v2615_v24, %v6379_v1  ;;  %v2533_v31 = vrot.slane %v2517_v19, 1  ;;  %v2536_v6 = vrot.slane %v2518_v28, 1 }
 0xac5   :  { %v2534_v48 = vrot.slane %v2519_v38, 1  ;;  %v2537_v54 = vrot.slane %v2520_v36, 1  ;;  %v2673_v47 = vcombine.high %v2662_v32, %v2662_v32  ;;  %v2709_v34 = vcombine.high %v2698_v37, %v2698_v37 }
 0xac6   :  { %v2597_v35 = vcombine.high %v2580_v51, %v2580_v51  ;;  %v2633_v39 = vcombine.high %v2622_v16, %v2622_v16  ;;  %v2665_v49 = vrot.slane %v2662_v32, 7  ;;  %v2701_v52 = vrot.slane %v2698_v37, 7 }
 0xac7   :  { %v2535_v14 = vsel %vm980_vm6, %v2533_v31, %v2534_v48  ;;  %v2538_v10 = vsel %vm980_vm6, %v2536_v6, %v2537_v54  ;;  %v2555_v26 = vmax.f32 %v2519_v38, %v2534_v48  ;;  %v2556_v3 = vmax.f32 %v2520_v36, %v2537_v54 }
 0xac8   :  { %v2553_v43 = vmax.f32 %v2517_v19, %v2535_v14  ;;  %v2554_v42 = vmax.f32 %v2518_v28, %v2538_v10  ;;  %v2585_v56 = vrot.slane %v2580_v51, 7  ;;  %v2625_v57 = vrot.slane %v2622_v16, 7 }
 0xac9   :  { %v2647_v50 = vcombine.low %v2555_v26, %v2556_v3  ;;  %v2683_v59 = vcombine.high %v2555_v26, %v2556_v3  ;;  %v2676_v41 = vrot.slane %v2673_v47, 7  ;;  %v2712_v45 = vrot.slane %v2709_v34, 7 }
 0xaca   :  { %v2565_v61 = vcombine.low %v2553_v43, %v2554_v42  ;;  %v2607_v62 = vcombine.high %v2553_v43, %v2554_v42  ;;  %v2600_v23 = vrot.slane %v2597_v35, 7  ;;  %v2636_v9 = vrot.slane %v2633_v39, 7 }
 0xacb   :  { %v2654_v58 = vrot.slane %v2647_v50, %v6379_v1  ;;  %v2690_v21 = vrot.slane %v2683_v59, %v6379_v1 }
 0xacc   :  { %v2572_v2 = vrot.slane %v2565_v61, %v6379_v1  ;;  %v2614_v44 = vrot.slane %v2607_v62, %v6379_v1  ;;  %v5142_v61 = vld [vmem:[%s6785_s7 + $0x300] sm:$0xff]  }
 0xacd   :  { %v2666_v30 = vsel %vm2586_vm9, %v2665_v49, %v2654_v58  ;;  %v2672_v55 = vcombine.high %v2654_v58, %v2654_v58  ;;  %v2702_v17 = vsel %vm2586_vm9, %v2701_v52, %v2690_v21  ;;  %v2708_v60 = vcombine.high %v2690_v21, %v2690_v21  ;;  %v5145_v58 = vld [vmem:[%s6785_s7 + $0x348] sm:$0xff]  }
 0xace   :  { %v2587_v40 = vsel %vm2586_vm9, %v2585_v56, %v2572_v2  ;;  %v2596_v63 = vcombine.high %v2572_v2, %v2572_v2  ;;  %v2626_v15 = vsel %vm2586_vm9, %v2625_v57, %v2614_v44  ;;  %v2632_v46 = vcombine.high %v2614_v44, %v2614_v44  ;;  %v5148_v44 = vld [vmem:[%s6785_s7 + $0x88] sm:$0xff]  }
 0xacf   :  { %v2589_v25 = vsel %vm2588_vm10, %v2585_v56, %v2587_v40  ;;  %v2627_v4 = vsel %vm2588_vm10, %v2625_v57, %v2626_v15  ;;  %v2667_v22 = vsel %vm2588_vm10, %v2665_v49, %v2666_v30  ;;  %v2677_v7 = vsel %vm2586_vm9, %v2676_v41, %v2672_v55  ;;  %v5147_v30 = vld [vmem:[%s6785_s7 + $0x308] sm:$0xff]   ;;  %v5150_v55 = vld [vmem:[%s6785_s7 + $0xd0] sm:$0xff]   ;;  %v5154_v15 = vld [vmem:[%s6785_s7 + $0xd8] sm:$0xff]  }
 0xad0   :  { %v2591_v12 = vsel %vm2590_vm11, %v2585_v56, %v2589_v25  ;;  %v2601_v27 = vsel %vm2586_vm9, %v2600_v23, %v2596_v63  ;;  %v2628_v8 = vsel %vm2590_vm11, %v2625_v57, %v2627_v4  ;;  %v2637_v20 = vsel %vm2586_vm9, %v2636_v9, %v2632_v46  ;;  %v5152_v40 = vld [vmem:[%s6785_s7 + $0x90] sm:$0xff]   ;;  %v5153_v46 = vld [vmem:[%s6785_s7 + $0x358] sm:$0xff]  }
 0xad1   :  { %v2593_v5 = vsel %vm2592_vm12, %v2585_v56, %v2591_v12  ;;  %v2602_v13 = vsel %vm2588_vm10, %v2600_v23, %v2601_v27  ;;  %v2629_v53 = vsel %vm2592_vm12, %v2625_v57, %v2628_v8  ;;  %v2638_v29 = vsel %vm2588_vm10, %v2636_v9, %v2637_v20  ;;  %v5151_v63 = vld [vmem:[%s6785_s7 + $0x310] sm:$0xff]   ;;  %v5156_v25 = vld [vmem:[%s6785_s7 + $0x98] sm:$0xff]   ;;  %v5160_v12 = vld [vmem:[%s6785_s7 + $0xa0] sm:$0xff]  }
 0xad2   :  { %2595 = vst [vmem:[#allocation3] sm:$0xf] %v2593_v5  ;;  %v2603_v11 = vsel %vm2590_vm11, %v2600_v23, %v2602_v13  ;;  %2631 = vst [vmem:[#allocation3 + $0x8] sm:$0xf] %v2629_v53  ;;  %v2639_v24 = vsel %vm2590_vm11, %v2636_v9, %v2638_v29  ;;  %v2668_v19 = vsel %vm2590_vm11, %v2665_v49, %v2667_v22  ;;  %v5155_v4 = vld [vmem:[%s6785_s7 + $0x318] sm:$0xff]   ;;  %v5158_v22 = vld [vmem:[%s6785_s7 + $0xe0] sm:$0xff]  }
 0xad3   :  { %v2678_v28 = vsel %vm2588_vm10, %v2676_v41, %v2677_v7  ;;  %v2604_v0 = vsel %vm2592_vm12, %v2600_v23, %v2603_v11  ;;  %v2640_v33 = vsel %vm2592_vm12, %v2636_v9, %v2639_v24  ;;  %v2669_v32 = vsel %vm2592_vm12, %v2665_v49, %v2668_v19  ;;  %v5146_v23 = vld [vmem:[%s6785_s7 + $0xc8] sm:$0xff]   ;;  %v5157_v7 = vld [vmem:[%s6785_s7 + $0x360] sm:$0xff]   ;;  %v5166_v53 = vld [vmem:[%s6785_s7 + $0xf0] sm:$0xff]  }
 0xad4   :  { %v2679_v37 = vsel %vm2590_vm11, %v2676_v41, %v2678_v28  ;;  %2606 = vst [vmem:[#allocation3 + $0x4] sm:$0xf] %v2604_v0  ;;  %2642 = vst [vmem:[#allocation3 + $0xc] sm:$0xf] %v2640_v33  ;;  %v2703_v36 = vsel %vm2588_vm10, %v2701_v52, %v2702_v17  ;;  %v2713_v51 = vsel %vm2586_vm9, %v2712_v45, %v2708_v60  ;;  %v5149_v60 = vld [vmem:[%s6785_s7 + $0x350] sm:$0xff]   ;;  %v5159_v27 = vld [vmem:[%s6785_s7 + $0x320] sm:$0xff]  }
 0xad5   :  { %2671 = vst [vmem:[#allocation3 + $0x10] sm:$0xf] %v2669_v32  ;;  %v2680_v38 = vsel %vm2592_vm12, %v2676_v41, %v2679_v37  ;;  %v2704_v16 = vsel %vm2590_vm11, %v2701_v52, %v2703_v36  ;;  %v2714_v31 = vsel %vm2588_vm10, %v2712_v45, %v2713_v51  ;;  %v5162_v8 = vld [vmem:[%s6785_s7 + $0xe8] sm:$0xff]   ;;  %v5165_v29 = vld [vmem:[%s6785_s7 + $0x370] sm:$0xff]   ;;  %v5170_v28 = vld [vmem:[%s6785_s7 + $0xf8] sm:$0xff]  }
 0xad6   :  { %2682 = vst [vmem:[#allocation3 + $0x14] sm:$0xf] %v2680_v38  ;;  %v2705_v6 = vsel %vm2592_vm12, %v2701_v52, %v2704_v16  ;;  %v2715_v48 = vsel %vm2590_vm11, %v2712_v45, %v2714_v31  ;;  %v5143_v52 = vld [vmem:[%s6785_s7 + $0x80] sm:$0xff]   ;;  %v5161_v20 = vld [vmem:[%s6785_s7 + $0x368] sm:$0xff]   ;;  %v5168_v11 = vld [vmem:[%s6785_s7 + $0xb0] sm:$0xff]  }
 0xad7   :  { %2707 = vst [vmem:[#allocation3 + $0x18] sm:$0xf] %v2705_v6  ;;  %v2716_v54 = vsel %vm2592_vm12, %v2712_v45, %v2715_v48  ;;  %v5164_v5 = vld [vmem:[%s6785_s7 + $0xa8] sm:$0xff]   ;;  %v5167_v19 = vld [vmem:[%s6785_s7 + $0x330] sm:$0xff]   ;;  %v5169_v0 = vld [vmem:[%s6785_s7 + $0x378] sm:$0xff]  }
 0xad8   :  { %2718 = vst [vmem:[#allocation3 + $0x1c] sm:$0xf] %v2716_v54  ;;  %v5163_v13 = vld [vmem:[%s6785_s7 + $0x328] sm:$0xff]   ;;  %v5172_v32 = vld [vmem:[%s6785_s7 + $0xb8] sm:$0xff]   ;;  %v5173_v38 = vld [vmem:[%s6785_s7 + $0x140] sm:$0xff]  }
 0xad9   :  { %v5171_v37 = vld [vmem:[%s6785_s7 + $0x338] sm:$0xff]   ;;  %v5174_v51 = vld [vmem:[%s6785_s7 + $0x100] sm:$0xff]   ;;  %v5175_v31 = vld [vmem:[%s6785_s7 + $0x148] sm:$0xff]  }
 0xada   :  { %v5176_v54 = vld [vmem:[%s6785_s7 + $0x108] sm:$0xff]  }
 0xadb   :  { %v2719_v47 = vld [vmem:[#allocation3] sm:$0xff]  ;;  %v2720_v24 = vld [vmem:[#allocation3 + $0x8] sm:$0xff] }
 0xadc   :  { %v2734_v14 = vrot.slane %v2719_v47, %v6379_v1  ;;  %v2727_v10 = vcombine.high %v2719_v47, %v2719_v47  ;;  %v2751_v33 = vrot.slane %v2720_v24, %v6379_v1  ;;  %v5177_v47 = vld [vmem:[%s6785_s7 + $0x150] sm:$0xff]  }
 0xadd   :  { %v2721_v34 = vld [vmem:[#allocation3 + $0x10] sm:$0xff] }
 0xade   :  { %v2768_v26 = vrot.slane %v2721_v34, %v6379_v1  ;;  %v2742_v3 = vcombine.high %v2734_v14, %v2734_v14  ;;  %v6440_v35 = vrot.slane %v2727_v10, %v6379_v1  ;;  %v2761_v39 = vcombine.high %v2721_v34, %v2721_v34  ;;  %v5178_v34 = vld [vmem:[%s6785_s7 + $0x110] sm:$0xff]   ;;  %v5180_v10 = vld [vmem:[%s6785_s7 + $0x118] sm:$0xff]  }
 0xadf   :  { %v2722_v42 = vld [vmem:[#allocation3 + $0x18] sm:$0xff]  ;;  %v2811_v57 = vpack.c.bf16 %v2734_v14, %v2734_v14  ;;  %v2759_v36 = vcombine.high %v2751_v33, %v2751_v33 }
 0xae0   :  { %v2776_v43 = vcombine.high %v2768_v26, %v2768_v26  ;;  %v2812_v49 = vpack.c.bf16 %v2742_v3, %v2742_v3  ;;  %v6446_v50 = vrot.slane %v2722_v42, %v6379_v1  ;;  %v2743_v59 = vcombine.high %v6440_v35, %v6440_v35  ;;  %v5179_v14 = vld [vmem:[%s6785_s7 + $0x158] sm:$0xff]   ;;  %v5182_v3 = vld [vmem:[%s6785_s7 + $0x120] sm:$0xff]  }
 0xae1   :  { %v2819_v62 = vpack.c.bf16 %v2768_v26, %v2768_v26  ;;  %v6459_v21 = vrot.slane %v2761_v39, %v6379_v1  ;;  %v2778_v9 = vcombine.high %v2722_v42, %v2722_v42  ;;  %v2813_v16 = vpack.c.bf16 %v6440_v35, %v6440_v35  ;;  %v5181_v26 = vld [vmem:[%s6785_s7 + $0x160] sm:$0xff]   ;;  %v5183_v35 = vld [vmem:[%s6785_s7 + $0x168] sm:$0xff]  }
 0xae2   :  { %v2820_v56 = vpack.c.bf16 %v2776_v43, %v2776_v43  ;;  %3890 = vmatprep.mubr.bf16.mxu0 %v2812_v49  ;;  %v2793_v41 = vcombine.high %v6446_v50, %v6446_v50  ;;  %v2814_v45 = vpack.c.bf16 %v2743_v59, %v2743_v59  ;;  %v2823_v6 = vpack.c.bf16 %v6446_v50, %v6446_v50  ;;  %v5184_v39 = vld [vmem:[%s6785_s7 + $0x128] sm:$0xff]   ;;  %v5185_v43 = vld [vmem:[%s6785_s7 + $0x170] sm:$0xff]   ;;  %v5188_v59 = vld [vmem:[%s6785_s7 + $0x138] sm:$0xff]  }
 0xae3   :  { %3891 = vmatmul.mubr.bf16.vlgmr.msra.gmra.mrb[16].mxu0 %v2811_v57  ;;  %v6474_v17 = vrot.slane %v2778_v9, %v6379_v1  ;;  %v2816_v48 = vpack.c.bf16 %v2759_v36, %v2759_v36  ;;  %v2744_v42 = vcombine.high %v2720_v24, %v2720_v24  ;;  %v5186_v49 = vld [vmem:[%s6785_s7 + $0x130] sm:$0xff]   ;;  %v5196_v9 = vld [vmem:[%s6785_s7 + $0x1d8] sm:$0xff]   ;;  %v5217_v24 = vld [vmem:[%s6785_s7 + $0x2e8] sm:$0xff]  }
 0xae4   :  { %4050 = vmatprep.mubr.bf16.mxu1 %v2820_v56  ;;  %4645 = vmatpush3.bf16.msra.mxu0 %v5143_v52  ;;  %v2824_v2 = vpack.c.bf16 %v2793_v41, %v2793_v41  ;;  %v5187_v52 = vld [vmem:[%s6785_s7 + $0x178] sm:$0xff]   ;;  %v5189_v56 = vld [vmem:[%s6785_s7 + $0x1c0] sm:$0xff]  }
 0xae5   :  { %4051 = vmatmul.mubr.bf16.vlgmr.msra.gmra.mrb[8].mxu1 %v2819_v62  ;;  %3930 = vmatprep.mubr.bf16.mxu0 %v2814_v45  ;;  %v2758_v50 = vrot.slane %v2744_v42, %v6379_v1  ;;  %v2815_v62 = vpack.c.bf16 %v2751_v33, %v2751_v33  ;;  %v5192_v1 = vld [vmem:[%s6785_s7 + $0x1c8] sm:$0xff]   ;;  %v5221_v33 = vld [vmem:[%s6785_s7 + $0x2f8] sm:$0xff]   ;;  %v5224_v36 = vld [vmem:[%s6785_s7 + $0x380] sm:$0xff]   ;;  %v2825_v42 = vpack.c.bf16 %v6474_v17, %v6474_v17 }
 0xae6   :  { %4755 = vmatpush3.bf16.msra.mxu1 %v5142_v61  ;;  %4130 = vmatprep.mubr.bf16.mxu1 %v2824_v2  ;;  %v5190_v61 = vld [vmem:[%s6785_s7 + $0x180] sm:$0xff]   ;;  %v5193_v45 = vld [vmem:[%s6785_s7 + $0x188] sm:$0xff]   ;;  %v5197_v2 = vld [vmem:[%s6785_s7 + $0x198] sm:$0xff]  }
 0xae7   :  { %4756 = vmatprep.subr.bf16.mxu1 %v5145_v58  ;;  %4646 = vmatprep.subr.bf16.mxu0 %v5146_v23  ;;  %v2760_v57 = vcombine.high %v2758_v50, %v2758_v50  ;;  %v5194_v58 = vld [vmem:[%s6785_s7 + $0x1d0] sm:$0xff]  }
 0xae8   :  { %4647 = vmatpush3.bf16.msra.mxu0 %v5148_v44  ;;  %v5195_v23 = vld [vmem:[%s6785_s7 + $0x190] sm:$0xff]   ;;  %v5198_v44 = vld [vmem:[%s6785_s7 + $0x1e0] sm:$0xff]  }
 0xae9   :  { %4648 = vmatprep.subr.bf16.mxu0 %v5150_v55  ;;  %v2818_v41 = vpack.c.bf16 %v2760_v57, %v2760_v57  ;;  %v5200_v55 = vld [vmem:[%s6785_s7 + $0x1e8] sm:$0xff]  }
 0xaea   :  { %4757 = vmatpush3.bf16.msra.mxu1 %v5147_v30  ;;  %v5199_v30 = vld [vmem:[%s6785_s7 + $0x1a0] sm:$0xff]  }
 0xaeb   :  { %4758 = vmatprep.subr.bf16.mxu1 %v5149_v60  ;;  %v5201_v60 = vld [vmem:[%s6785_s7 + $0x1a8] sm:$0xff]  }
 0xaec   :  { %4649 = vmatpush3.bf16.msra.mxu0 %v5152_v40  ;;  %v5202_v40 = vld [vmem:[%s6785_s7 + $0x1f0] sm:$0xff]  }
 0xaed   :  { %4650 = vmatprep.subr.bf16.mxu0 %v5154_v15  ;;  %v5204_v15 = vld [vmem:[%s6785_s7 + $0x1f8] sm:$0xff]  }
 0xaee   :  { %4759 = vmatpush3.bf16.msra.mxu1 %v5151_v63  ;;  %v5203_v63 = vld [vmem:[%s6785_s7 + $0x1b0] sm:$0xff]  }
 0xaef   :  { %4760 = vmatprep.subr.bf16.mxu1 %v5153_v46  ;;  %v5205_v46 = vld [vmem:[%s6785_s7 + $0x1b8] sm:$0xff]  }
 0xaf0   :  { %4651 = vmatpush3.bf16.msra.mxu0 %v5156_v25  ;;  %v5206_v25 = vld [vmem:[%s6785_s7 + $0x2c0] sm:$0xff]  }
 0xaf1   :  { %4652 = vmatprep.subr.bf16.mxu0 %v5158_v22  ;;  %v5207_v22 = vld [vmem:[%s6785_s7 + $0x280] sm:$0xff]  }
 0xaf2   :  { %4761 = vmatpush3.bf16.msra.mxu1 %v5155_v4  ;;  %v2777_v4 = vcombine.high %v6459_v21, %v6459_v21 }
 0xaf3   :  { %4762 = vmatprep.subr.bf16.mxu1 %v5157_v7  ;;  %v2817_v7 = vpack.c.bf16 %v2758_v50, %v2758_v50 }
 0xaf4   :  { %4653 = vmatpush3.bf16.msra.mxu0 %v5160_v12  ;;  %v5209_v12 = vld [vmem:[%s6785_s7 + $0x2c8] sm:$0xff]  }
 0xaf5   :  { %4654 = vmatprep.subr.bf16.mxu0 %v5162_v8  ;;  %v5210_v8 = vld [vmem:[%s6785_s7 + $0x288] sm:$0xff]  }
 0xaf6   :  { %4763 = vmatpush3.bf16.msra.mxu1 %v5159_v27  ;;  %v2822_v27 = vpack.c.bf16 %v2777_v4, %v2777_v4 }
 0xaf7   :  { %4764 = vmatprep.subr.bf16.mxu1 %v5161_v20  ;;  %v5211_v20 = vld [vmem:[%s6785_s7 + $0x2d0] sm:$0xff]  }
 0xaf8   :  { %4655 = vmatpush3.bf16.msra.mxu0 %v5164_v5  ;;  %v5212_v5 = vld [vmem:[%s6785_s7 + $0x290] sm:$0xff]  }
 0xaf9   :  { %4656 = vmatprep.subr.bf16.mxu0 %v5166_v53  ;;  %v5214_v53 = vld [vmem:[%s6785_s7 + $0x298] sm:$0xff]  }
 0xafa   :  { %4765 = vmatpush3.bf16.msra.mxu1 %v5163_v13  ;;  %v5213_v13 = vld [vmem:[%s6785_s7 + $0x2d8] sm:$0xff]  }
 0xafb   :  { %4766 = vmatprep.subr.bf16.mxu1 %v5165_v29  ;;  %v5215_v29 = vld [vmem:[%s6785_s7 + $0x2e0] sm:$0xff]  }
 0xafc   :  { %4657 = vmatpush3.bf16.msra.mxu0 %v5168_v11  ;;  %v5216_v11 = vld [vmem:[%s6785_s7 + $0x2a0] sm:$0xff]  }
 0xafd   :  { %4658 = vmatprep.subr.bf16.mxu0 %v5170_v28  ;;  %v5219_v28 = vld [vmem:[%s6785_s7 + $0x2f0] sm:$0xff]  }
 0xafe   :  { %4767 = vmatpush3.bf16.msra.mxu1 %v5167_v19  ;;  %v5218_v19 = vld [vmem:[%s6785_s7 + $0x2a8] sm:$0xff]  }
 0xaff   :  { %4768 = vmatprep.subr.bf16.mxu1 %v5169_v0  ;;  %v5220_v0 = vld [vmem:[%s6785_s7 + $0x2b0] sm:$0xff]  }
 0xb00   :  { %4659 = vmatpush3.bf16.msra.mxu0 %v5172_v32  ;;  %v5222_v32 = vld [vmem:[%s6785_s7 + $0x2b8] sm:$0xff]  }
 0xb01   :  { %4666 = vmatprep.subr.bf16.mxu0 %v5173_v38  ;;  %v2794_v38 = vcombine.high %v6474_v17, %v6474_v17  ;;  %v5243_v17 = vld [vmem:[#allocation7 + $0x18] sm:$0xff]  }
 0xb02   :  { %4769 = vmatpush3.bf16.msra.mxu1 %v5171_v37  ;;  %v5223_v37 = vld [vmem:[%s6785_s7 + $0x3c0] sm:$0xff]  }
 0xb03   :  { %4807 = vmatprep.subr.bf16.mxu1 %v5336_v18  ;;  %3931 = vmatmul.mubr.bf16.vlgmr.msra.gmra.mrb[20].mxu0 %v2813_v16  ;;  %v5226_v16 = vld [vmem:[%s6785_s7 + $0x3c8] sm:$0xff]  }
 0xb04   :  { %4667 = vmatpush3.bf16.msra.mxu0 %v5174_v51  ;;  %3970 = vmatprep.mubr.bf16.mxu0 %v2816_v48  ;;  %v2821_v51 = vpack.c.bf16 %v6459_v21, %v6459_v21  ;;  %v5228_v48 = vld [vmem:[%s6785_s7 + $0x3d0] sm:$0xff]  }
 0xb05   :  { %4131 = vmatmul.mubr.bf16.vlgmr.msra.gmra.mrb[12].mxu1 %v2823_v6  ;;  %4668 = vmatprep.subr.bf16.mxu0 %v5175_v31  ;;  %v2826_v31 = vpack.c.bf16 %v2794_v38, %v2794_v38  ;;  %v5227_v6 = vld [vmem:[%s6785_s7 + $0x388] sm:$0xff]   ;;  %v5229_v21 = vld [vmem:[%s6785_s7 + $0x390] sm:$0xff]  }
 0xb06   :  { %4823 = vmatprep.mubr.msk.bf16.mxu1 %vm5339_vm13, %v5336_v18 }
 0xb08   :  { %4669 = vmatpush3.bf16.msra.mxu0 %v5176_v54  ;;  %v5230_v54 = vld [vmem:[%s6785_s7 + $0x3d8] sm:$0xff]  }
 0xb09   :  { %4670 = vmatprep.subr.bf16.mxu0 %v5177_v47  ;;  %v5231_v47 = vld [vmem:[%s6785_s7 + $0x398] sm:$0xff]  }
 0xb0c   :  { %4671 = vmatpush3.bf16.msra.mxu0 %v5178_v34  ;;  %v5232_v34 = vld [vmem:[%s6785_s7 + $0x3e0] sm:$0xff]  }
 0xb0d   :  { %4672 = vmatprep.subr.bf16.mxu0 %v5179_v14  ;;  %v5233_v14 = vld [vmem:[%s6785_s7 + $0x3a0] sm:$0xff]  }
 0xb10   :  { %4673 = vmatpush3.bf16.msra.mxu0 %v5180_v10  ;;  %v5234_v10 = vld [vmem:[%s6785_s7 + $0x3e8] sm:$0xff]  }
 0xb11   :  { %4674 = vmatprep.subr.bf16.mxu0 %v5181_v26  ;;  %v5235_v26 = vld [vmem:[%s6785_s7 + $0x3a8] sm:$0xff]  }
 0xb14   :  { %4675 = vmatpush3.bf16.msra.mxu0 %v5182_v3  ;;  %v5236_v3 = vld [vmem:[%s6785_s7 + $0x3f0] sm:$0xff]  }
 0xb15   :  { %4676 = vmatprep.subr.bf16.mxu0 %v5183_v35  ;;  %v5237_v35 = vld [vmem:[%s6785_s7 + $0x3b0] sm:$0xff]  }
 0xb18   :  { %4677 = vmatpush3.bf16.msra.mxu0 %v5184_v39  ;;  %v5238_v39 = vld [vmem:[%s6785_s7 + $0x3f8] sm:$0xff]  }
 0xb19   :  { %4678 = vmatprep.subr.bf16.mxu0 %v5185_v43  ;;  %v5239_v43 = vld [vmem:[%s6785_s7 + $0x3b8] sm:$0xff]  }
 0xb1c   :  { %4679 = vmatpush3.bf16.msra.mxu0 %v5186_v49 }
 0xb1d   :  { %4680 = vmatprep.subr.bf16.mxu0 %v5187_v52 }
 0xb20   :  { %4681 = vmatpush3.bf16.msra.mxu0 %v5188_v59 }
 0xb21   :  { %4688 = vmatprep.subr.bf16.mxu0 %v5189_v56 }
 0xb23   :  { %3971 = vmatmul.mubr.bf16.vlgmr.msra.gmra.mrb[24].mxu0 %v2815_v62 }
 0xb24   :  { %4689 = vmatpush3.bf16.msra.mxu0 %v5190_v61  ;;  %4010 = vmatprep.mubr.bf16.mxu0 %v2818_v41 }
 0xb25   :  { %4690 = vmatprep.subr.bf16.mxu0 %v5192_v1 }
 0xb28   :  { %4691 = vmatpush3.bf16.msra.mxu0 %v5193_v45  ;;  %v5240_v45 = vld [vmem:[#allocation7] sm:$0xff]  }
 0xb29   :  { %4692 = vmatprep.subr.bf16.mxu0 %v5194_v58  ;;  %4808 = vmatpush3.bf16.msra.mxu1 %v5240_v45  ;;  %v5241_v58 = vld [vmem:[#allocation7 + $0x8] sm:$0xff]  }
 0xb2a   :  { %4809 = vmatprep.subr.bf16.mxu1 %v5336_v18 }
 0xb2c   :  { %4693 = vmatpush3.bf16.msra.mxu0 %v5195_v23  ;;  %v5242_v23 = vld [vmem:[#allocation7 + $0x10] sm:$0xff]  }
 0xb2d   :  { %4694 = vmatprep.subr.bf16.mxu0 %v5196_v9  ;;  %4810 = vmatpush3.bf16.msra.mxu1 %v5241_v58  ;;  %v5244_v9 = vld [vmem:[#allocation7 + $0x20] sm:$0xff]  }
 0xb2e   :  { %4811 = vmatprep.subr.bf16.mxu1 %v5336_v18 }
 0xb30   :  { %4695 = vmatpush3.bf16.msra.mxu0 %v5197_v2  ;;  %v5245_v2 = vld [vmem:[#allocation7 + $0x28] sm:$0xff]  }
 0xb31   :  { %4696 = vmatprep.subr.bf16.mxu0 %v5198_v44  ;;  %4812 = vmatpush3.bf16.msra.mxu1 %v5242_v23  ;;  %v4484_v44 = vld [vmem:[%s6786_s8] ss:$0 sm:$0xff] }
 0xb32   :  { %4813 = vmatprep.subr.bf16.mxu1 %v5336_v18 }
 0xb34   :  { %4697 = vmatpush3.bf16.msra.mxu0 %v5199_v30 }
 0xb35   :  { %4698 = vmatprep.subr.bf16.mxu0 %v5200_v55  ;;  %4814 = vmatpush3.bf16.msra.mxu1 %v5243_v17 }
 0xb36   :  { %4815 = vmatprep.subr.bf16.mxu1 %v5336_v18 }
 0xb38   :  { %4699 = vmatpush3.bf16.msra.mxu0 %v5201_v60 }
 0xb39   :  { %4700 = vmatprep.subr.bf16.mxu0 %v5202_v40  ;;  %4816 = vmatpush3.bf16.msra.mxu1 %v5244_v9 }
 0xb3a   :  { %4817 = vmatprep.subr.bf16.mxu1 %v5336_v18 }
 0xb3c   :  { %4701 = vmatpush3.bf16.msra.mxu0 %v5203_v63 }
 0xb3d   :  { %4702 = vmatprep.subr.bf16.mxu0 %v5204_v15  ;;  %4818 = vmatpush3.bf16.msra.mxu1 %v5245_v2 }
 0xb3e   :  { %4819 = vmatprep.subr.bf16.mxu1 %v5336_v18 }
 0xb40   :  { %4703 = vmatpush3.bf16.msra.mxu0 %v5205_v46 }
 0xb41   :  { %4732 = vmatprep.subr.bf16.mxu0 %v5206_v25 }
 0xb43   :  { %4011 = vmatmul.mubr.bf16.vlgmr.msra.gmra.mrb[28].mxu0 %v2817_v7 }
 0xb44   :  { %4733 = vmatpush3.bf16.msra.mxu0 %v5207_v22  ;;  %4090 = vmatprep.mubr.bf16.mxu0 %v2822_v27  ;;  %v5246_v27 = vld [vmem:[#allocation7 + $0x30] sm:$0xff]  }
 0xb45   :  { %4734 = vmatprep.subr.bf16.mxu0 %v5209_v12  ;;  %4820 = vmatpush3.bf16.msra.mxu1 %v5246_v27 }
 0xb46   :  { %4821 = vmatprep.subr.bf16.mxu1 %v5336_v18 }
 0xb48   :  { %4735 = vmatpush3.bf16.msra.mxu0 %v5210_v8  ;;  %v5247_v8 = vld [vmem:[#allocation7 + $0x38] sm:$0xff]  }
 0xb49   :  { %4736 = vmatprep.subr.bf16.mxu0 %v5211_v20  ;;  %4822 = vmatpush3.bf16.msra.mxu1 %v5247_v8 }
 0xb4c   :  { %4737 = vmatpush3.bf16.msra.mxu0 %v5212_v5 }
 0xb4d   :  { %4738 = vmatprep.subr.bf16.mxu0 %v5213_v13 }
 0xb50   :  { %4739 = vmatpush3.bf16.msra.mxu0 %v5214_v53 }
 0xb51   :  { %4740 = vmatprep.subr.bf16.mxu0 %v5215_v29 }
 0xb54   :  { %4741 = vmatpush3.bf16.msra.mxu0 %v5216_v11 }
 0xb55   :  { %4742 = vmatprep.subr.bf16.mxu0 %v5217_v24 }
 0xb58   :  { %4743 = vmatpush3.bf16.msra.mxu0 %v5218_v19 }
 0xb59   :  { %4744 = vmatprep.subr.bf16.mxu0 %v5219_v28 }
 0xb5c   :  { %4745 = vmatpush3.bf16.msra.mxu0 %v5220_v0 }
 0xb5d   :  { %4746 = vmatprep.subr.bf16.mxu0 %v5221_v33 }
 0xb60   :  { %4747 = vmatpush3.bf16.msra.mxu0 %v5222_v32 }
 0xb61   :  { %4776 = vmatprep.subr.bf16.mxu0 %v5223_v37 }
 0xb63   :  { %4091 = vmatmul.mubr.bf16.vlgmr.msra.gmra.mrb[32].mxu0 %v2821_v51 }
 0xb64   :  { %4777 = vmatpush3.bf16.msra.mxu0 %v5224_v36  ;;  %4170 = vmatprep.mubr.bf16.mxu0 %v2826_v31 }
 0xb65   :  { %4778 = vmatprep.subr.bf16.mxu0 %v5226_v16 }
 0xb68   :  { %4779 = vmatpush3.bf16.msra.mxu0 %v5227_v6 }
 0xb69   :  { %4780 = vmatprep.subr.bf16.mxu0 %v5228_v48 }
 0xb6c   :  { %4781 = vmatpush3.bf16.msra.mxu0 %v5229_v21 }
 0xb6d   :  { %4782 = vmatprep.subr.bf16.mxu0 %v5230_v54 }
 0xb70   :  { %4783 = vmatpush3.bf16.msra.mxu0 %v5231_v47 }
 0xb71   :  { %4784 = vmatprep.subr.bf16.mxu0 %v5232_v34 }
 0xb74   :  { %4785 = vmatpush3.bf16.msra.mxu0 %v5233_v14 }
 0xb75   :  { %4786 = vmatprep.subr.bf16.mxu0 %v5234_v10 }
 0xb78   :  { %4787 = vmatpush3.bf16.msra.mxu0 %v5235_v26 }
 0xb79   :  { %4788 = vmatprep.subr.bf16.mxu0 %v5236_v3  ;;  %v4613_v3 = vld [vmem:[%s6788_s10] ss:$0 sm:$0xff] }
 0xb7c   :  { %4789 = vmatpush3.bf16.msra.mxu0 %v5237_v35 }
 0xb7d   :  { %4790 = vmatprep.subr.bf16.mxu0 %v5238_v39 }
 0xb80   :  { %4791 = vmatpush3.bf16.msra.mxu0 %v5239_v43 }
 0xb83   :  { %4171 = vmatmul.mubr.bf16.vlgmr.msra.gmra.mrb[36].mxu0 %v2825_v42 }
 0xbb6   :  { %v4638_v49 = vpop.f32.mrb[16].mxu0 }
 0xbb7   :  { %v4639_v50 = vpop.f32.mrb[17].mxu0 }
 0xbb8   :  { %v4726_v52 = vpop.f32.mrb[8].mxu1  ;;  %v4640_v56 = vadd.f32 %v4639_v50, %v4638_v49  ;;  %v4641_v57 = vpop.f32.mrb[18].mxu0 }
 0xbb9   :  { %v4727_v59 = vpop.f32.mrb[9].mxu1  ;;  %v4642_v1 = vpop.f32.mrb[19].mxu0 }
 0xbba   :  { %v4728_v61 = vadd.f32 %v4727_v59, %v4726_v52  ;;  %v4729_v62 = vpop.f32.mrb[10].mxu1  ;;  %v3893_v40 = vadd.f32 %v4640_v56, %v4484_v44 }
 0xbbb   :  { %v4730_v41 = vpop.f32.mrb[11].mxu1 }
 0xbd6   :  { %v4660_v30 = vpop.f32.mrb[20].mxu0 }
 0xbd7   :  { %v4661_v60 = vpop.f32.mrb[21].mxu0 }
 0xbd8   :  { %v4770_v55 = vpop.f32.mrb[12].mxu1  ;;  %v4662_v15 = vadd.f32 %v4661_v60, %v4660_v30  ;;  %v4663_v46 = vpop.f32.mrb[22].mxu0 }
 0xbd9   :  { %v4771_v63 = vpop.f32.mrb[13].mxu1  ;;  %v4664_v22 = vpop.f32.mrb[23].mxu0 }
 0xbda   :  { %v4772_v25 = vadd.f32 %v4771_v63, %v4770_v55  ;;  %v4773_v4 = vpop.f32.mrb[14].mxu1  ;;  %v3933_v7 = vadd.f32 %v4662_v15, %v3893_v40 }
 0xbdb   :  { %v4774_v12 = vpop.f32.mrb[15].mxu1 }
 0xbf6   :  { %v4682_v20 = vpop.f32.mrb[24].mxu0 }
 0xbf7   :  { %v4683_v5 = vpop.f32.mrb[25].mxu0 }
 0xbf8   :  { %v4684_v13 = vadd.f32 %v4683_v5, %v4682_v20  ;;  %v4685_v53 = vpop.f32.mrb[26].mxu0 }
 0xbf9   :  { %v4686_v29 = vpop.f32.mrb[27].mxu0 }
 0xbfa   :  { %v3973_v11 = vadd.f32 %v4684_v13, %v3933_v7 }
 0xc16   :  { %v4704_v24 = vpop.f32.mrb[28].mxu0 }
 0xc17   :  { %v4705_v19 = vpop.f32.mrb[29].mxu0 }
 0xc18   :  { %v4706_v28 = vadd.f32 %v4705_v19, %v4704_v24  ;;  %v4707_v0 = vpop.f32.mrb[30].mxu0 }
 0xc19   :  { %v4708_v33 = vpop.f32.mrb[31].mxu0 }
 0xc1a   :  { %v4013_v32 = vadd.f32 %v4706_v28, %v3973_v11 }
 0xc1c   :  { %v4053_v37 = vadd.f32 %v4728_v61, %v4013_v32 }
 0xc36   :  { %v4748_v38 = vpop.f32.mrb[32].mxu0 }
 0xc37   :  { %v4749_v36 = vpop.f32.mrb[33].mxu0 }
 0xc38   :  { %v4750_v51 = vadd.f32 %v4749_v36, %v4748_v38  ;;  %v4751_v16 = vpop.f32.mrb[34].mxu0 }
 0xc39   :  { %v4752_v31 = vpop.f32.mrb[35].mxu0 }
 0xc3a   :  { %v4093_v18 = vadd.f32 %v4750_v51, %v4053_v37 }
 0xc3c   :  { %v4133_v6 = vadd.f32 %v4772_v25, %v4093_v18 }
 0xc56   :  { %v4792_v48 = vpop.f32.mrb[36].mxu0 }
 0xc57   :  { %v4793_v21 = vpop.f32.mrb[37].mxu0 }
 0xc58   :  { %v4794_v54 = vadd.f32 %v4793_v21, %v4792_v48  ;;  %v4795_v47 = vpop.f32.mrb[38].mxu0 }
 0xc59   :  { %v4796_v34 = vpop.f32.mrb[39].mxu0 }
 0xc5a   :  { %v4173_v14 = vadd.f32 %v4794_v54, %v4133_v6 }
 0xc5c   :  { %v4178_v10 = vmax.f32 %v4173_v14, 0.0 }
 0xc5e   :  { %v4179_v26 = vpack.c.bf16 %v4178_v10, %v4178_v10 }
 0xc60   :  { %4824 = vmatmul.mubr.bf16.vlgmr.msra.gmra.mrb[16].mxu1 %v4179_v26 }
 0xd33   :  { %v4285_v35 = vpop.f32.mrb[16].mxu1 }
 0xd34   :  { %v4286_v39 = vadd.f32 %v4613_v3, %v4285_v35  ;;  %v4825_v43 = vpop.f32.mrb[17].mxu1 }
 0xd35   :  { %v4288_v42 = vpop.f32.mrb[18].mxu1 }
 0xd36   :  { %4291 = vst [vmem:[#allocation9] sm:$0x3] %v4286_v39  ;;  %v4826_v49 = vpop.f32.mrb[19].mxu1 }
 0xd37   :  { %5307 = shalt.err (!%p5304_p6)
}
 0xd38   :  { %s5308_s10 = scalar_lea.hbm %s6789_s11, 32 }
 0xd39   :  { %p5309_p7 = scmp.ne.s32.totalorder %s6789_s11, %s5308_s10  ;;  %p5312_p8 = scmp.lt.u32.totalorder %s5308_s10, %s6789_s11 }
 0xd3b   :  { %p5314_p9 = pnand %p5312_p8, %p5309_p7 }
 0xd3d   :  { %5317 = shalt.err (!%p5314_p9)
}
 0xd3e   :  { %4301 = dma.vmem_to_hbm [thread:$0]  %s4299_s19, 32, %s6789_s11, [#allocation6]  }
 0xd3f   :  { %5322 = dma.done.wait [#allocation6], 32  }
 0xd40   :  { %5323 = vsyncadd [#allocation6], 4294967264 }
 0xd41   :  { %4305 = vsyncpa [#allocation5], 1 }
 0xd42   :  { %4306 = vsyncpa [#allocation8], 1 }
 0xd43   :  { %4307 = vsyncpa [#allocation6], 1 }

</bundles_post_ra>
